<compile_context>
chip_gen: v5e
topology: v5e:2x2
jax: 0.10.0
libtpu: 0.0.40
codegen_flags: <defaults>
</compile_context>

<pallas_src>
import jax
import jax.numpy as jnp
from jax.experimental import pallas as pl
from jax.experimental.pallas import tpu as pltpu

# ----------------------------- model config ---------------------------------
BATCH = 2
IN_CH = 4
IMG = 16
PATCH = 4
EMBED = 32
HEADS = 2
HEAD_DIM = EMBED // HEADS
DEPTH = 2          # TODO(synk): reference model has 12 blocks (taps blocks.11); scaled down.
MLP_HIDDEN = 4 * EMBED
NUM_CLASSES = 8
N_TOKENS = (IMG // PATCH) ** 2          # 16 tokens
PATCH_DIM = IN_CH * PATCH * PATCH       # 64
BN = BATCH * N_TOKENS                   # 32 (batch folded into M)
LN_EPS = 1e-6

assert N_TOKENS & (N_TOKENS - 1) == 0, "block-diag mask uses a power-of-two shift"
_BLK_SHIFT = N_TOKENS.bit_length() - 1
_NEG_INF = -1e30


# ----------------------------- kernel helpers --------------------------------
def _layernorm(x, g, b):
    mu = jnp.mean(x, axis=-1, keepdims=True)
    var = jnp.mean((x - mu) ** 2, axis=-1, keepdims=True)
    return (x - mu) * jax.lax.rsqrt(var + LN_EPS) * g + b


# ----------------------------- fused Pallas kernel ----------------------------
def vit_fused_kernel(patches_ref, pw_ref, pb_ref, pos_ref,
                     ln1g_ref, ln1b_ref,
                     wq_ref, wk_ref, wv_ref, bq_ref, bk_ref, bv_ref,
                     wproj_ref, bproj_ref,
                     ln2g_ref, ln2b_ref,
                     w1_ref, b1_ref, w2_ref, b2_ref,
                     lng_ref, lnb_ref,
                     pool_ref, hw_ref, hb_ref,
                     attn_ref, logits_ref):
    f32 = jnp.float32
    bf16 = jnp.bfloat16

    # Batch-block-diagonal additive mask over the folded (BN, BN) score matrix:
    # rows/cols in different batches get -1e30 (exp underflows to exactly 0),
    # so one big softmax over BN keys equals the per-batch softmax on-block.
    rows = jax.lax.broadcasted_iota(jnp.int32, (BN, BN), 0)
    cols = jax.lax.broadcasted_iota(jnp.int32, (BN, BN), 1)
    same_batch = jnp.right_shift(rows, _BLK_SHIFT) == jnp.right_shift(cols, _BLK_SHIFT)
    mask = jnp.where(same_batch, 0.0, _NEG_INF).astype(f32)

    # ---- patch embed (batch folded into the matmul M dimension) ----
    x = (jnp.dot(patches_ref[...], pw_ref[...], preferred_element_type=f32)
         + pb_ref[...])                                                   # (BN, D) f32
    pos = pos_ref[...]                                                    # (N, D) f32
    x = x + jnp.concatenate([pos] * BATCH, axis=0)                        # in-kernel tile

    # ---- transformer blocks, statically unrolled; activations stay in VMEM ----
    for layer in range(DEPTH):
        is_last = layer == DEPTH - 1

        # attention branch (pre-norm)
        h = _layernorm(x, ln1g_ref[layer], ln1b_ref[layer])               # f32
        hb = h.astype(bf16)

        proj = None
        for hh in range(HEADS):                                           # HEADS=2, unrolled
            # per-head projections: leading-dim weight indexing, no lane slicing.
            # 1/sqrt(head_dim) is already folded into wq / bq.
            q = (jnp.dot(hb, wq_ref[layer, hh], preferred_element_type=f32)
                 + bq_ref[layer, hh])                                     # (BN, d) f32
            k = (jnp.dot(hb, wk_ref[layer, hh], preferred_element_type=f32)
                 + bk_ref[layer, hh])
            v = (jnp.dot(hb, wv_ref[layer, hh], preferred_element_type=f32)
                 + bv_ref[layer, hh])

            # one QK^T for ALL batches (block-diagonal mask handles batching)
            s = jax.lax.dot_general(q.astype(bf16), k.astype(bf16),
                                    (((1,), (1,)), ((), ())),
                                    preferred_element_type=f32) + mask    # (BN, BN)
            m = jnp.max(s, axis=-1, keepdims=True)
            e = jnp.exp(s - m)
            den = jnp.sum(e, axis=-1, keepdims=True)
            if is_last:
                # tapped output: exact reciprocal so it matches torch.softmax;
                # stored as a full (BN, BN) slab (widest natural store here).
                probs = e / den
                attn_ref[hh] = probs
            else:
                probs = e * pl.reciprocal(den, approx=True)

            ctx = jnp.dot(probs.astype(bf16), v.astype(bf16),
                          preferred_element_type=f32)                     # (BN, d)
            # per-head output projection accumulation (no ctx concat/scatter)
            p_h = jnp.dot(ctx.astype(bf16), wproj_ref[layer, hh],
                          preferred_element_type=f32)                     # (BN, D)
            proj = p_h if proj is None else proj + p_h

        x = x + proj + bproj_ref[layer]

        # MLP branch
        h2 = _layernorm(x, ln2g_ref[layer], ln2b_ref[layer])
        m1 = (jnp.dot(h2.astype(bf16), w1_ref[layer], preferred_element_type=f32)
              + b1_ref[layer])
        m1 = jax.nn.gelu(m1, approximate=True)   # TODO(synk): timm default is exact erf GELU
        x = x + (jnp.dot(m1.astype(bf16), w2_ref[layer], preferred_element_type=f32)
                 + b2_ref[layer])

    # ---- head: final LN, avg-pool over tokens via pooling matmul, linear ----
    # TODO(synk): some timm ViTs pool via the class token; avg-pool stand-in kept.
    hf = _layernorm(x, lng_ref[...], lnb_ref[...])                        # (BN, D) f32
    pooled = jnp.dot(pool_ref[...], hf.astype(bf16),
                     preferred_element_type=f32)                          # (B, D)
    logits = (jnp.dot(pooled.astype(bf16), hw_ref[...],
                      preferred_element_type=f32) + hb_ref[...])
    logits_ref[...] = logits.astype(logits_ref.dtype)


# ----------------------------- pallas_call wrapper ----------------------------
def _full_spec(shape):
    nd = len(shape)
    return pl.BlockSpec(shape, lambda i, _nd=nd: (0,) * _nd)


def vit_forward_fused(patches_bf16, kp):
    args = (patches_bf16, kp["patch_w"], kp["patch_b"], kp["pos"],
            kp["ln1_g"], kp["ln1_b"],
            kp["wq"], kp["wk"], kp["wv"], kp["bq"], kp["bk"], kp["bv"],
            kp["wproj"], kp["bproj"],
            kp["ln2_g"], kp["ln2_b"],
            kp["w1"], kp["b1"], kp["w2"], kp["b2"],
            kp["ln_g"], kp["ln_b"],
            kp["pool"], kp["head_w"], kp["head_b"])
    out_shape = (jax.ShapeDtypeStruct((HEADS, BN, BN), jnp.float32),
                 jax.ShapeDtypeStruct((BATCH, NUM_CLASSES), jnp.float32))
    out_specs = (_full_spec((HEADS, BN, BN)),
                 _full_spec((BATCH, NUM_CLASSES)))
    return pl.pallas_call(
        vit_fused_kernel,
        grid=(1,),
        in_specs=[_full_spec(a.shape) for a in args],
        out_specs=out_specs,
        out_shape=out_shape,
        compiler_params=pltpu.CompilerParams(vmem_limit_bytes=32 * 1024 * 1024),
    )(*args)


# ----------------------------- parameter init --------------------------------
def init_params(key):
    def dense(k, shape, scale=0.02):
        return (scale * jax.random.normal(k, shape)).astype(jnp.float32)

    k = jax.random.split(key, 7)
    return {
        "patch_w": dense(k[0], (PATCH_DIM, EMBED)),
        "patch_b": jnp.zeros((1, EMBED), jnp.float32),
        "pos": dense(k[1], (N_TOKENS, EMBED)),
        "ln_g": jnp.ones((1, EMBED), jnp.float32),
        "ln_b": jnp.zeros((1, EMBED), jnp.float32),
        "head_w": dense(k[2], (EMBED, NUM_CLASSES)),
        "head_b": jnp.zeros((1, NUM_CLASSES), jnp.float32),
        "blk": {   # per-block params stacked along a leading DEPTH axis (timm layout)
            "ln1_g": jnp.ones((DEPTH, 1, EMBED), jnp.float32),
            "ln1_b": jnp.zeros((DEPTH, 1, EMBED), jnp.float32),
            "w_qkv": dense(k[3], (DEPTH, EMBED, 3 * EMBED)),
            "b_qkv": jnp.zeros((DEPTH, 1, 3 * EMBED), jnp.float32),
            "w_proj": dense(k[4], (DEPTH, EMBED, EMBED)),
            "b_proj": jnp.zeros((DEPTH, 1, EMBED), jnp.float32),
            "ln2_g": jnp.ones((DEPTH, 1, EMBED), jnp.float32),
            "ln2_b": jnp.zeros((DEPTH, 1, EMBED), jnp.float32),
            "w_mlp1": dense(k[5], (DEPTH, EMBED, MLP_HIDDEN)),
            "b_mlp1": jnp.zeros((DEPTH, 1, MLP_HIDDEN), jnp.float32),
            "w_mlp2": dense(k[6], (DEPTH, MLP_HIDDEN, EMBED)),
            "b_mlp2": jnp.zeros((DEPTH, 1, EMBED), jnp.float32),
        },
    }


def prepare_params(p):
    """Split qkv/proj per head, fold the attention scale into W_q/b_q, cast all
    matmul weights to bf16 (LN params / biases / pos stay f32), and build the
    pooling matrix once."""
    bf16 = jnp.bfloat16
    blk = p["blk"]
    scale = 1.0 / (HEAD_DIM ** 0.5)

    # timm qkv output-feature ordering is [3, heads, head_dim]
    wqkv = blk["w_qkv"].reshape(DEPTH, EMBED, 3, HEADS, HEAD_DIM)
    bqkv = blk["b_qkv"].reshape(DEPTH, 3, HEADS, HEAD_DIM)
    wq = (wqkv[:, :, 0] * scale).transpose(0, 2, 1, 3)      # (D, H, E, d), scale folded
    wk = wqkv[:, :, 1].transpose(0, 2, 1, 3)
    wv = wqkv[:, :, 2].transpose(0, 2, 1, 3)
    bq = (bqkv[:, 0] * scale)[:, :, None, :]                # (D, H, 1, d)
    bk = bqkv[:, 1][:, :, None, :]
    bv = bqkv[:, 2][:, :, None, :]
    # proj input features are head-major (ctx concat order)
    wproj = blk["w_proj"].reshape(DEPTH, HEADS, HEAD_DIM, EMBED)

    # averaging pool matrix: pooled = pool @ tokens  (built once, not per call)
    pool = (jnp.repeat(jnp.eye(BATCH, dtype=jnp.float32), N_TOKENS, axis=1)
            / N_TOKENS)                                     # (B, BN)

    return dict(
        patch_w=p["patch_w"].astype(bf16), patch_b=p["patch_b"],
        pos=p["pos"],
        ln1_g=blk["ln1_g"], ln1_b=blk["ln1_b"],
        wq=wq.astype(bf16), wk=wk.astype(bf16), wv=wv.astype(bf16),
        bq=bq, bk=bk, bv=bv,
        wproj=wproj.astype(bf16), bproj=blk["b_proj"],
        ln2_g=blk["ln2_g"], ln2_b=blk["ln2_b"],
        w1=blk["w_mlp1"].astype(bf16), b1=blk["b_mlp1"],
        w2=blk["w_mlp2"].astype(bf16), b2=blk["b_mlp2"],
        ln_g=p["ln_g"], ln_b=p["ln_b"],
        pool=pool.astype(bf16),
        head_w=p["head_w"].astype(bf16), head_b=p["head_b"],
    )


# ----------------------------- forward (glue + fused kernel) ------------------
def extract_patches(x):
    # NCHW -> (B, N, C*P*P), matching Conv2d(kernel=stride=PATCH) patchification.
    # TODO(synk): verify (C, ph, pw) flatten order against real timm conv weights.
    B, C, H, W = x.shape
    gh, gw = H // PATCH, W // PATCH
    p = x.reshape(B, C, gh, PATCH, gw, PATCH)
    p = p.transpose(0, 2, 4, 1, 3, 5)
    return p.reshape(B, gh * gw, C * PATCH * PATCH)


def new_timm_model_forward(x, kp):
    patches = extract_patches(x).reshape(BN, PATCH_DIM).astype(jnp.bfloat16)
    attn_full, logits = vit_forward_fused(patches, kp)      # (H, BN, BN), (B, C)
    # extract the per-batch diagonal blocks of the folded attention map -> (B,H,N,N)
    a = attn_full.reshape(HEADS, BATCH, N_TOKENS, BATCH, N_TOKENS)
    final_attn = jnp.stack([a[:, b, :, b, :] for b in range(BATCH)], axis=0)
    # matches: return (out['final_attn'], out['output'])
    return final_attn, logits


# ----------------------------- main -------------------------------------------
if __name__ == "__main__":
    key = jax.random.PRNGKey(0)
    k_x, k_p = jax.random.split(key)
    x = jax.random.normal(k_x, (BATCH, IN_CH, IMG, IMG), dtype=jnp.float32)
    params = init_params(k_p)
    kp = prepare_params(params)

    fwd = jax.jit(new_timm_model_forward)
    final_attn, out = fwd(x, kp)
    jax.block_until_ready((final_attn, out))

    assert final_attn.shape == (BATCH, HEADS, N_TOKENS, N_TOKENS)
    assert out.shape == (BATCH, NUM_CLASSES)
    # tapped softmax uses an exact reciprocal -> rows sum to 1 tightly
    assert jnp.allclose(jnp.sum(final_attn, axis=-1), 1.0, atol=1e-4)
    assert jnp.all(final_attn >= 0.0)
    print("KERNEL_OK")
</pallas_src>

<mosaic_0001>
module attributes {stable_mosaic.version = 11 : i64} {
  func.func @vit_fused_kernel(%arg0: i32, %arg1: memref<32x64xbf16, #tpu.memory_space<vmem>>, %arg2: memref<64x32xbf16, #tpu.memory_space<vmem>>, %arg3: memref<1x32xf32, #tpu.memory_space<vmem>>, %arg4: memref<16x32xf32, #tpu.memory_space<vmem>>, %arg5: memref<2x1x32xf32, #tpu.memory_space<vmem>>, %arg6: memref<2x1x32xf32, #tpu.memory_space<vmem>>, %arg7: memref<2x2x32x16xbf16, #tpu.memory_space<vmem>>, %arg8: memref<2x2x32x16xbf16, #tpu.memory_space<vmem>>, %arg9: memref<2x2x32x16xbf16, #tpu.memory_space<vmem>>, %arg10: memref<2x2x1x16xf32, #tpu.memory_space<vmem>>, %arg11: memref<2x2x1x16xf32, #tpu.memory_space<vmem>>, %arg12: memref<2x2x1x16xf32, #tpu.memory_space<vmem>>, %arg13: memref<2x2x16x32xbf16, #tpu.memory_space<vmem>>, %arg14: memref<2x1x32xf32, #tpu.memory_space<vmem>>, %arg15: memref<2x1x32xf32, #tpu.memory_space<vmem>>, %arg16: memref<2x1x32xf32, #tpu.memory_space<vmem>>, %arg17: memref<2x32x128xbf16, #tpu.memory_space<vmem>>, %arg18: memref<2x1x128xf32, #tpu.memory_space<vmem>>, %arg19: memref<2x128x32xbf16, #tpu.memory_space<vmem>>, %arg20: memref<2x1x32xf32, #tpu.memory_space<vmem>>, %arg21: memref<1x32xf32, #tpu.memory_space<vmem>>, %arg22: memref<1x32xf32, #tpu.memory_space<vmem>>, %arg23: memref<2x32xbf16, #tpu.memory_space<vmem>>, %arg24: memref<32x8xbf16, #tpu.memory_space<vmem>>, %arg25: memref<1x8xf32, #tpu.memory_space<vmem>>, %arg26: memref<2x32x32xf32, #tpu.memory_space<vmem>>, %arg27: memref<2x8xf32, #tpu.memory_space<vmem>>) attributes {dimension_semantics = [#tpu.dimension_semantics<arbitrary>], iteration_bounds = array<i64: 1>, scalar_prefetch = 0 : i64, scratch_operands = 0 : i64, tpu.core_type = #tpu.core_type<tc>, window_params = [{pipeline_mode = #tpu.pipeline_mode<synchronous>, transform_indices = @transform_0, window_bounds = array<i64: 32, 64>}, {pipeline_mode = #tpu.pipeline_mode<synchronous>, transform_indices = @transform_1, window_bounds = array<i64: 64, 32>}, {pipeline_mode = #tpu.pipeline_mode<synchronous>, transform_indices = @transform_2, window_bounds = array<i64: 1, 32>}, {pipeline_mode = #tpu.pipeline_mode<synchronous>, transform_indices = @transform_3, window_bounds = array<i64: 16, 32>}, {pipeline_mode = #tpu.pipeline_mode<synchronous>, transform_indices = @transform_4, window_bounds = array<i64: 2, 1, 32>}, {pipeline_mode = #tpu.pipeline_mode<synchronous>, transform_indices = @transform_5, window_bounds = array<i64: 2, 1, 32>}, {pipeline_mode = #tpu.pipeline_mode<synchronous>, transform_indices = @transform_6, window_bounds = array<i64: 2, 2, 32, 16>}, {pipeline_mode = #tpu.pipeline_mode<synchronous>, transform_indices = @transform_7, window_bounds = array<i64: 2, 2, 32, 16>}, {pipeline_mode = #tpu.pipeline_mode<synchronous>, transform_indices = @transform_8, window_bounds = array<i64: 2, 2, 32, 16>}, {pipeline_mode = #tpu.pipeline_mode<synchronous>, transform_indices = @transform_9, window_bounds = array<i64: 2, 2, 1, 16>}, {pipeline_mode = #tpu.pipeline_mode<synchronous>, transform_indices = @transform_10, window_bounds = array<i64: 2, 2, 1, 16>}, {pipeline_mode = #tpu.pipeline_mode<synchronous>, transform_indices = @transform_11, window_bounds = array<i64: 2, 2, 1, 16>}, {pipeline_mode = #tpu.pipeline_mode<synchronous>, transform_indices = @transform_12, window_bounds = array<i64: 2, 2, 16, 32>}, {pipeline_mode = #tpu.pipeline_mode<synchronous>, transform_indices = @transform_13, window_bounds = array<i64: 2, 1, 32>}, {pipeline_mode = #tpu.pipeline_mode<synchronous>, transform_indices = @transform_14, window_bounds = array<i64: 2, 1, 32>}, {pipeline_mode = #tpu.pipeline_mode<synchronous>, transform_indices = @transform_15, window_bounds = array<i64: 2, 1, 32>}, {pipeline_mode = #tpu.pipeline_mode<synchronous>, transform_indices = @transform_16, window_bounds = array<i64: 2, 32, 128>}, {pipeline_mode = #tpu.pipeline_mode<synchronous>, transform_indices = @transform_17, window_bounds = array<i64: 2, 1, 128>}, {pipeline_mode = #tpu.pipeline_mode<synchronous>, transform_indices = @transform_18, window_bounds = array<i64: 2, 128, 32>}, {pipeline_mode = #tpu.pipeline_mode<synchronous>, transform_indices = @transform_19, window_bounds = array<i64: 2, 1, 32>}, {pipeline_mode = #tpu.pipeline_mode<synchronous>, transform_indices = @transform_20, window_bounds = array<i64: 1, 32>}, {pipeline_mode = #tpu.pipeline_mode<synchronous>, transform_indices = @transform_21, window_bounds = array<i64: 1, 32>}, {pipeline_mode = #tpu.pipeline_mode<synchronous>, transform_indices = @transform_22, window_bounds = array<i64: 2, 32>}, {pipeline_mode = #tpu.pipeline_mode<synchronous>, transform_indices = @transform_23, window_bounds = array<i64: 32, 8>}, {pipeline_mode = #tpu.pipeline_mode<synchronous>, transform_indices = @transform_24, window_bounds = array<i64: 1, 8>}, {pipeline_mode = #tpu.pipeline_mode<synchronous>, transform_indices = @transform_25, window_bounds = array<i64: 2, 32, 32>}, {pipeline_mode = #tpu.pipeline_mode<synchronous>, transform_indices = @transform_26, window_bounds = array<i64: 2, 8>}]} {
    %0 = tpu.iota {dimensions = array<i32: 0>} : vector<32x32xi32>
    %1 = tpu.iota {dimensions = array<i32: 1>} : vector<32x32xi32>
    %c4_i32 = arith.constant 4 : i32
    %2 = vector.broadcast %c4_i32 : i32 to vector<32x32xi32>
    %3 = arith.shrsi %0, %2 : vector<32x32xi32>
    %c4_i32_0 = arith.constant 4 : i32
    %4 = vector.broadcast %c4_i32_0 : i32 to vector<32x32xi32>
    %5 = arith.shrsi %1, %4 : vector<32x32xi32>
    %6 = arith.cmpi eq, %3, %5 : vector<32x32xi32>
    %cst = arith.constant 0.000000e+00 : f32
    %cst_1 = arith.constant -1.000000e+30 : f32
    %7 = vector.broadcast %cst : f32 to vector<32x32xf32>
    %8 = vector.broadcast %cst_1 : f32 to vector<32x32xf32>
    %9 = arith.select %6, %7, %8 : vector<32x32xi1>, vector<32x32xf32>
    %c0 = arith.constant 0 : index
    %c0_2 = arith.constant 0 : index
    %10 = vector.load %arg1[%c0, %c0_2] : memref<32x64xbf16, #tpu.memory_space<vmem>>, vector<32x64xbf16>
    %c0_3 = arith.constant 0 : index
    %c0_4 = arith.constant 0 : index
    %11 = vector.load %arg2[%c0_3, %c0_4] : memref<64x32xbf16, #tpu.memory_space<vmem>>, vector<64x32xbf16>
    %cst_5 = arith.constant dense<0.000000e+00> : vector<32x32xf32>
    %12 = tpu.matmul %10, %11, %cst_5 {dimension_numbers = #tpu.dot_dimension_numbers<[1], [0], [0], [1], [0, 0, 1, 1], [], []>} : vector<32x64xbf16>, vector<64x32xbf16>, vector<32x32xf32> -> vector<32x32xf32>
    %c0_6 = arith.constant 0 : index
    %c0_7 = arith.constant 0 : index
    %13 = vector.load %arg3[%c0_6, %c0_7] : memref<1x32xf32, #tpu.memory_space<vmem>>, vector<1x32xf32>
    %14 = vector.broadcast %13 : vector<1x32xf32> to vector<32x32xf32>
    %15 = arith.addf %12, %14 : vector<32x32xf32>
    %c0_8 = arith.constant 0 : index
    %c0_9 = arith.constant 0 : index
    %16 = vector.load %arg4[%c0_8, %c0_9] : memref<16x32xf32, #tpu.memory_space<vmem>>, vector<16x32xf32>
    %17 = tpu.concatenate %16, %16 in 0 : vector<16x32xf32>, vector<16x32xf32> -> vector<32x32xf32>
    %18 = arith.addf %15, %17 : vector<32x32xf32>
    %c0_10 = arith.constant 0 : index
    %c0_11 = arith.constant 0 : index
    %c0_12 = arith.constant 0 : index
    %19 = vector.load %arg5[%c0_10, %c0_11, %c0_12] : memref<2x1x32xf32, #tpu.memory_space<vmem>>, vector<1x1x32xf32>
    %20 = vector.shape_cast %19 : vector<1x1x32xf32> to vector<1x32xf32>
    %c0_13 = arith.constant 0 : index
    %c0_14 = arith.constant 0 : index
    %c0_15 = arith.constant 0 : index
    %21 = vector.load %arg6[%c0_13, %c0_14, %c0_15] : memref<2x1x32xf32, #tpu.memory_space<vmem>>, vector<1x1x32xf32>
    %22 = vector.shape_cast %21 : vector<1x1x32xf32> to vector<1x32xf32>
    %cst_16 = arith.constant dense<0.000000e+00> : vector<32xf32>
    %23 = vector.multi_reduction <add>, %18, %cst_16 [1] : vector<32x32xf32> to vector<32xf32>
    %24 = vector.shape_cast %23 : vector<32xf32> to vector<32x1xf32>
    %cst_17 = arith.constant 3.200000e+01 : f32
    %25 = vector.broadcast %cst_17 : f32 to vector<32x1xf32>
    %26 = arith.divf %24, %25 : vector<32x1xf32>
    %27 = vector.broadcast %26 : vector<32x1xf32> to vector<32x32xf32>
    %28 = arith.subf %18, %27 : vector<32x32xf32>
    %29 = arith.mulf %28, %28 : vector<32x32xf32>
    %cst_18 = arith.constant dense<0.000000e+00> : vector<32xf32>
    %30 = vector.multi_reduction <add>, %29, %cst_18 [1] : vector<32x32xf32> to vector<32xf32>
    %31 = vector.shape_cast %30 : vector<32xf32> to vector<32x1xf32>
    %cst_19 = arith.constant 3.200000e+01 : f32
    %32 = vector.broadcast %cst_19 : f32 to vector<32x1xf32>
    %33 = arith.divf %31, %32 : vector<32x1xf32>
    %34 = vector.broadcast %26 : vector<32x1xf32> to vector<32x32xf32>
    %35 = arith.subf %18, %34 : vector<32x32xf32>
    %cst_20 = arith.constant 9.99999997E-7 : f32
    %36 = vector.broadcast %cst_20 : f32 to vector<32x1xf32>
    %37 = arith.addf %33, %36 : vector<32x1xf32>
    %38 = math.rsqrt %37 : vector<32x1xf32>
    %39 = vector.broadcast %38 : vector<32x1xf32> to vector<32x32xf32>
    %40 = arith.mulf %35, %39 : vector<32x32xf32>
    %41 = vector.broadcast %20 : vector<1x32xf32> to vector<32x32xf32>
    %42 = arith.mulf %40, %41 : vector<32x32xf32>
    %43 = vector.broadcast %22 : vector<1x32xf32> to vector<32x32xf32>
    %44 = arith.addf %42, %43 : vector<32x32xf32>
    %45 = arith.truncf %44 : vector<32x32xf32> to vector<32x32xbf16>
    %c0_21 = arith.constant 0 : index
    %c0_22 = arith.constant 0 : index
    %c0_23 = arith.constant 0 : index
    %c0_24 = arith.constant 0 : index
    %46 = vector.load %arg7[%c0_21, %c0_22, %c0_23, %c0_24] : memref<2x2x32x16xbf16, #tpu.memory_space<vmem>>, vector<1x1x32x16xbf16>
    %47 = vector.shape_cast %46 : vector<1x1x32x16xbf16> to vector<32x16xbf16>
    %cst_25 = arith.constant dense<0.000000e+00> : vector<32x16xf32>
    %48 = tpu.matmul %45, %47, %cst_25 {dimension_numbers = #tpu.dot_dimension_numbers<[1], [0], [0], [1], [0, 0, 1, 1], [], []>} : vector<32x32xbf16>, vector<32x16xbf16>, vector<32x16xf32> -> vector<32x16xf32>
    %c0_26 = arith.constant 0 : index
    %c0_27 = arith.constant 0 : index
    %c0_28 = arith.constant 0 : index
    %c0_29 = arith.constant 0 : index
    %49 = vector.load %arg10[%c0_26, %c0_27, %c0_28, %c0_29] : memref<2x2x1x16xf32, #tpu.memory_space<vmem>>, vector<1x1x1x16xf32>
    %50 = vector.shape_cast %49 : vector<1x1x1x16xf32> to vector<1x16xf32>
    %51 = vector.broadcast %50 : vector<1x16xf32> to vector<32x16xf32>
    %52 = arith.addf %48, %51 : vector<32x16xf32>
    %c0_30 = arith.constant 0 : index
    %c0_31 = arith.constant 0 : index
    %c0_32 = arith.constant 0 : index
    %c0_33 = arith.constant 0 : index
    %53 = vector.load %arg8[%c0_30, %c0_31, %c0_32, %c0_33] : memref<2x2x32x16xbf16, #tpu.memory_space<vmem>>, vector<1x1x32x16xbf16>
    %54 = vector.shape_cast %53 : vector<1x1x32x16xbf16> to vector<32x16xbf16>
    %cst_34 = arith.constant dense<0.000000e+00> : vector<32x16xf32>
    %55 = tpu.matmul %45, %54, %cst_34 {dimension_numbers = #tpu.dot_dimension_numbers<[1], [0], [0], [1], [0, 0, 1, 1], [], []>} : vector<32x32xbf16>, vector<32x16xbf16>, vector<32x16xf32> -> vector<32x16xf32>
    %c0_35 = arith.constant 0 : index
    %c0_36 = arith.constant 0 : index
    %c0_37 = arith.constant 0 : index
    %c0_38 = arith.constant 0 : index
    %56 = vector.load %arg11[%c0_35, %c0_36, %c0_37, %c0_38] : memref<2x2x1x16xf32, #tpu.memory_space<vmem>>, vector<1x1x1x16xf32>
    %57 = vector.shape_cast %56 : vector<1x1x1x16xf32> to vector<1x16xf32>
    %58 = vector.broadcast %57 : vector<1x16xf32> to vector<32x16xf32>
    %59 = arith.addf %55, %58 : vector<32x16xf32>
    %c0_39 = arith.constant 0 : index
    %c0_40 = arith.constant 0 : index
    %c0_41 = arith.constant 0 : index
    %c0_42 = arith.constant 0 : index
    %60 = vector.load %arg9[%c0_39, %c0_40, %c0_41, %c0_42] : memref<2x2x32x16xbf16, #tpu.memory_space<vmem>>, vector<1x1x32x16xbf16>
    %61 = vector.shape_cast %60 : vector<1x1x32x16xbf16> to vector<32x16xbf16>
    %cst_43 = arith.constant dense<0.000000e+00> : vector<32x16xf32>
    %62 = tpu.matmul %45, %61, %cst_43 {dimension_numbers = #tpu.dot_dimension_numbers<[1], [0], [0], [1], [0, 0, 1, 1], [], []>} : vector<32x32xbf16>, vector<32x16xbf16>, vector<32x16xf32> -> vector<32x16xf32>
    %c0_44 = arith.constant 0 : index
    %c0_45 = arith.constant 0 : index
    %c0_46 = arith.constant 0 : index
    %c0_47 = arith.constant 0 : index
    %63 = vector.load %arg12[%c0_44, %c0_45, %c0_46, %c0_47] : memref<2x2x1x16xf32, #tpu.memory_space<vmem>>, vector<1x1x1x16xf32>
    %64 = vector.shape_cast %63 : vector<1x1x1x16xf32> to vector<1x16xf32>
    %65 = vector.broadcast %64 : vector<1x16xf32> to vector<32x16xf32>
    %66 = arith.addf %62, %65 : vector<32x16xf32>
    %67 = arith.truncf %52 : vector<32x16xf32> to vector<32x16xbf16>
    %68 = arith.truncf %59 : vector<32x16xf32> to vector<32x16xbf16>
    %cst_48 = arith.constant dense<0.000000e+00> : vector<32x32xf32>
    %69 = tpu.matmul %67, %68, %cst_48 {dimension_numbers = #tpu.dot_dimension_numbers<[1], [1], [0], [0], [0, 0, 1, 0], [], []>} : vector<32x16xbf16>, vector<32x16xbf16>, vector<32x32xf32> -> vector<32x32xf32>
    %70 = arith.addf %69, %9 : vector<32x32xf32>
    %cst_49 = arith.constant dense<0xFF800000> : vector<32xf32>
    %71 = vector.multi_reduction <maximumf>, %70, %cst_49 [1] : vector<32x32xf32> to vector<32xf32>
    %72 = vector.shape_cast %71 : vector<32xf32> to vector<32x1xf32>
    %73 = vector.broadcast %72 : vector<32x1xf32> to vector<32x32xf32>
    %74 = arith.subf %70, %73 : vector<32x32xf32>
    %75 = math.exp %74 : vector<32x32xf32>
    %cst_50 = arith.constant dense<0.000000e+00> : vector<32xf32>
    %76 = vector.multi_reduction <add>, %75, %cst_50 [1] : vector<32x32xf32> to vector<32xf32>
    %77 = vector.shape_cast %76 : vector<32xf32> to vector<32x1xf32>
    %78 = tpu.reciprocal %77 {approx = true} : vector<32x1xf32> -> vector<32x1xf32>
    %79 = vector.broadcast %78 : vector<32x1xf32> to vector<32x32xf32>
    %80 = arith.mulf %75, %79 : vector<32x32xf32>
    %81 = arith.truncf %80 : vector<32x32xf32> to vector<32x32xbf16>
    %82 = arith.truncf %66 : vector<32x16xf32> to vector<32x16xbf16>
    %cst_51 = arith.constant dense<0.000000e+00> : vector<32x16xf32>
    %83 = tpu.matmul %81, %82, %cst_51 {dimension_numbers = #tpu.dot_dimension_numbers<[1], [0], [0], [1], [0, 0, 1, 1], [], []>} : vector<32x32xbf16>, vector<32x16xbf16>, vector<32x16xf32> -> vector<32x16xf32>
    %84 = arith.truncf %83 : vector<32x16xf32> to vector<32x16xbf16>
    %c0_52 = arith.constant 0 : index
    %c0_53 = arith.constant 0 : index
    %c0_54 = arith.constant 0 : index
    %c0_55 = arith.constant 0 : index
    %85 = vector.load %arg13[%c0_52, %c0_53, %c0_54, %c0_55] : memref<2x2x16x32xbf16, #tpu.memory_space<vmem>>, vector<1x1x16x32xbf16>
    %86 = vector.shape_cast %85 : vector<1x1x16x32xbf16> to vector<16x32xbf16>
    %cst_56 = arith.constant dense<0.000000e+00> : vector<32x32xf32>
    %87 = tpu.matmul %84, %86, %cst_56 {dimension_numbers = #tpu.dot_dimension_numbers<[1], [0], [0], [1], [0, 0, 1, 1], [], []>} : vector<32x16xbf16>, vector<16x32xbf16>, vector<32x32xf32> -> vector<32x32xf32>
    %c0_57 = arith.constant 0 : index
    %c1 = arith.constant 1 : index
    %c0_58 = arith.constant 0 : index
    %c0_59 = arith.constant 0 : index
    %88 = vector.load %arg7[%c0_57, %c1, %c0_58, %c0_59] : memref<2x2x32x16xbf16, #tpu.memory_space<vmem>>, vector<1x1x32x16xbf16>
    %89 = vector.shape_cast %88 : vector<1x1x32x16xbf16> to vector<32x16xbf16>
    %cst_60 = arith.constant dense<0.000000e+00> : vector<32x16xf32>
    %90 = tpu.matmul %45, %89, %cst_60 {dimension_numbers = #tpu.dot_dimension_numbers<[1], [0], [0], [1], [0, 0, 1, 1], [], []>} : vector<32x32xbf16>, vector<32x16xbf16>, vector<32x16xf32> -> vector<32x16xf32>
    %c0_61 = arith.constant 0 : index
    %c1_62 = arith.constant 1 : index
    %c0_63 = arith.constant 0 : index
    %c0_64 = arith.constant 0 : index
    %91 = vector.load %arg10[%c0_61, %c1_62, %c0_63, %c0_64] : memref<2x2x1x16xf32, #tpu.memory_space<vmem>>, vector<1x1x1x16xf32>
    %92 = vector.shape_cast %91 : vector<1x1x1x16xf32> to vector<1x16xf32>
    %93 = vector.broadcast %92 : vector<1x16xf32> to vector<32x16xf32>
    %94 = arith.addf %90, %93 : vector<32x16xf32>
    %c0_65 = arith.constant 0 : index
    %c1_66 = arith.constant 1 : index
    %c0_67 = arith.constant 0 : index
    %c0_68 = arith.constant 0 : index
    %95 = vector.load %arg8[%c0_65, %c1_66, %c0_67, %c0_68] : memref<2x2x32x16xbf16, #tpu.memory_space<vmem>>, vector<1x1x32x16xbf16>
    %96 = vector.shape_cast %95 : vector<1x1x32x16xbf16> to vector<32x16xbf16>
    %cst_69 = arith.constant dense<0.000000e+00> : vector<32x16xf32>
    %97 = tpu.matmul %45, %96, %cst_69 {dimension_numbers = #tpu.dot_dimension_numbers<[1], [0], [0], [1], [0, 0, 1, 1], [], []>} : vector<32x32xbf16>, vector<32x16xbf16>, vector<32x16xf32> -> vector<32x16xf32>
    %c0_70 = arith.constant 0 : index
    %c1_71 = arith.constant 1 : index
    %c0_72 = arith.constant 0 : index
    %c0_73 = arith.constant 0 : index
    %98 = vector.load %arg11[%c0_70, %c1_71, %c0_72, %c0_73] : memref<2x2x1x16xf32, #tpu.memory_space<vmem>>, vector<1x1x1x16xf32>
    %99 = vector.shape_cast %98 : vector<1x1x1x16xf32> to vector<1x16xf32>
    %100 = vector.broadcast %99 : vector<1x16xf32> to vector<32x16xf32>
    %101 = arith.addf %97, %100 : vector<32x16xf32>
    %c0_74 = arith.constant 0 : index
    %c1_75 = arith.constant 1 : index
    %c0_76 = arith.constant 0 : index
    %c0_77 = arith.constant 0 : index
    %102 = vector.load %arg9[%c0_74, %c1_75, %c0_76, %c0_77] : memref<2x2x32x16xbf16, #tpu.memory_space<vmem>>, vector<1x1x32x16xbf16>
    %103 = vector.shape_cast %102 : vector<1x1x32x16xbf16> to vector<32x16xbf16>
    %cst_78 = arith.constant dense<0.000000e+00> : vector<32x16xf32>
    %104 = tpu.matmul %45, %103, %cst_78 {dimension_numbers = #tpu.dot_dimension_numbers<[1], [0], [0], [1], [0, 0, 1, 1], [], []>} : vector<32x32xbf16>, vector<32x16xbf16>, vector<32x16xf32> -> vector<32x16xf32>
    %c0_79 = arith.constant 0 : index
    %c1_80 = arith.constant 1 : index
    %c0_81 = arith.constant 0 : index
    %c0_82 = arith.constant 0 : index
    %105 = vector.load %arg12[%c0_79, %c1_80, %c0_81, %c0_82] : memref<2x2x1x16xf32, #tpu.memory_space<vmem>>, vector<1x1x1x16xf32>
    %106 = vector.shape_cast %105 : vector<1x1x1x16xf32> to vector<1x16xf32>
    %107 = vector.broadcast %106 : vector<1x16xf32> to vector<32x16xf32>
    %108 = arith.addf %104, %107 : vector<32x16xf32>
    %109 = arith.truncf %94 : vector<32x16xf32> to vector<32x16xbf16>
    %110 = arith.truncf %101 : vector<32x16xf32> to vector<32x16xbf16>
    %cst_83 = arith.constant dense<0.000000e+00> : vector<32x32xf32>
    %111 = tpu.matmul %109, %110, %cst_83 {dimension_numbers = #tpu.dot_dimension_numbers<[1], [1], [0], [0], [0, 0, 1, 0], [], []>} : vector<32x16xbf16>, vector<32x16xbf16>, vector<32x32xf32> -> vector<32x32xf32>
    %112 = arith.addf %111, %9 : vector<32x32xf32>
    %cst_84 = arith.constant dense<0xFF800000> : vector<32xf32>
    %113 = vector.multi_reduction <maximumf>, %112, %cst_84 [1] : vector<32x32xf32> to vector<32xf32>
    %114 = vector.shape_cast %113 : vector<32xf32> to vector<32x1xf32>
    %115 = vector.broadcast %114 : vector<32x1xf32> to vector<32x32xf32>
    %116 = arith.subf %112, %115 : vector<32x32xf32>
    %117 = math.exp %116 : vector<32x32xf32>
    %cst_85 = arith.constant dense<0.000000e+00> : vector<32xf32>
    %118 = vector.multi_reduction <add>, %117, %cst_85 [1] : vector<32x32xf32> to vector<32xf32>
    %119 = vector.shape_cast %118 : vector<32xf32> to vector<32x1xf32>
    %120 = tpu.reciprocal %119 {approx = true} : vector<32x1xf32> -> vector<32x1xf32>
    %121 = vector.broadcast %120 : vector<32x1xf32> to vector<32x32xf32>
    %122 = arith.mulf %117, %121 : vector<32x32xf32>
    %123 = arith.truncf %122 : vector<32x32xf32> to vector<32x32xbf16>
    %124 = arith.truncf %108 : vector<32x16xf32> to vector<32x16xbf16>
    %cst_86 = arith.constant dense<0.000000e+00> : vector<32x16xf32>
    %125 = tpu.matmul %123, %124, %cst_86 {dimension_numbers = #tpu.dot_dimension_numbers<[1], [0], [0], [1], [0, 0, 1, 1], [], []>} : vector<32x32xbf16>, vector<32x16xbf16>, vector<32x16xf32> -> vector<32x16xf32>
    %126 = arith.truncf %125 : vector<32x16xf32> to vector<32x16xbf16>
    %c0_87 = arith.constant 0 : index
    %c1_88 = arith.constant 1 : index
    %c0_89 = arith.constant 0 : index
    %c0_90 = arith.constant 0 : index
    %127 = vector.load %arg13[%c0_87, %c1_88, %c0_89, %c0_90] : memref<2x2x16x32xbf16, #tpu.memory_space<vmem>>, vector<1x1x16x32xbf16>
    %128 = vector.shape_cast %127 : vector<1x1x16x32xbf16> to vector<16x32xbf16>
    %cst_91 = arith.constant dense<0.000000e+00> : vector<32x32xf32>
    %129 = tpu.matmul %126, %128, %cst_91 {dimension_numbers = #tpu.dot_dimension_numbers<[1], [0], [0], [1], [0, 0, 1, 1], [], []>} : vector<32x16xbf16>, vector<16x32xbf16>, vector<32x32xf32> -> vector<32x32xf32>
    %130 = arith.addf %87, %129 : vector<32x32xf32>
    %131 = arith.addf %18, %130 : vector<32x32xf32>
    %c0_92 = arith.constant 0 : index
    %c0_93 = arith.constant 0 : index
    %c0_94 = arith.constant 0 : index
    %132 = vector.load %arg14[%c0_92, %c0_93, %c0_94] : memref<2x1x32xf32, #tpu.memory_space<vmem>>, vector<1x1x32xf32>
    %133 = vector.shape_cast %132 : vector<1x1x32xf32> to vector<1x32xf32>
    %134 = vector.broadcast %133 : vector<1x32xf32> to vector<32x32xf32>
    %135 = arith.addf %131, %134 : vector<32x32xf32>
    %c0_95 = arith.constant 0 : index
    %c0_96 = arith.constant 0 : index
    %c0_97 = arith.constant 0 : index
    %136 = vector.load %arg15[%c0_95, %c0_96, %c0_97] : memref<2x1x32xf32, #tpu.memory_space<vmem>>, vector<1x1x32xf32>
    %137 = vector.shape_cast %136 : vector<1x1x32xf32> to vector<1x32xf32>
    %c0_98 = arith.constant 0 : index
    %c0_99 = arith.constant 0 : index
    %c0_100 = arith.constant 0 : index
    %138 = vector.load %arg16[%c0_98, %c0_99, %c0_100] : memref<2x1x32xf32, #tpu.memory_space<vmem>>, vector<1x1x32xf32>
    %139 = vector.shape_cast %138 : vector<1x1x32xf32> to vector<1x32xf32>
    %cst_101 = arith.constant dense<0.000000e+00> : vector<32xf32>
    %140 = vector.multi_reduction <add>, %135, %cst_101 [1] : vector<32x32xf32> to vector<32xf32>
    %141 = vector.shape_cast %140 : vector<32xf32> to vector<32x1xf32>
    %cst_102 = arith.constant 3.200000e+01 : f32
    %142 = vector.broadcast %cst_102 : f32 to vector<32x1xf32>
    %143 = arith.divf %141, %142 : vector<32x1xf32>
    %144 = vector.broadcast %143 : vector<32x1xf32> to vector<32x32xf32>
    %145 = arith.subf %135, %144 : vector<32x32xf32>
    %146 = arith.mulf %145, %145 : vector<32x32xf32>
    %cst_103 = arith.constant dense<0.000000e+00> : vector<32xf32>
    %147 = vector.multi_reduction <add>, %146, %cst_103 [1] : vector<32x32xf32> to vector<32xf32>
    %148 = vector.shape_cast %147 : vector<32xf32> to vector<32x1xf32>
    %cst_104 = arith.constant 3.200000e+01 : f32
    %149 = vector.broadcast %cst_104 : f32 to vector<32x1xf32>
    %150 = arith.divf %148, %149 : vector<32x1xf32>
    %151 = vector.broadcast %143 : vector<32x1xf32> to vector<32x32xf32>
    %152 = arith.subf %135, %151 : vector<32x32xf32>
    %cst_105 = arith.constant 9.99999997E-7 : f32
    %153 = vector.broadcast %cst_105 : f32 to vector<32x1xf32>
    %154 = arith.addf %150, %153 : vector<32x1xf32>
    %155 = math.rsqrt %154 : vector<32x1xf32>
    %156 = vector.broadcast %155 : vector<32x1xf32> to vector<32x32xf32>
    %157 = arith.mulf %152, %156 : vector<32x32xf32>
    %158 = vector.broadcast %137 : vector<1x32xf32> to vector<32x32xf32>
    %159 = arith.mulf %157, %158 : vector<32x32xf32>
    %160 = vector.broadcast %139 : vector<1x32xf32> to vector<32x32xf32>
    %161 = arith.addf %159, %160 : vector<32x32xf32>
    %162 = arith.truncf %161 : vector<32x32xf32> to vector<32x32xbf16>
    %c0_106 = arith.constant 0 : index
    %c0_107 = arith.constant 0 : index
    %c0_108 = arith.constant 0 : index
    %163 = vector.load %arg17[%c0_106, %c0_107, %c0_108] : memref<2x32x128xbf16, #tpu.memory_space<vmem>>, vector<1x32x128xbf16>
    %164 = vector.shape_cast %163 : vector<1x32x128xbf16> to vector<32x128xbf16>
    %cst_109 = arith.constant dense<0.000000e+00> : vector<32x128xf32>
    %165 = tpu.matmul %162, %164, %cst_109 {dimension_numbers = #tpu.dot_dimension_numbers<[1], [0], [0], [1], [0, 0, 1, 1], [], []>} : vector<32x32xbf16>, vector<32x128xbf16>, vector<32x128xf32> -> vector<32x128xf32>
    %c0_110 = arith.constant 0 : index
    %c0_111 = arith.constant 0 : index
    %c0_112 = arith.constant 0 : index
    %166 = vector.load %arg18[%c0_110, %c0_111, %c0_112] : memref<2x1x128xf32, #tpu.memory_space<vmem>>, vector<1x1x128xf32>
    %167 = vector.shape_cast %166 : vector<1x1x128xf32> to vector<1x128xf32>
    %168 = vector.broadcast %167 : vector<1x128xf32> to vector<32x128xf32>
    %169 = arith.addf %165, %168 : vector<32x128xf32>
    %170 = arith.mulf %169, %169 : vector<32x128xf32>
    %171 = arith.mulf %169, %170 : vector<32x128xf32>
    %cst_113 = arith.constant 4.471500e-02 : f32
    %172 = vector.broadcast %cst_113 : f32 to vector<32x128xf32>
    %173 = arith.mulf %172, %171 : vector<32x128xf32>
    %174 = arith.addf %169, %173 : vector<32x128xf32>
    %cst_114 = arith.constant 0.797884583 : f32
    %175 = vector.broadcast %cst_114 : f32 to vector<32x128xf32>
    %176 = arith.mulf %175, %174 : vector<32x128xf32>
    %177 = math.tanh %176 : vector<32x128xf32>
    %cst_115 = arith.constant 1.000000e+00 : f32
    %178 = vector.broadcast %cst_115 : f32 to vector<32x128xf32>
    %179 = arith.addf %178, %177 : vector<32x128xf32>
    %cst_116 = arith.constant 5.000000e-01 : f32
    %180 = vector.broadcast %cst_116 : f32 to vector<32x128xf32>
    %181 = arith.mulf %180, %179 : vector<32x128xf32>
    %182 = arith.mulf %169, %181 : vector<32x128xf32>
    %183 = arith.truncf %182 : vector<32x128xf32> to vector<32x128xbf16>
    %c0_117 = arith.constant 0 : index
    %c0_118 = arith.constant 0 : index
    %c0_119 = arith.constant 0 : index
    %184 = vector.load %arg19[%c0_117, %c0_118, %c0_119] : memref<2x128x32xbf16, #tpu.memory_space<vmem>>, vector<1x128x32xbf16>
    %185 = vector.shape_cast %184 : vector<1x128x32xbf16> to vector<128x32xbf16>
    %cst_120 = arith.constant dense<0.000000e+00> : vector<32x32xf32>
    %186 = tpu.matmul %183, %185, %cst_120 {dimension_numbers = #tpu.dot_dimension_numbers<[1], [0], [0], [1], [0, 0, 1, 1], [], []>} : vector<32x128xbf16>, vector<128x32xbf16>, vector<32x32xf32> -> vector<32x32xf32>
    %c0_121 = arith.constant 0 : index
    %c0_122 = arith.constant 0 : index
    %c0_123 = arith.constant 0 : index
    %187 = vector.load %arg20[%c0_121, %c0_122, %c0_123] : memref<2x1x32xf32, #tpu.memory_space<vmem>>, vector<1x1x32xf32>
    %188 = vector.shape_cast %187 : vector<1x1x32xf32> to vector<1x32xf32>
    %189 = vector.broadcast %188 : vector<1x32xf32> to vector<32x32xf32>
    %190 = arith.addf %186, %189 : vector<32x32xf32>
    %191 = arith.addf %135, %190 : vector<32x32xf32>
    %c1_124 = arith.constant 1 : index
    %c0_125 = arith.constant 0 : index
    %c0_126 = arith.constant 0 : index
    %192 = vector.load %arg5[%c1_124, %c0_125, %c0_126] : memref<2x1x32xf32, #tpu.memory_space<vmem>>, vector<1x1x32xf32>
    %193 = vector.shape_cast %192 : vector<1x1x32xf32> to vector<1x32xf32>
    %c1_127 = arith.constant 1 : index
    %c0_128 = arith.constant 0 : index
    %c0_129 = arith.constant 0 : index
    %194 = vector.load %arg6[%c1_127, %c0_128, %c0_129] : memref<2x1x32xf32, #tpu.memory_space<vmem>>, vector<1x1x32xf32>
    %195 = vector.shape_cast %194 : vector<1x1x32xf32> to vector<1x32xf32>
    %cst_130 = arith.constant dense<0.000000e+00> : vector<32xf32>
    %196 = vector.multi_reduction <add>, %191, %cst_130 [1] : vector<32x32xf32> to vector<32xf32>
    %197 = vector.shape_cast %196 : vector<32xf32> to vector<32x1xf32>
    %cst_131 = arith.constant 3.200000e+01 : f32
    %198 = vector.broadcast %cst_131 : f32 to vector<32x1xf32>
    %199 = arith.divf %197, %198 : vector<32x1xf32>
    %200 = vector.broadcast %199 : vector<32x1xf32> to vector<32x32xf32>
    %201 = arith.subf %191, %200 : vector<32x32xf32>
    %202 = arith.mulf %201, %201 : vector<32x32xf32>
    %cst_132 = arith.constant dense<0.000000e+00> : vector<32xf32>
    %203 = vector.multi_reduction <add>, %202, %cst_132 [1] : vector<32x32xf32> to vector<32xf32>
    %204 = vector.shape_cast %203 : vector<32xf32> to vector<32x1xf32>
    %cst_133 = arith.constant 3.200000e+01 : f32
    %205 = vector.broadcast %cst_133 : f32 to vector<32x1xf32>
    %206 = arith.divf %204, %205 : vector<32x1xf32>
    %207 = vector.broadcast %199 : vector<32x1xf32> to vector<32x32xf32>
    %208 = arith.subf %191, %207 : vector<32x32xf32>
    %cst_134 = arith.constant 9.99999997E-7 : f32
    %209 = vector.broadcast %cst_134 : f32 to vector<32x1xf32>
    %210 = arith.addf %206, %209 : vector<32x1xf32>
    %211 = math.rsqrt %210 : vector<32x1xf32>
    %212 = vector.broadcast %211 : vector<32x1xf32> to vector<32x32xf32>
    %213 = arith.mulf %208, %212 : vector<32x32xf32>
    %214 = vector.broadcast %193 : vector<1x32xf32> to vector<32x32xf32>
    %215 = arith.mulf %213, %214 : vector<32x32xf32>
    %216 = vector.broadcast %195 : vector<1x32xf32> to vector<32x32xf32>
    %217 = arith.addf %215, %216 : vector<32x32xf32>
    %218 = arith.truncf %217 : vector<32x32xf32> to vector<32x32xbf16>
    %c1_135 = arith.constant 1 : index
    %c0_136 = arith.constant 0 : index
    %c0_137 = arith.constant 0 : index
    %c0_138 = arith.constant 0 : index
    %219 = vector.load %arg7[%c1_135, %c0_136, %c0_137, %c0_138] : memref<2x2x32x16xbf16, #tpu.memory_space<vmem>>, vector<1x1x32x16xbf16>
    %220 = vector.shape_cast %219 : vector<1x1x32x16xbf16> to vector<32x16xbf16>
    %cst_139 = arith.constant dense<0.000000e+00> : vector<32x16xf32>
    %221 = tpu.matmul %218, %220, %cst_139 {dimension_numbers = #tpu.dot_dimension_numbers<[1], [0], [0], [1], [0, 0, 1, 1], [], []>} : vector<32x32xbf16>, vector<32x16xbf16>, vector<32x16xf32> -> vector<32x16xf32>
    %c1_140 = arith.constant 1 : index
    %c0_141 = arith.constant 0 : index
    %c0_142 = arith.constant 0 : index
    %c0_143 = arith.constant 0 : index
    %222 = vector.load %arg10[%c1_140, %c0_141, %c0_142, %c0_143] : memref<2x2x1x16xf32, #tpu.memory_space<vmem>>, vector<1x1x1x16xf32>
    %223 = vector.shape_cast %222 : vector<1x1x1x16xf32> to vector<1x16xf32>
    %224 = vector.broadcast %223 : vector<1x16xf32> to vector<32x16xf32>
    %225 = arith.addf %221, %224 : vector<32x16xf32>
    %c1_144 = arith.constant 1 : index
    %c0_145 = arith.constant 0 : index
    %c0_146 = arith.constant 0 : index
    %c0_147 = arith.constant 0 : index
    %226 = vector.load %arg8[%c1_144, %c0_145, %c0_146, %c0_147] : memref<2x2x32x16xbf16, #tpu.memory_space<vmem>>, vector<1x1x32x16xbf16>
    %227 = vector.shape_cast %226 : vector<1x1x32x16xbf16> to vector<32x16xbf16>
    %cst_148 = arith.constant dense<0.000000e+00> : vector<32x16xf32>
    %228 = tpu.matmul %218, %227, %cst_148 {dimension_numbers = #tpu.dot_dimension_numbers<[1], [0], [0], [1], [0, 0, 1, 1], [], []>} : vector<32x32xbf16>, vector<32x16xbf16>, vector<32x16xf32> -> vector<32x16xf32>
    %c1_149 = arith.constant 1 : index
    %c0_150 = arith.constant 0 : index
    %c0_151 = arith.constant 0 : index
    %c0_152 = arith.constant 0 : index
    %229 = vector.load %arg11[%c1_149, %c0_150, %c0_151, %c0_152] : memref<2x2x1x16xf32, #tpu.memory_space<vmem>>, vector<1x1x1x16xf32>
    %230 = vector.shape_cast %229 : vector<1x1x1x16xf32> to vector<1x16xf32>
    %231 = vector.broadcast %230 : vector<1x16xf32> to vector<32x16xf32>
    %232 = arith.addf %228, %231 : vector<32x16xf32>
    %c1_153 = arith.constant 1 : index
    %c0_154 = arith.constant 0 : index
    %c0_155 = arith.constant 0 : index
    %c0_156 = arith.constant 0 : index
    %233 = vector.load %arg9[%c1_153, %c0_154, %c0_155, %c0_156] : memref<2x2x32x16xbf16, #tpu.memory_space<vmem>>, vector<1x1x32x16xbf16>
    %234 = vector.shape_cast %233 : vector<1x1x32x16xbf16> to vector<32x16xbf16>
    %cst_157 = arith.constant dense<0.000000e+00> : vector<32x16xf32>
    %235 = tpu.matmul %218, %234, %cst_157 {dimension_numbers = #tpu.dot_dimension_numbers<[1], [0], [0], [1], [0, 0, 1, 1], [], []>} : vector<32x32xbf16>, vector<32x16xbf16>, vector<32x16xf32> -> vector<32x16xf32>
    %c1_158 = arith.constant 1 : index
    %c0_159 = arith.constant 0 : index
    %c0_160 = arith.constant 0 : index
    %c0_161 = arith.constant 0 : index
    %236 = vector.load %arg12[%c1_158, %c0_159, %c0_160, %c0_161] : memref<2x2x1x16xf32, #tpu.memory_space<vmem>>, vector<1x1x1x16xf32>
    %237 = vector.shape_cast %236 : vector<1x1x1x16xf32> to vector<1x16xf32>
    %238 = vector.broadcast %237 : vector<1x16xf32> to vector<32x16xf32>
    %239 = arith.addf %235, %238 : vector<32x16xf32>
    %240 = arith.truncf %225 : vector<32x16xf32> to vector<32x16xbf16>
    %241 = arith.truncf %232 : vector<32x16xf32> to vector<32x16xbf16>
    %cst_162 = arith.constant dense<0.000000e+00> : vector<32x32xf32>
    %242 = tpu.matmul %240, %241, %cst_162 {dimension_numbers = #tpu.dot_dimension_numbers<[1], [1], [0], [0], [0, 0, 1, 0], [], []>} : vector<32x16xbf16>, vector<32x16xbf16>, vector<32x32xf32> -> vector<32x32xf32>
    %243 = arith.addf %242, %9 : vector<32x32xf32>
    %cst_163 = arith.constant dense<0xFF800000> : vector<32xf32>
    %244 = vector.multi_reduction <maximumf>, %243, %cst_163 [1] : vector<32x32xf32> to vector<32xf32>
    %245 = vector.shape_cast %244 : vector<32xf32> to vector<32x1xf32>
    %246 = vector.broadcast %245 : vector<32x1xf32> to vector<32x32xf32>
    %247 = arith.subf %243, %246 : vector<32x32xf32>
    %248 = math.exp %247 : vector<32x32xf32>
    %cst_164 = arith.constant dense<0.000000e+00> : vector<32xf32>
    %249 = vector.multi_reduction <add>, %248, %cst_164 [1] : vector<32x32xf32> to vector<32xf32>
    %250 = vector.shape_cast %249 : vector<32xf32> to vector<32x1xf32>
    %251 = vector.broadcast %250 : vector<32x1xf32> to vector<32x32xf32>
    %252 = arith.divf %248, %251 : vector<32x32xf32>
    %c0_165 = arith.constant 0 : index
    %c0_166 = arith.constant 0 : index
    %c0_167 = arith.constant 0 : index
    %253 = vector.load %arg26[%c0_165, %c0_166, %c0_167] : memref<2x32x32xf32, #tpu.memory_space<vmem>>, vector<1x32x32xf32>
    %254 = vector.shape_cast %253 : vector<1x32x32xf32> to vector<32x32xf32>
    %255 = vector.shape_cast %252 : vector<32x32xf32> to vector<1x32x32xf32>
    tpu.vector_store %arg26[%c0_165, %c0_166, %c0_167], %255 {strides = array<i32>} : memref<2x32x32xf32, #tpu.memory_space<vmem>>, vector<1x32x32xf32>,
    %256 = arith.truncf %252 : vector<32x32xf32> to vector<32x32xbf16>
    %257 = arith.truncf %239 : vector<32x16xf32> to vector<32x16xbf16>
    %cst_168 = arith.constant dense<0.000000e+00> : vector<32x16xf32>
    %258 = tpu.matmul %256, %257, %cst_168 {dimension_numbers = #tpu.dot_dimension_numbers<[1], [0], [0], [1], [0, 0, 1, 1], [], []>} : vector<32x32xbf16>, vector<32x16xbf16>, vector<32x16xf32> -> vector<32x16xf32>
    %259 = arith.truncf %258 : vector<32x16xf32> to vector<32x16xbf16>
    %c1_169 = arith.constant 1 : index
    %c0_170 = arith.constant 0 : index
    %c0_171 = arith.constant 0 : index
    %c0_172 = arith.constant 0 : index
    %260 = vector.load %arg13[%c1_169, %c0_170, %c0_171, %c0_172] : memref<2x2x16x32xbf16, #tpu.memory_space<vmem>>, vector<1x1x16x32xbf16>
    %261 = vector.shape_cast %260 : vector<1x1x16x32xbf16> to vector<16x32xbf16>
    %cst_173 = arith.constant dense<0.000000e+00> : vector<32x32xf32>
    %262 = tpu.matmul %259, %261, %cst_173 {dimension_numbers = #tpu.dot_dimension_numbers<[1], [0], [0], [1], [0, 0, 1, 1], [], []>} : vector<32x16xbf16>, vector<16x32xbf16>, vector<32x32xf32> -> vector<32x32xf32>
    %c1_174 = arith.constant 1 : index
    %c1_175 = arith.constant 1 : index
    %c0_176 = arith.constant 0 : index
    %c0_177 = arith.constant 0 : index
    %263 = vector.load %arg7[%c1_174, %c1_175, %c0_176, %c0_177] : memref<2x2x32x16xbf16, #tpu.memory_space<vmem>>, vector<1x1x32x16xbf16>
    %264 = vector.shape_cast %263 : vector<1x1x32x16xbf16> to vector<32x16xbf16>
    %cst_178 = arith.constant dense<0.000000e+00> : vector<32x16xf32>
    %265 = tpu.matmul %218, %264, %cst_178 {dimension_numbers = #tpu.dot_dimension_numbers<[1], [0], [0], [1], [0, 0, 1, 1], [], []>} : vector<32x32xbf16>, vector<32x16xbf16>, vector<32x16xf32> -> vector<32x16xf32>
    %c1_179 = arith.constant 1 : index
    %c1_180 = arith.constant 1 : index
    %c0_181 = arith.constant 0 : index
    %c0_182 = arith.constant 0 : index
    %266 = vector.load %arg10[%c1_179, %c1_180, %c0_181, %c0_182] : memref<2x2x1x16xf32, #tpu.memory_space<vmem>>, vector<1x1x1x16xf32>
    %267 = vector.shape_cast %266 : vector<1x1x1x16xf32> to vector<1x16xf32>
    %268 = vector.broadcast %267 : vector<1x16xf32> to vector<32x16xf32>
    %269 = arith.addf %265, %268 : vector<32x16xf32>
    %c1_183 = arith.constant 1 : index
    %c1_184 = arith.constant 1 : index
    %c0_185 = arith.constant 0 : index
    %c0_186 = arith.constant 0 : index
    %270 = vector.load %arg8[%c1_183, %c1_184, %c0_185, %c0_186] : memref<2x2x32x16xbf16, #tpu.memory_space<vmem>>, vector<1x1x32x16xbf16>
    %271 = vector.shape_cast %270 : vector<1x1x32x16xbf16> to vector<32x16xbf16>
    %cst_187 = arith.constant dense<0.000000e+00> : vector<32x16xf32>
    %272 = tpu.matmul %218, %271, %cst_187 {dimension_numbers = #tpu.dot_dimension_numbers<[1], [0], [0], [1], [0, 0, 1, 1], [], []>} : vector<32x32xbf16>, vector<32x16xbf16>, vector<32x16xf32> -> vector<32x16xf32>
    %c1_188 = arith.constant 1 : index
    %c1_189 = arith.constant 1 : index
    %c0_190 = arith.constant 0 : index
    %c0_191 = arith.constant 0 : index
    %273 = vector.load %arg11[%c1_188, %c1_189, %c0_190, %c0_191] : memref<2x2x1x16xf32, #tpu.memory_space<vmem>>, vector<1x1x1x16xf32>
    %274 = vector.shape_cast %273 : vector<1x1x1x16xf32> to vector<1x16xf32>
    %275 = vector.broadcast %274 : vector<1x16xf32> to vector<32x16xf32>
    %276 = arith.addf %272, %275 : vector<32x16xf32>
    %c1_192 = arith.constant 1 : index
    %c1_193 = arith.constant 1 : index
    %c0_194 = arith.constant 0 : index
    %c0_195 = arith.constant 0 : index
    %277 = vector.load %arg9[%c1_192, %c1_193, %c0_194, %c0_195] : memref<2x2x32x16xbf16, #tpu.memory_space<vmem>>, vector<1x1x32x16xbf16>
    %278 = vector.shape_cast %277 : vector<1x1x32x16xbf16> to vector<32x16xbf16>
    %cst_196 = arith.constant dense<0.000000e+00> : vector<32x16xf32>
    %279 = tpu.matmul %218, %278, %cst_196 {dimension_numbers = #tpu.dot_dimension_numbers<[1], [0], [0], [1], [0, 0, 1, 1], [], []>} : vector<32x32xbf16>, vector<32x16xbf16>, vector<32x16xf32> -> vector<32x16xf32>
    %c1_197 = arith.constant 1 : index
    %c1_198 = arith.constant 1 : index
    %c0_199 = arith.constant 0 : index
    %c0_200 = arith.constant 0 : index
    %280 = vector.load %arg12[%c1_197, %c1_198, %c0_199, %c0_200] : memref<2x2x1x16xf32, #tpu.memory_space<vmem>>, vector<1x1x1x16xf32>
    %281 = vector.shape_cast %280 : vector<1x1x1x16xf32> to vector<1x16xf32>
    %282 = vector.broadcast %281 : vector<1x16xf32> to vector<32x16xf32>
    %283 = arith.addf %279, %282 : vector<32x16xf32>
    %284 = arith.truncf %269 : vector<32x16xf32> to vector<32x16xbf16>
    %285 = arith.truncf %276 : vector<32x16xf32> to vector<32x16xbf16>
    %cst_201 = arith.constant dense<0.000000e+00> : vector<32x32xf32>
    %286 = tpu.matmul %284, %285, %cst_201 {dimension_numbers = #tpu.dot_dimension_numbers<[1], [1], [0], [0], [0, 0, 1, 0], [], []>} : vector<32x16xbf16>, vector<32x16xbf16>, vector<32x32xf32> -> vector<32x32xf32>
    %287 = arith.addf %286, %9 : vector<32x32xf32>
    %cst_202 = arith.constant dense<0xFF800000> : vector<32xf32>
    %288 = vector.multi_reduction <maximumf>, %287, %cst_202 [1] : vector<32x32xf32> to vector<32xf32>
    %289 = vector.shape_cast %288 : vector<32xf32> to vector<32x1xf32>
    %290 = vector.broadcast %289 : vector<32x1xf32> to vector<32x32xf32>
    %291 = arith.subf %287, %290 : vector<32x32xf32>
    %292 = math.exp %291 : vector<32x32xf32>
    %cst_203 = arith.constant dense<0.000000e+00> : vector<32xf32>
    %293 = vector.multi_reduction <add>, %292, %cst_203 [1] : vector<32x32xf32> to vector<32xf32>
    %294 = vector.shape_cast %293 : vector<32xf32> to vector<32x1xf32>
    %295 = vector.broadcast %294 : vector<32x1xf32> to vector<32x32xf32>
    %296 = arith.divf %292, %295 : vector<32x32xf32>
    %c1_204 = arith.constant 1 : index
    %c0_205 = arith.constant 0 : index
    %c0_206 = arith.constant 0 : index
    %297 = vector.load %arg26[%c1_204, %c0_205, %c0_206] : memref<2x32x32xf32, #tpu.memory_space<vmem>>, vector<1x32x32xf32>
    %298 = vector.shape_cast %297 : vector<1x32x32xf32> to vector<32x32xf32>
    %299 = vector.shape_cast %296 : vector<32x32xf32> to vector<1x32x32xf32>
    tpu.vector_store %arg26[%c1_204, %c0_205, %c0_206], %299 {strides = array<i32>} : memref<2x32x32xf32, #tpu.memory_space<vmem>>, vector<1x32x32xf32>,
    %300 = arith.truncf %296 : vector<32x32xf32> to vector<32x32xbf16>
    %301 = arith.truncf %283 : vector<32x16xf32> to vector<32x16xbf16>
    %cst_207 = arith.constant dense<0.000000e+00> : vector<32x16xf32>
    %302 = tpu.matmul %300, %301, %cst_207 {dimension_numbers = #tpu.dot_dimension_numbers<[1], [0], [0], [1], [0, 0, 1, 1], [], []>} : vector<32x32xbf16>, vector<32x16xbf16>, vector<32x16xf32> -> vector<32x16xf32>
    %303 = arith.truncf %302 : vector<32x16xf32> to vector<32x16xbf16>
    %c1_208 = arith.constant 1 : index
    %c1_209 = arith.constant 1 : index
    %c0_210 = arith.constant 0 : index
    %c0_211 = arith.constant 0 : index
    %304 = vector.load %arg13[%c1_208, %c1_209, %c0_210, %c0_211] : memref<2x2x16x32xbf16, #tpu.memory_space<vmem>>, vector<1x1x16x32xbf16>
    %305 = vector.shape_cast %304 : vector<1x1x16x32xbf16> to vector<16x32xbf16>
    %cst_212 = arith.constant dense<0.000000e+00> : vector<32x32xf32>
    %306 = tpu.matmul %303, %305, %cst_212 {dimension_numbers = #tpu.dot_dimension_numbers<[1], [0], [0], [1], [0, 0, 1, 1], [], []>} : vector<32x16xbf16>, vector<16x32xbf16>, vector<32x32xf32> -> vector<32x32xf32>
    %307 = arith.addf %262, %306 : vector<32x32xf32>
    %308 = arith.addf %191, %307 : vector<32x32xf32>
    %c1_213 = arith.constant 1 : index
    %c0_214 = arith.constant 0 : index
    %c0_215 = arith.constant 0 : index
    %309 = vector.load %arg14[%c1_213, %c0_214, %c0_215] : memref<2x1x32xf32, #tpu.memory_space<vmem>>, vector<1x1x32xf32>
    %310 = vector.shape_cast %309 : vector<1x1x32xf32> to vector<1x32xf32>
    %311 = vector.broadcast %310 : vector<1x32xf32> to vector<32x32xf32>
    %312 = arith.addf %308, %311 : vector<32x32xf32>
    %c1_216 = arith.constant 1 : index
    %c0_217 = arith.constant 0 : index
    %c0_218 = arith.constant 0 : index
    %313 = vector.load %arg15[%c1_216, %c0_217, %c0_218] : memref<2x1x32xf32, #tpu.memory_space<vmem>>, vector<1x1x32xf32>
    %314 = vector.shape_cast %313 : vector<1x1x32xf32> to vector<1x32xf32>
    %c1_219 = arith.constant 1 : index
    %c0_220 = arith.constant 0 : index
    %c0_221 = arith.constant 0 : index
    %315 = vector.load %arg16[%c1_219, %c0_220, %c0_221] : memref<2x1x32xf32, #tpu.memory_space<vmem>>, vector<1x1x32xf32>
    %316 = vector.shape_cast %315 : vector<1x1x32xf32> to vector<1x32xf32>
    %cst_222 = arith.constant dense<0.000000e+00> : vector<32xf32>
    %317 = vector.multi_reduction <add>, %312, %cst_222 [1] : vector<32x32xf32> to vector<32xf32>
    %318 = vector.shape_cast %317 : vector<32xf32> to vector<32x1xf32>
    %cst_223 = arith.constant 3.200000e+01 : f32
    %319 = vector.broadcast %cst_223 : f32 to vector<32x1xf32>
    %320 = arith.divf %318, %319 : vector<32x1xf32>
    %321 = vector.broadcast %320 : vector<32x1xf32> to vector<32x32xf32>
    %322 = arith.subf %312, %321 : vector<32x32xf32>
    %323 = arith.mulf %322, %322 : vector<32x32xf32>
    %cst_224 = arith.constant dense<0.000000e+00> : vector<32xf32>
    %324 = vector.multi_reduction <add>, %323, %cst_224 [1] : vector<32x32xf32> to vector<32xf32>
    %325 = vector.shape_cast %324 : vector<32xf32> to vector<32x1xf32>
    %cst_225 = arith.constant 3.200000e+01 : f32
    %326 = vector.broadcast %cst_225 : f32 to vector<32x1xf32>
    %327 = arith.divf %325, %326 : vector<32x1xf32>
    %328 = vector.broadcast %320 : vector<32x1xf32> to vector<32x32xf32>
    %329 = arith.subf %312, %328 : vector<32x32xf32>
    %cst_226 = arith.constant 9.99999997E-7 : f32
    %330 = vector.broadcast %cst_226 : f32 to vector<32x1xf32>
    %331 = arith.addf %327, %330 : vector<32x1xf32>
    %332 = math.rsqrt %331 : vector<32x1xf32>
    %333 = vector.broadcast %332 : vector<32x1xf32> to vector<32x32xf32>
    %334 = arith.mulf %329, %333 : vector<32x32xf32>
    %335 = vector.broadcast %314 : vector<1x32xf32> to vector<32x32xf32>
    %336 = arith.mulf %334, %335 : vector<32x32xf32>
    %337 = vector.broadcast %316 : vector<1x32xf32> to vector<32x32xf32>
    %338 = arith.addf %336, %337 : vector<32x32xf32>
    %339 = arith.truncf %338 : vector<32x32xf32> to vector<32x32xbf16>
    %c1_227 = arith.constant 1 : index
    %c0_228 = arith.constant 0 : index
    %c0_229 = arith.constant 0 : index
    %340 = vector.load %arg17[%c1_227, %c0_228, %c0_229] : memref<2x32x128xbf16, #tpu.memory_space<vmem>>, vector<1x32x128xbf16>
    %341 = vector.shape_cast %340 : vector<1x32x128xbf16> to vector<32x128xbf16>
    %cst_230 = arith.constant dense<0.000000e+00> : vector<32x128xf32>
    %342 = tpu.matmul %339, %341, %cst_230 {dimension_numbers = #tpu.dot_dimension_numbers<[1], [0], [0], [1], [0, 0, 1, 1], [], []>} : vector<32x32xbf16>, vector<32x128xbf16>, vector<32x128xf32> -> vector<32x128xf32>
    %c1_231 = arith.constant 1 : index
    %c0_232 = arith.constant 0 : index
    %c0_233 = arith.constant 0 : index
    %343 = vector.load %arg18[%c1_231, %c0_232, %c0_233] : memref<2x1x128xf32, #tpu.memory_space<vmem>>, vector<1x1x128xf32>
    %344 = vector.shape_cast %343 : vector<1x1x128xf32> to vector<1x128xf32>
    %345 = vector.broadcast %344 : vector<1x128xf32> to vector<32x128xf32>
    %346 = arith.addf %342, %345 : vector<32x128xf32>
    %347 = arith.mulf %346, %346 : vector<32x128xf32>
    %348 = arith.mulf %346, %347 : vector<32x128xf32>
    %cst_234 = arith.constant 4.471500e-02 : f32
    %349 = vector.broadcast %cst_234 : f32 to vector<32x128xf32>
    %350 = arith.mulf %349, %348 : vector<32x128xf32>
    %351 = arith.addf %346, %350 : vector<32x128xf32>
    %cst_235 = arith.constant 0.797884583 : f32
    %352 = vector.broadcast %cst_235 : f32 to vector<32x128xf32>
    %353 = arith.mulf %352, %351 : vector<32x128xf32>
    %354 = math.tanh %353 : vector<32x128xf32>
    %cst_236 = arith.constant 1.000000e+00 : f32
    %355 = vector.broadcast %cst_236 : f32 to vector<32x128xf32>
    %356 = arith.addf %355, %354 : vector<32x128xf32>
    %cst_237 = arith.constant 5.000000e-01 : f32
    %357 = vector.broadcast %cst_237 : f32 to vector<32x128xf32>
    %358 = arith.mulf %357, %356 : vector<32x128xf32>
    %359 = arith.mulf %346, %358 : vector<32x128xf32>
    %360 = arith.truncf %359 : vector<32x128xf32> to vector<32x128xbf16>
    %c1_238 = arith.constant 1 : index
    %c0_239 = arith.constant 0 : index
    %c0_240 = arith.constant 0 : index
    %361 = vector.load %arg19[%c1_238, %c0_239, %c0_240] : memref<2x128x32xbf16, #tpu.memory_space<vmem>>, vector<1x128x32xbf16>
    %362 = vector.shape_cast %361 : vector<1x128x32xbf16> to vector<128x32xbf16>
    %cst_241 = arith.constant dense<0.000000e+00> : vector<32x32xf32>
    %363 = tpu.matmul %360, %362, %cst_241 {dimension_numbers = #tpu.dot_dimension_numbers<[1], [0], [0], [1], [0, 0, 1, 1], [], []>} : vector<32x128xbf16>, vector<128x32xbf16>, vector<32x32xf32> -> vector<32x32xf32>
    %c1_242 = arith.constant 1 : index
    %c0_243 = arith.constant 0 : index
    %c0_244 = arith.constant 0 : index
    %364 = vector.load %arg20[%c1_242, %c0_243, %c0_244] : memref<2x1x32xf32, #tpu.memory_space<vmem>>, vector<1x1x32xf32>
    %365 = vector.shape_cast %364 : vector<1x1x32xf32> to vector<1x32xf32>
    %366 = vector.broadcast %365 : vector<1x32xf32> to vector<32x32xf32>
    %367 = arith.addf %363, %366 : vector<32x32xf32>
    %368 = arith.addf %312, %367 : vector<32x32xf32>
    %c0_245 = arith.constant 0 : index
    %c0_246 = arith.constant 0 : index
    %369 = vector.load %arg21[%c0_245, %c0_246] : memref<1x32xf32, #tpu.memory_space<vmem>>, vector<1x32xf32>
    %c0_247 = arith.constant 0 : index
    %c0_248 = arith.constant 0 : index
    %370 = vector.load %arg22[%c0_247, %c0_248] : memref<1x32xf32, #tpu.memory_space<vmem>>, vector<1x32xf32>
    %cst_249 = arith.constant dense<0.000000e+00> : vector<32xf32>
    %371 = vector.multi_reduction <add>, %368, %cst_249 [1] : vector<32x32xf32> to vector<32xf32>
    %372 = vector.shape_cast %371 : vector<32xf32> to vector<32x1xf32>
    %cst_250 = arith.constant 3.200000e+01 : f32
    %373 = vector.broadcast %cst_250 : f32 to vector<32x1xf32>
    %374 = arith.divf %372, %373 : vector<32x1xf32>
    %375 = vector.broadcast %374 : vector<32x1xf32> to vector<32x32xf32>
    %376 = arith.subf %368, %375 : vector<32x32xf32>
    %377 = arith.mulf %376, %376 : vector<32x32xf32>
    %cst_251 = arith.constant dense<0.000000e+00> : vector<32xf32>
    %378 = vector.multi_reduction <add>, %377, %cst_251 [1] : vector<32x32xf32> to vector<32xf32>
    %379 = vector.shape_cast %378 : vector<32xf32> to vector<32x1xf32>
    %cst_252 = arith.constant 3.200000e+01 : f32
    %380 = vector.broadcast %cst_252 : f32 to vector<32x1xf32>
    %381 = arith.divf %379, %380 : vector<32x1xf32>
    %382 = vector.broadcast %374 : vector<32x1xf32> to vector<32x32xf32>
    %383 = arith.subf %368, %382 : vector<32x32xf32>
    %cst_253 = arith.constant 9.99999997E-7 : f32
    %384 = vector.broadcast %cst_253 : f32 to vector<32x1xf32>
    %385 = arith.addf %381, %384 : vector<32x1xf32>
    %386 = math.rsqrt %385 : vector<32x1xf32>
    %387 = vector.broadcast %386 : vector<32x1xf32> to vector<32x32xf32>
    %388 = arith.mulf %383, %387 : vector<32x32xf32>
    %389 = vector.broadcast %369 : vector<1x32xf32> to vector<32x32xf32>
    %390 = arith.mulf %388, %389 : vector<32x32xf32>
    %391 = vector.broadcast %370 : vector<1x32xf32> to vector<32x32xf32>
    %392 = arith.addf %390, %391 : vector<32x32xf32>
    %c0_254 = arith.constant 0 : index
    %c0_255 = arith.constant 0 : index
    %393 = vector.load %arg23[%c0_254, %c0_255] : memref<2x32xbf16, #tpu.memory_space<vmem>>, vector<2x32xbf16>
    %394 = arith.truncf %392 : vector<32x32xf32> to vector<32x32xbf16>
    %cst_256 = arith.constant dense<0.000000e+00> : vector<2x32xf32>
    %395 = tpu.matmul %393, %394, %cst_256 {dimension_numbers = #tpu.dot_dimension_numbers<[1], [0], [0], [1], [0, 0, 1, 1], [], []>} : vector<2x32xbf16>, vector<32x32xbf16>, vector<2x32xf32> -> vector<2x32xf32>
    %396 = arith.truncf %395 : vector<2x32xf32> to vector<2x32xbf16>
    %c0_257 = arith.constant 0 : index
    %c0_258 = arith.constant 0 : index
    %397 = vector.load %arg24[%c0_257, %c0_258] : memref<32x8xbf16, #tpu.memory_space<vmem>>, vector<32x8xbf16>
    %cst_259 = arith.constant dense<0.000000e+00> : vector<2x8xf32>
    %398 = tpu.matmul %396, %397, %cst_259 {dimension_numbers = #tpu.dot_dimension_numbers<[1], [0], [0], [1], [0, 0, 1, 1], [], []>} : vector<2x32xbf16>, vector<32x8xbf16>, vector<2x8xf32> -> vector<2x8xf32>
    %c0_260 = arith.constant 0 : index
    %c0_261 = arith.constant 0 : index
    %399 = vector.load %arg25[%c0_260, %c0_261] : memref<1x8xf32, #tpu.memory_space<vmem>>, vector<1x8xf32>
    %400 = vector.broadcast %399 : vector<1x8xf32> to vector<2x8xf32>
    %401 = arith.addf %398, %400 : vector<2x8xf32>
    %c0_262 = arith.constant 0 : index
    %c0_263 = arith.constant 0 : index
    %402 = vector.load %arg27[%c0_262, %c0_263] : memref<2x8xf32, #tpu.memory_space<vmem>>, vector<2x8xf32>
    tpu.vector_store %arg27[%c0_262, %c0_263], %401 {strides = array<i32>} : memref<2x8xf32, #tpu.memory_space<vmem>>, vector<2x8xf32>,
    return
  }
  func.func @transform_0(%arg0: i32) -> (i32, i32) {
    %c0_i32 = arith.constant 0 : i32
    %c0_i32_0 = arith.constant 0 : i32
    %c0_i32_1 = arith.constant 0 : i32
    return %c0_i32, %c0_i32_0 : i32, i32
  }
  func.func @transform_1(%arg0: i32) -> (i32, i32) {
    %c0_i32 = arith.constant 0 : i32
    %c0_i32_0 = arith.constant 0 : i32
    %c0_i32_1 = arith.constant 0 : i32
    return %c0_i32, %c0_i32_0 : i32, i32
  }
  func.func @transform_2(%arg0: i32) -> (i32, i32) {
    %c0_i32 = arith.constant 0 : i32
    %c0_i32_0 = arith.constant 0 : i32
    %c0_i32_1 = arith.constant 0 : i32
    return %c0_i32, %c0_i32_0 : i32, i32
  }
  func.func @transform_3(%arg0: i32) -> (i32, i32) {
    %c0_i32 = arith.constant 0 : i32
    %c0_i32_0 = arith.constant 0 : i32
    %c0_i32_1 = arith.constant 0 : i32
    return %c0_i32, %c0_i32_0 : i32, i32
  }
  func.func @transform_4(%arg0: i32) -> (i32, i32, i32) {
    %c0_i32 = arith.constant 0 : i32
    %c0_i32_0 = arith.constant 0 : i32
    %c0_i32_1 = arith.constant 0 : i32
    %c0_i32_2 = arith.constant 0 : i32
    return %c0_i32, %c0_i32_0, %c0_i32_1 : i32, i32, i32
  }
  func.func @transform_5(%arg0: i32) -> (i32, i32, i32) {
    %c0_i32 = arith.constant 0 : i32
    %c0_i32_0 = arith.constant 0 : i32
    %c0_i32_1 = arith.constant 0 : i32
    %c0_i32_2 = arith.constant 0 : i32
    return %c0_i32, %c0_i32_0, %c0_i32_1 : i32, i32, i32
  }
  func.func @transform_6(%arg0: i32) -> (i32, i32, i32, i32) {
    %c0_i32 = arith.constant 0 : i32
    %c0_i32_0 = arith.constant 0 : i32
    %c0_i32_1 = arith.constant 0 : i32
    %c0_i32_2 = arith.constant 0 : i32
    %c0_i32_3 = arith.constant 0 : i32
    return %c0_i32, %c0_i32_0, %c0_i32_1, %c0_i32_2 : i32, i32, i32, i32
  }
  func.func @transform_7(%arg0: i32) -> (i32, i32, i32, i32) {
    %c0_i32 = arith.constant 0 : i32
    %c0_i32_0 = arith.constant 0 : i32
    %c0_i32_1 = arith.constant 0 : i32
    %c0_i32_2 = arith.constant 0 : i32
    %c0_i32_3 = arith.constant 0 : i32
    return %c0_i32, %c0_i32_0, %c0_i32_1, %c0_i32_2 : i32, i32, i32, i32
  }
  func.func @transform_8(%arg0: i32) -> (i32, i32, i32, i32) {
    %c0_i32 = arith.constant 0 : i32
    %c0_i32_0 = arith.constant 0 : i32
    %c0_i32_1 = arith.constant 0 : i32
    %c0_i32_2 = arith.constant 0 : i32
    %c0_i32_3 = arith.constant 0 : i32
    return %c0_i32, %c0_i32_0, %c0_i32_1, %c0_i32_2 : i32, i32, i32, i32
  }
  func.func @transform_9(%arg0: i32) -> (i32, i32, i32, i32) {
    %c0_i32 = arith.constant 0 : i32
    %c0_i32_0 = arith.constant 0 : i32
    %c0_i32_1 = arith.constant 0 : i32
    %c0_i32_2 = arith.constant 0 : i32
    %c0_i32_3 = arith.constant 0 : i32
    return %c0_i32, %c0_i32_0, %c0_i32_1, %c0_i32_2 : i32, i32, i32, i32
  }
  func.func @transform_10(%arg0: i32) -> (i32, i32, i32, i32) {
    %c0_i32 = arith.constant 0 : i32
    %c0_i32_0 = arith.constant 0 : i32
    %c0_i32_1 = arith.constant 0 : i32
    %c0_i32_2 = arith.constant 0 : i32
    %c0_i32_3 = arith.constant 0 : i32
    return %c0_i32, %c0_i32_0, %c0_i32_1, %c0_i32_2 : i32, i32, i32, i32
  }
  func.func @transform_11(%arg0: i32) -> (i32, i32, i32, i32) {
    %c0_i32 = arith.constant 0 : i32
    %c0_i32_0 = arith.constant 0 : i32
    %c0_i32_1 = arith.constant 0 : i32
    %c0_i32_2 = arith.constant 0 : i32
    %c0_i32_3 = arith.constant 0 : i32
    return %c0_i32, %c0_i32_0, %c0_i32_1, %c0_i32_2 : i32, i32, i32, i32
  }
  func.func @transform_12(%arg0: i32) -> (i32, i32, i32, i32) {
    %c0_i32 = arith.constant 0 : i32
    %c0_i32_0 = arith.constant 0 : i32
    %c0_i32_1 = arith.constant 0 : i32
    %c0_i32_2 = arith.constant 0 : i32
    %c0_i32_3 = arith.constant 0 : i32
    return %c0_i32, %c0_i32_0, %c0_i32_1, %c0_i32_2 : i32, i32, i32, i32
  }
  func.func @transform_13(%arg0: i32) -> (i32, i32, i32) {
    %c0_i32 = arith.constant 0 : i32
    %c0_i32_0 = arith.constant 0 : i32
    %c0_i32_1 = arith.constant 0 : i32
    %c0_i32_2 = arith.constant 0 : i32
    return %c0_i32, %c0_i32_0, %c0_i32_1 : i32, i32, i32
  }
  func.func @transform_14(%arg0: i32) -> (i32, i32, i32) {
    %c0_i32 = arith.constant 0 : i32
    %c0_i32_0 = arith.constant 0 : i32
    %c0_i32_1 = arith.constant 0 : i32
    %c0_i32_2 = arith.constant 0 : i32
    return %c0_i32, %c0_i32_0, %c0_i32_1 : i32, i32, i32
  }
  func.func @transform_15(%arg0: i32) -> (i32, i32, i32) {
    %c0_i32 = arith.constant 0 : i32
    %c0_i32_0 = arith.constant 0 : i32
    %c0_i32_1 = arith.constant 0 : i32
    %c0_i32_2 = arith.constant 0 : i32
    return %c0_i32, %c0_i32_0, %c0_i32_1 : i32, i32, i32
  }
  func.func @transform_16(%arg0: i32) -> (i32, i32, i32) {
    %c0_i32 = arith.constant 0 : i32
    %c0_i32_0 = arith.constant 0 : i32
    %c0_i32_1 = arith.constant 0 : i32
    %c0_i32_2 = arith.constant 0 : i32
    return %c0_i32, %c0_i32_0, %c0_i32_1 : i32, i32, i32
  }
  func.func @transform_17(%arg0: i32) -> (i32, i32, i32) {
    %c0_i32 = arith.constant 0 : i32
    %c0_i32_0 = arith.constant 0 : i32
    %c0_i32_1 = arith.constant 0 : i32
    %c0_i32_2 = arith.constant 0 : i32
    return %c0_i32, %c0_i32_0, %c0_i32_1 : i32, i32, i32
  }
  func.func @transform_18(%arg0: i32) -> (i32, i32, i32) {
    %c0_i32 = arith.constant 0 : i32
    %c0_i32_0 = arith.constant 0 : i32
    %c0_i32_1 = arith.constant 0 : i32
    %c0_i32_2 = arith.constant 0 : i32
    return %c0_i32, %c0_i32_0, %c0_i32_1 : i32, i32, i32
  }
  func.func @transform_19(%arg0: i32) -> (i32, i32, i32) {
    %c0_i32 = arith.constant 0 : i32
    %c0_i32_0 = arith.constant 0 : i32
    %c0_i32_1 = arith.constant 0 : i32
    %c0_i32_2 = arith.constant 0 : i32
    return %c0_i32, %c0_i32_0, %c0_i32_1 : i32, i32, i32
  }
  func.func @transform_20(%arg0: i32) -> (i32, i32) {
    %c0_i32 = arith.constant 0 : i32
    %c0_i32_0 = arith.constant 0 : i32
    %c0_i32_1 = arith.constant 0 : i32
    return %c0_i32, %c0_i32_0 : i32, i32
  }
  func.func @transform_21(%arg0: i32) -> (i32, i32) {
    %c0_i32 = arith.constant 0 : i32
    %c0_i32_0 = arith.constant 0 : i32
    %c0_i32_1 = arith.constant 0 : i32
    return %c0_i32, %c0_i32_0 : i32, i32
  }
  func.func @transform_22(%arg0: i32) -> (i32, i32) {
    %c0_i32 = arith.constant 0 : i32
    %c0_i32_0 = arith.constant 0 : i32
    %c0_i32_1 = arith.constant 0 : i32
    return %c0_i32, %c0_i32_0 : i32, i32
  }
  func.func @transform_23(%arg0: i32) -> (i32, i32) {
    %c0_i32 = arith.constant 0 : i32
    %c0_i32_0 = arith.constant 0 : i32
    %c0_i32_1 = arith.constant 0 : i32
    return %c0_i32, %c0_i32_0 : i32, i32
  }
  func.func @transform_24(%arg0: i32) -> (i32, i32) {
    %c0_i32 = arith.constant 0 : i32
    %c0_i32_0 = arith.constant 0 : i32
    %c0_i32_1 = arith.constant 0 : i32
    return %c0_i32, %c0_i32_0 : i32, i32
  }
  func.func @transform_25(%arg0: i32) -> (i32, i32, i32) {
    %c0_i32 = arith.constant 0 : i32
    %c0_i32_0 = arith.constant 0 : i32
    %c0_i32_1 = arith.constant 0 : i32
    %c0_i32_2 = arith.constant 0 : i32
    return %c0_i32, %c0_i32_0, %c0_i32_1 : i32, i32, i32
  }
  func.func @transform_26(%arg0: i32) -> (i32, i32) {
    %c0_i32 = arith.constant 0 : i32
    %c0_i32_0 = arith.constant 0 : i32
    %c0_i32_1 = arith.constant 0 : i32
    return %c0_i32, %c0_i32_0 : i32, i32
  }
}

</mosaic_0001>

<bundles_post_ra>
// kernel: new_timm_model_forward.1
= control target key start
LH: loop header
LB: loop body
LE: loop exit
PB: predicated region body
PF: predicated region fallthrough
CT: control target
= control target key end

     0   :  { %s3827_s0 = inlined_call_operand.vmem [shape: bf16[32,64], index: 0, kind: input, shape index: {}]   ;;  %s3828_s1 = inlined_call_operand.vmem [shape: bf16[64,32], index: 1, kind: input, shape index: {}]   ;;  %s3829_s2 = inlined_call_operand.vmem [shape: f32[1,32], index: 2, kind: input, shape index: {}]   ;;  %s3830_s3 = inlined_call_operand.vmem [shape: f32[16,32], index: 3, kind: input, shape index: {}]   ;;  %s3831_s4 = inlined_call_operand.vmem [shape: f32[2,1,32], index: 4, kind: input, shape index: {}]   ;;  %s3832_s5 = inlined_call_operand.vmem [shape: f32[2,1,32], index: 5, kind: input, shape index: {}]   ;;  %s3833_s6 = inlined_call_operand.vmem [shape: bf16[2,2,32,16], index: 6, kind: input, shape index: {}]   ;;  %s3834_s7 = inlined_call_operand.vmem [shape: bf16[2,2,32,16], index: 7, kind: input, shape index: {}]   ;;  %s3835_s8 = inlined_call_operand.vmem [shape: bf16[2,2,32,16], index: 8, kind: input, shape index: {}]   ;;  %s3836_s9 = inlined_call_operand.vmem [shape: f32[2,2,1,16], index: 9, kind: input, shape index: {}]   ;;  %s3837_s10 = inlined_call_operand.vmem [shape: f32[2,2,1,16], index: 10, kind: input, shape index: {}]   ;;  %s3838_s11 = inlined_call_operand.vmem [shape: f32[2,2,1,16], index: 11, kind: input, shape index: {}]   ;;  %s3839_s12 = inlined_call_operand.vmem [shape: bf16[2,2,16,32], index: 12, kind: input, shape index: {}]   ;;  %s3840_s13 = inlined_call_operand.vmem [shape: f32[2,1,32], index: 13, kind: input, shape index: {}]   ;;  %s3841_s14 = inlined_call_operand.vmem [shape: f32[2,1,32], index: 14, kind: input, shape index: {}]   ;;  %s3842_s15 = inlined_call_operand.vmem [shape: f32[2,1,32], index: 15, kind: input, shape index: {}]   ;;  %s3843_s16 = inlined_call_operand.vmem [shape: bf16[2,32,128], index: 16, kind: input, shape index: {}]   ;;  %s3844_s17 = inlined_call_operand.vmem [shape: f32[2,1,128], index: 17, kind: input, shape index: {}]   ;;  %s3845_s18 = inlined_call_operand.vmem [shape: bf16[2,128,32], index: 18, kind: input, shape index: {}]   ;;  %s3846_s19 = inlined_call_operand.vmem [shape: f32[2,1,32], index: 19, kind: input, shape index: {}]   ;;  %s3847_s20 = inlined_call_operand.vmem [shape: f32[1,32], index: 20, kind: input, shape index: {}]   ;;  %s3848_s21 = inlined_call_operand.vmem [shape: f32[1,32], index: 21, kind: input, shape index: {}]   ;;  %s3849_s22 = inlined_call_operand.vmem [shape: bf16[2,32], index: 22, kind: input, shape index: {}]   ;;  %s3850_s23 = inlined_call_operand.vmem [shape: bf16[32,8], index: 23, kind: input, shape index: {}]   ;;  %s3851_s24 = inlined_call_operand.vmem [shape: f32[1,8], index: 24, kind: input, shape index: {}]   ;;  %s3852_s25 = inlined_call_operand.vmem [shape: f32[2,32,32], index: 25, kind: output, shape index: {0}]   ;;  %s3853_s26 = inlined_call_operand.hbm [shape: f32[2,8], index: 26, kind: output, shape index: {1}]  }
   0x1   :  { %3864 = sst [smem:[#allocation5_spill]] %s3827_s0 }
   0x2   :  { %3865 = sst [smem:[#allocation6_spill]] %s3828_s1 }
   0x3   :  { %3866 = sst [smem:[#allocation7_spill]] %s3829_s2 }
   0x4   :  { %3867 = sst [smem:[#allocation8_spill]] %s3830_s3 }
   0x5   :  { %3868 = sst [smem:[#allocation9_spill]] %s3831_s4 }
   0x6   :  { %3869 = sst [smem:[#allocation10_spill]] %s3832_s5 }
   0x7   :  { %3870 = sst [smem:[#allocation11_spill]] %s3833_s6 }
   0x8   :  { %3871 = sst [smem:[#allocation12_spill]] %s3834_s7 }
   0x9   :  { %3872 = sst [smem:[#allocation13_spill]] %s3835_s8 }
   0xa   :  { %3873 = sst [smem:[#allocation14_spill]] %s3836_s9 }
   0xb   :  { %3874 = sst [smem:[#allocation15_spill]] %s3837_s10 }
   0xc   :  { %3875 = sst [smem:[#allocation16_spill]] %s3851_s24 }
   0xd   :  { %3876 = sst [smem:[#allocation17_spill]] %s3853_s26 }
   0xe   :  { %s3877_s7 = sld [smem:[#allocation6_spill]] }
  0x14   :  { %v2735_v0 = vld [vmem:[%s3877_s7 + $0x18] sm:$0xff]  ;;  %v2734_v1 = vld [vmem:[%s3877_s7 + $0x10] sm:$0xff]  ;;  %v2733_v2 = vld [vmem:[%s3877_s7 + $0x8] sm:$0xff] }
  0x15   :  { %165 = vmatpush.bf16.msra.mxu0 %v2735_v0  ;;  %v2732_v3 = vld [vmem:[%s3877_s7] sm:$0xff] }
  0x19   :  { %166 = vmatpush.bf16.msra.mxu0 %v2734_v1 }
  0x1d   :  { %167 = vmatpush.bf16.msra.mxu0 %v2733_v2 }
  0x1e   :  { %32 = vsyncpa [#allocation3], 0  ;;  %s3878_s5 = sld [smem:[#allocation5_spill]]  ;;  %vm154_vm0 = vcmask 523264   ;;  %vm188_vm1 = vcmask 261120   ;;  %v2969_v25 = vmov 32.0  }
  0x1f   :  { %s3879_s3 = sld [smem:[#allocation7_spill]]  ;;  %2821 = vrcp.f32 %v2969_v25  ;;  %vm427_vm15 = vcmask 130048   ;;  %s2971_s24 = smov [#allocation2]  }
  0x20   :  { %s3880_s8 = sld [smem:[#allocation8_spill]] }
  0x21   :  { %168 = vmatpush.bf16.msra.mxu0 %v2732_v3  ;;  %s3881_s30 = sld [smem:[#allocation11_spill]] }
  0x22   :  { %s3882_s10 = sld [smem:[#allocation12_spill]] }
  0x23   :  { %s3883_s27 = sld [smem:[#allocation13_spill]] }
  0x24   :  { %v2730_v4 = vld [vmem:[%s3878_s5] sm:$0xff]  ;;  %v2731_v5 = vld [vmem:[%s3878_s5 + $0x8] sm:$0xff]  ;;  %s3884_s4 = sld [smem:[#allocation9_spill]] }
  0x25   :  { %2392 = vmatmul.msk.bf16.vlgmr.msra.gmra.mxu0 %vm154_vm0, %v2730_v4  ;;  %v2791_v6 = vld [vmem:[%s3879_s3] ss:$0 sm:$0xff]  ;;  %v2822_v26 = vpop.eup %2821  ;;  %s3885_s9 = sld [smem:[#allocation10_spill]] }
  0x26   :  { %v180_v8 = vld [vmem:[%s3880_s8] sm:$0xff]  ;;  %v181_v13 = vld [vmem:[%s3880_s8 + $0x8] sm:$0xff]  ;;  %v202_v27 = vmul.f32 32.0, %v2822_v26  ;;  %vm206_vm2 = vweird.f32 %v2822_v26  ;;  %s3886_s6 = sld [smem:[#allocation15_spill]] }
  0x27   :  { %v2737_v52 = vld [vmem:[%s3881_s30 + $0x8] sm:$0xff]  ;;  %v2736_v57 = vld [vmem:[%s3881_s30] sm:$0xff]  ;;  %s3887_s5 = sld [smem:[#allocation14_spill]] }
  0x28   :  { %v203_v28 = vsub.f32 1.0, %v202_v27  ;;  %v2739_v53 = vld [vmem:[%s3882_s10 + $0x8] sm:$0xff]  ;;  %332 = vmatpush.bf16.msrb.mxu0 %v2737_v52  ;;  %2786 = vmatpush.bf16.msra.mxu1 %v2737_v52  ;;  %v2738_v58 = vld [vmem:[%s3882_s10] sm:$0xff]  ;;  %v2746_v3 = vld [vmem:[%s3882_s10 + $0x18] sm:$0xff]  ;;  %s3888_s28 = sld [smem:[#allocation16_spill]] }
  0x29   :  { %v2741_v54 = vld [vmem:[%s3883_s27 + $0x8] sm:$0xff]  ;;  %371 = vmatpush.bf16.msra.mxu2 %v2739_v53  ;;  %v2740_v59 = vld [vmem:[%s3883_s27] sm:$0xff]  ;;  %s3889_s29 = sld [smem:[#allocation17_spill]] }
  0x2a   :  { %v204_v29 = vmul.f32 %v2822_v26, %v203_v28  ;;  %410 = vmatpush.bf16.msra.mxu3 %v2741_v54 }
  0x2c   :  { %v205_v30 = vadd.f32 %v2822_v26, %v204_v29  ;;  %333 = vmatpush.bf16.msrb.mxu0 %v2736_v57  ;;  %2787 = vmatpush.bf16.msra.mxu1 %v2736_v57 }
  0x2d   :  { %372 = vmatpush.bf16.msra.mxu2 %v2738_v58 }
  0x2e   :  { %v3150_v31 = vsel %vm206_vm2, %v2822_v26, %v205_v30  ;;  %411 = vmatpush.bf16.msra.mxu3 %v2740_v59  ;;  %v2792_v26 = vld [vmem:[%s3884_s4] ss:$0 sm:$0xff] }
  0x30   :  { %605 = vmatpush.bf16.msra.mxu0 %v2746_v3 }
  0x35   :  { %2393 = vmatmul.msk.bf16.gmra.mxu0 %vm154_vm0, %v2731_v5 }
  0xa2   :  { %v170_v7 = vpop.f32.mrf.mxu0 }
  0xa3   :  { %v171_v9 = vadd.f32 %v2791_v6, %v170_v7 }
  0xa5   :  { %v3131_v10 = vadd.f32 %v180_v8, %v171_v9 }
  0xa7   :  { %v189_v11 = vsel %vm188_vm1, %v3131_v10, 0.0 }
  0xa8   :  { %190 = vadd.xlane.f32.xlu0 %v189_v11  ;;  %v2745_v11 = vld [vmem:[%s3882_s10 + $0x10] sm:$0xff] }
  0xa9   :  { %606 = vmatpush.bf16.msra.mxu0 %v2745_v11 }
  0xaa   :  { %v172_v12 = vpop.f32.mrf.mxu0 }
  0xab   :  { %v173_v14 = vadd.f32 %v2791_v6, %v172_v12 }
  0xad   :  { %v3138_v15 = vadd.f32 %v181_v13, %v173_v14 }
  0xaf   :  { %v192_v16 = vsel %vm188_vm1, %v3138_v15, 0.0 }
  0xb0   :  { %193 = vadd.xlane.f32.xlu0 %v192_v16 }
  0xb2   :  { %v175_v17 = vpop.f32.mrf.mxu0 }
  0xb3   :  { %v176_v18 = vadd.f32 %v2791_v6, %v175_v17 }
  0xb5   :  { %v3142_v19 = vadd.f32 %v180_v8, %v176_v18 }
  0xb7   :  { %v195_v20 = vsel %vm188_vm1, %v3142_v19, 0.0 }
  0xb8   :  { %196 = vadd.xlane.f32.xlu1 %v195_v20  ;;  %v2744_v20 = vld [vmem:[%s3881_s30 + $0x18] sm:$0xff] }
  0xb9   :  { %564 = vmatpush.bf16.msrb.mxu3 %v2744_v20 }
  0xba   :  { %v177_v21 = vpop.f32.mrf.mxu0 }
  0xbb   :  { %v178_v22 = vadd.f32 %v2791_v6, %v177_v21 }
  0xbd   :  { %v3146_v23 = vadd.f32 %v181_v13, %v178_v22 }
  0xbf   :  { %v198_v24 = vsel %vm188_vm1, %v3146_v23, 0.0 }
  0xc0   :  { %199 = vadd.xlane.f32.xlu1 %v198_v24  ;;  %v2743_v24 = vld [vmem:[%s3881_s30 + $0x10] sm:$0xff] }
  0xc1   :  { %565 = vmatpush.bf16.msrb.mxu3 %v2743_v24 }
 0x11b   :  { %v191_v32 = vpop.xlane.xlu0 %190 }
 0x11c   :  { %v208_v33 = vmul.f32 %v3150_v31, %v191_v32 }
 0x11e   :  { %v3154_v34 = vsub.f32 %v3131_v10, %v208_v33 }
 0x120   :  { %v216_v35 = vmul.f32 %v3154_v34, %v3154_v34 }
 0x122   :  { %v220_v36 = vsel %vm188_vm1, %v216_v35, 0.0  ;;  %v2793_v35 = vld [vmem:[%s3885_s9] ss:$0 sm:$0xff] }
 0x123   :  { %221 = vadd.xlane.f32.xlu2 %v220_v36  ;;  %v194_v37 = vpop.xlane.xlu0 %193 }
 0x124   :  { %v209_v38 = vmul.f32 %v3150_v31, %v194_v37 }
 0x126   :  { %v3161_v39 = vsub.f32 %v3138_v15, %v209_v38 }
 0x128   :  { %v217_v40 = vmul.f32 %v3161_v39, %v3161_v39 }
 0x12a   :  { %v223_v41 = vsel %vm188_vm1, %v217_v40, 0.0 }
 0x12b   :  { %v197_v42 = vpop.xlane.xlu1 %196  ;;  %224 = vadd.xlane.f32.xlu2 %v223_v41 }
 0x12c   :  { %v210_v43 = vmul.f32 %v3150_v31, %v197_v42 }
 0x12e   :  { %v3168_v44 = vsub.f32 %v3142_v19, %v210_v43 }
 0x130   :  { %v218_v45 = vmul.f32 %v3168_v44, %v3168_v44 }
 0x132   :  { %v226_v46 = vsel %vm188_vm1, %v218_v45, 0.0 }
 0x133   :  { %v200_v47 = vpop.xlane.xlu1 %199  ;;  %227 = vadd.xlane.f32.xlu0 %v226_v46 }
 0x134   :  { %v211_v48 = vmul.f32 %v3150_v31, %v200_v47 }
 0x136   :  { %v3175_v49 = vsub.f32 %v3146_v23, %v211_v48 }
 0x138   :  { %v219_v50 = vmul.f32 %v3175_v49, %v3175_v49 }
 0x13a   :  { %v229_v51 = vsel %vm188_vm1, %v219_v50, 0.0 }
 0x13b   :  { %230 = vadd.xlane.f32.xlu1 %v229_v51 }
 0x196   :  { %v222_v55 = vpop.xlane.xlu2 %221 }
 0x197   :  { %v232_v56 = vmul.f32 %v222_v55, %v3150_v31 }
 0x199   :  { %v236_v60 = vadd.f32 1e-06, %v232_v56 }
 0x19b   :  { %2823 = vrsqrt.f32 %v236_v60  ;;  %vm246_vm4 = vweird.f32 %v236_v60 }
 0x19e   :  { %v225_v61 = vpop.xlane.xlu2 %224 }
 0x19f   :  { %v233_v62 = vmul.f32 %v225_v61, %v3150_v31 }
 0x1a1   :  { %v2824_v63 = vpop.eup %2823  ;;  %v237_v0 = vadd.f32 1e-06, %v233_v62 }
 0x1a2   :  { %v241_v1 = vmul.f32 %v2824_v63, %v236_v60  ;;  %vm247_vm3 = vweird.f32 %v2824_v63 }
 0x1a3   :  { %2825 = vrsqrt.f32 %v237_v0  ;;  %vm248_vm5 = vmor %vm246_vm4, %vm247_vm3  ;;  %vm256_vm7 = vweird.f32 %v237_v0 }
 0x1a4   :  { %v242_v2 = vmul.f32 %v2824_v63, %v241_v1 }
 0x1a6   :  { %v243_v4 = vmul.f32 0.5, %v242_v2  ;;  %v228_v5 = vpop.xlane.xlu0 %227 }
 0x1a7   :  { %v234_v6 = vmul.f32 %v228_v5, %v3150_v31  ;;  %v2795_v5 = vld [vmem:[%s3886_s6] ss:$0 sm:$0xff] }
 0x1a8   :  { %v244_v7 = vsub.f32 1.5, %v243_v4 }
 0x1a9   :  { %v2826_v8 = vpop.eup %2825  ;;  %v238_v9 = vadd.f32 1e-06, %v234_v6  ;;  %v2796_v6 = vld [vmem:[%s3838_s11] ss:$0 sm:$0xff] }
 0x1aa   :  { %v245_v12 = vmul.f32 %v2824_v63, %v244_v7  ;;  %v251_v13 = vmul.f32 %v2826_v8, %v237_v0  ;;  %vm257_vm6 = vweird.f32 %v2826_v8 }
 0x1ab   :  { %2827 = vrsqrt.f32 %v238_v9  ;;  %vm258_vm8 = vmor %vm256_vm7, %vm257_vm6  ;;  %vm266_vm10 = vweird.f32 %v238_v9 }
 0x1ac   :  { %v252_v14 = vmul.f32 %v2826_v8, %v251_v13  ;;  %v249_v16 = vsel %vm248_vm5, %v2824_v63, %v245_v12 }
 0x1ad   :  { %v280_v27 = vmul.f32 %v249_v16, %v3154_v34 }
 0x1ae   :  { %v253_v17 = vmul.f32 0.5, %v252_v14  ;;  %v231_v18 = vpop.xlane.xlu1 %230 }
 0x1af   :  { %v235_v21 = vmul.f32 %v231_v18, %v3150_v31  ;;  %v287_v36 = vmul.f32 %v2792_v26, %v280_v27  ;;  %v2797_v27 = vld [vmem:[%s3886_s6 + $0x1] ss:$0 sm:$0xff] }
 0x1b0   :  { %v254_v22 = vsub.f32 1.5, %v253_v17 }
 0x1b1   :  { %v2828_v25 = vpop.eup %2827  ;;  %v239_v28 = vadd.f32 1e-06, %v235_v21  ;;  %v294_v42 = vadd.f32 %v2793_v35, %v287_v36 }
 0x1b2   :  { %v255_v29 = vmul.f32 %v2826_v8, %v254_v22  ;;  %v261_v30 = vmul.f32 %v2828_v25, %v238_v9  ;;  %vm267_vm9 = vweird.f32 %v2828_v25 }
 0x1b3   :  { %2829 = vrsqrt.f32 %v239_v28  ;;  %vm268_vm11 = vmor %vm266_vm10, %vm267_vm9  ;;  %vm276_vm13 = vweird.f32 %v239_v28 }
 0x1b4   :  { %v259_v32 = vsel %vm258_vm8, %v2826_v8, %v255_v29  ;;  %v262_v33 = vmul.f32 %v2828_v25, %v261_v30  ;;  %v2748_v29 = vld [vmem:[%s3883_s27 + $0x18] sm:$0xff] }
 0x1b5   :  { %v281_v37 = vmul.f32 %v259_v32, %v3161_v39 }
 0x1b6   :  { %v263_v38 = vmul.f32 0.5, %v262_v33  ;;  %v2794_v33 = vld [vmem:[%s3887_s5] ss:$0 sm:$0xff] }
 0x1b7   :  { %v288_v40 = vmul.f32 %v2792_v26, %v281_v37 }
 0x1b8   :  { %v264_v41 = vsub.f32 1.5, %v263_v38  ;;  %v2747_v38 = vld [vmem:[%s3883_s27 + $0x10] sm:$0xff] }
 0x1b9   :  { %v2830_v34 = vpop.eup %2829  ;;  %v295_v43 = vadd.f32 %v2793_v35, %v288_v40 }
 0x1ba   :  { %v265_v45 = vmul.f32 %v2828_v25, %v264_v41  ;;  %v271_v46 = vmul.f32 %v2830_v34, %v239_v28  ;;  %vm277_vm12 = vweird.f32 %v2830_v34 }
 0x1bb   :  { %v3222_v47 = vpack.c.bf16 %v295_v43, %v294_v42  ;;  %vm278_vm14 = vmor %vm276_vm13, %vm277_vm12 }
 0x1bc   :  { %v272_v48 = vmul.f32 %v2830_v34, %v271_v46  ;;  %v269_v39 = vsel %vm268_vm11, %v2828_v25, %v265_v45 }
 0x1bd   :  { %2402 = vmatmul.msk.bf16.vlgmr.msrb.gmra.mxu0 %vm188_vm1, %v3222_v47  ;;  %2412 = vmatmul.msk.bf16.vlgmr.msra.gmra.mxu2 %vm188_vm1, %v3222_v47  ;;  %v282_v52 = vmul.f32 %v269_v39, %v3168_v44 }
 0x1be   :  { %v273_v50 = vmul.f32 0.5, %v272_v48  ;;  %2422 = vmatmul.msk.bf16.vlgmr.msra.gmra.mxu3 %vm188_vm1, %v3222_v47 }
 0x1bf   :  { %v289_v55 = vmul.f32 %v2792_v26, %v282_v52 }
 0x1c0   :  { %v274_v51 = vsub.f32 1.5, %v273_v50 }
 0x1c1   :  { %v296_v58 = vadd.f32 %v2793_v35, %v289_v55 }
 0x1c2   :  { %v275_v53 = vmul.f32 %v2830_v34, %v274_v51 }
 0x1c4   :  { %v279_v54 = vsel %vm278_vm14, %v2830_v34, %v275_v53  ;;  %v84_v53 = vlaneseq }
 0x1c5   :  { %v283_v56 = vmul.f32 %v279_v54, %v3175_v49 }
 0x1c6   :  { %v85_v54 = vshrl.u32 %v84_v53, 7  ;;  %v90_v55 = vand.u32 127, %v84_v53 }
 0x1c7   :  { %v290_v57 = vmul.f32 %v2792_v26, %v283_v56 }
 0x1c8   :  { %v91_v56 = vshra.s32 %v85_v54, 4 }
 0x1c9   :  { %v297_v59 = vadd.f32 %v2793_v35, %v290_v57  ;;  %v95_v57 = vshra.s32 %v90_v55, 4 }
 0x1cb   :  { %v3232_v60 = vpack.c.bf16 %v297_v59, %v296_v58  ;;  %vm96_vm0 = vcmp.eq.s32.totalorder %v91_v56, %v95_v57  ;;  %v86_v58 = vadd.s32 8, %v85_v54  ;;  %v2970_v59 = vmov -1e+30  }
 0x1cd   :  { %2403 = vmatmul.msk.bf16.vlgmr.msra.gmra.mxu1 %vm188_vm1, %v3232_v60  ;;  %2413 = vmatmul.msk.bf16.gmra.mxu2 %vm188_vm1, %v3232_v60 }
 0x1ce   :  { %2423 = vmatmul.msk.bf16.gmra.mxu3 %vm188_vm1, %v3232_v60  ;;  %2456 = vmatmul.msk.bf16.vlgmr.msra.gmra.mxu0 %vm188_vm1, %v3222_v47 }
 0x1de   :  { %2441 = vmatmul.msk.bf16.vlgmr.msrb.gmra.mxu3 %vm188_vm1, %v3222_v47  ;;  %2457 = vmatmul.msk.bf16.gmra.mxu0 %vm188_vm1, %v3232_v60 }
 0x1ee   :  { %2442 = vmatmul.msk.bf16.gmra.mxu3 %vm188_vm1, %v3232_v60 }
 0x23a   :  { %v335_v44 = vpop.f32.mrf.mxu0 }
 0x23b   :  { %v336_v34 = vadd.f32 %v2794_v33, %v335_v44  ;;  %v3276_v44 = vsel %vm96_vm0, 0.0, %v2970_v59 }
 0x240   :  { %v374_v49 = vpop.f32.mrf.mxu2 }
 0x241   :  { %v413_v61 = vpop.f32.mrf.mxu3  ;;  %v375_v24 = vadd.f32 %v2795_v5, %v374_v49  ;;  %v92_v49 = vshra.s32 %v86_v58, 4 }
 0x242   :  { %v337_v62 = vpop.f32.mrf.mxu0  ;;  %v414_v22 = vadd.f32 %v2796_v6, %v413_v61 }
 0x243   :  { %v338_v37 = vadd.f32 %v2794_v33, %v337_v62  ;;  %vm97_vm2 = vcmp.eq.s32.totalorder %v92_v49, %v95_v57 }
 0x245   :  { %v423_v45 = vpack.c.bf16 %v338_v37, %v336_v34 }
 0x248   :  { %v376_v63 = vpop.f32.mrf.mxu2 }
 0x249   :  { %v415_v0 = vpop.f32.mrf.mxu3  ;;  %v377_v20 = vadd.f32 %v2795_v5, %v376_v63 }
 0x24a   :  { %v416_v17 = vadd.f32 %v2796_v6, %v415_v0  ;;  %v340_v42 = vpop.f32.mrf.mxu1 }
 0x24b   :  { %v608_v1 = vpop.f32.mrf.mxu0  ;;  %v425_v26 = vpack.c.bf16 %v377_v20, %v375_v24  ;;  %v341_v51 = vadd.f32 %v2794_v33, %v340_v42  ;;  %v2799_v20 = vld [vmem:[%s3838_s11 + $0x1] ss:$0 sm:$0xff] }
 0x24c   :  { %v505_v25 = vpack.c.bf16 %v416_v17, %v414_v22  ;;  %v609_v43 = vadd.f32 %v2797_v27, %v608_v1 }
 0x24d   :  { %v435_v35 = vsel %vm427_vm15, %v425_v26, 0 }
 0x250   :  { %v379_v2 = vpop.f32.mrf.mxu2 }
 0x251   :  { %v418_v3 = vpop.f32.mrf.mxu3  ;;  %v380_v8 = vadd.f32 %v2795_v5, %v379_v2 }
 0x252   :  { %v419_v12 = vadd.f32 %v2796_v6, %v418_v3  ;;  %v342_v39 = vpop.f32.mrf.mxu1 }
 0x253   :  { %v610_v4 = vpop.f32.mrf.mxu0  ;;  %v343_v50 = vadd.f32 %v2794_v33, %v342_v39 }
 0x254   :  { %v611_v40 = vadd.f32 %v2797_v27, %v610_v4  ;;  %v88_v4 = vadd.s32 24, %v85_v54 }
 0x255   :  { %v424_v52 = vpack.c.bf16 %v343_v50, %v341_v51 }
 0x256   :  { %v661_v46 = vpack.c.bf16 %v611_v40, %v609_v43 }
 0x258   :  { %v381_v7 = vpop.f32.mrf.mxu2  ;;  %v670_v48 = vsel %vm427_vm15, %v661_v46, 0 }
 0x259   :  { %v382_v9 = vadd.f32 %v2795_v5, %v381_v7  ;;  %v420_v11 = vpop.f32.mrf.mxu3 }
 0x25a   :  { %v421_v13 = vadd.f32 %v2796_v6, %v420_v11  ;;  %v94_v6 = vshra.s32 %v88_v4, 4  ;;  %v2798_v4 = vld [vmem:[%s3887_s5 + $0x1] ss:$0 sm:$0xff] }
 0x25b   :  { %v613_v14 = vpop.f32.mrf.mxu0  ;;  %v426_v16 = vpack.c.bf16 %v382_v9, %v380_v8 }
 0x25c   :  { %v506_v18 = vpack.c.bf16 %v421_v13, %v419_v12  ;;  %v614_v30 = vadd.f32 %v2797_v27, %v613_v14  ;;  %vm99_vm4 = vcmp.eq.s32.totalorder %v94_v6, %v95_v57 }
 0x25d   :  { %v438_v21 = vsel %vm427_vm15, %v426_v16, 0  ;;  %v3288_v11 = vsel %vm99_vm4, 0.0, %v2970_v59 }
 0x25e   :  { %519 = vmatpush.bf16.msrb.mxu2 %v506_v18  ;;  %446 = vmatpush.bf16.xpose.msrb.mxu1 %v438_v21 }
 0x262   :  { %520 = vmatpush.bf16.msrb.mxu2 %v505_v25 }
 0x263   :  { %v615_v28 = vpop.f32.mrf.mxu0 }
 0x264   :  { %v616_v32 = vadd.f32 %v2797_v27, %v615_v28 }
 0x266   :  { %v662_v36 = vpack.c.bf16 %v616_v32, %v614_v30  ;;  %447 = vmatpush.bf16.xpose.msrb.mxu1 %v435_v35 }
 0x268   :  { %v673_v41 = vsel %vm427_vm15, %v662_v36, 0 }
 0x269   :  { %681 = vmatpush.bf16.xpose.msra.mxu2 %v673_v41 }
 0x26d   :  { %2424 = vmatmul.msk.bf16.vlgmr.msrb.gmra.mxu1 %vm427_vm15, %v423_v45 }
 0x26e   :  { %646 = vmatpush.bf16.msra.mxu1 %v2748_v29 }
 0x271   :  { %682 = vmatpush.bf16.xpose.msra.mxu2 %v670_v48 }
 0x272   :  { %647 = vmatpush.bf16.msra.mxu1 %v2747_v38 }
 0x27d   :  { %2425 = vmatmul.msk.bf16.gmra.mxu1 %vm427_vm15, %v424_v52 }
 0x28d   :  { %2471 = vmatmul.msk.bf16.vlgmr.msra.gmra.mxu1 %vm188_vm1, %v3222_v47  ;;  %v87_v47 = vadd.s32 16, %v85_v54 }
 0x28f   :  { %v93_v0 = vshra.s32 %v87_v47, 4 }
 0x291   :  { %vm98_vm3 = vcmp.eq.s32.totalorder %v93_v0, %v95_v57 }
 0x292   :  { %v3284_v5 = vsel %vm98_vm3, 0.0, %v2970_v59 }
 0x29d   :  { %2472 = vmatmul.msk.bf16.gmra.mxu1 %vm188_vm1, %v3232_v60  ;;  %v3280_v60 = vsel %vm97_vm2, 0.0, %v2970_v59 }
 0x2ea   :  { %v449_v61 = vpop.f32.mrf.mxu1 }
 0x2eb   :  { %v450_v62 = vadd.f32 %v449_v61, %v3276_v44 }
 0x2ed   :  { %v459_v63 = vsel %vm188_vm1, %v450_v62, -inf }
 0x2ee   :  { %460 = vmax.xlane.f32.xlu2 %v459_v63  ;;  %v567_v63 = vpop.f32.mrf.mxu3 }
 0x2f2   :  { %v451_v1 = vpop.f32.mrf.mxu1 }
 0x2f3   :  { %v452_v2 = vadd.f32 %v451_v1, %v3280_v60 }
 0x2f5   :  { %v462_v3 = vsel %vm188_vm1, %v452_v2, -inf }
 0x2f6   :  { %463 = vmax.xlane.f32.xlu0 %v462_v3  ;;  %v569_v3 = vpop.f32.mrf.mxu3 }
 0x2f7   :  { %v570_v6 = vadd.f32 %v2798_v4, %v569_v3 }
 0x2fa   :  { %v454_v7 = vpop.f32.mrf.mxu1 }
 0x2fb   :  { %v455_v8 = vadd.f32 %v454_v7, %v3284_v5  ;;  %v568_v7 = vadd.f32 %v2798_v4, %v567_v63 }
 0x2fd   :  { %v465_v9 = vsel %vm188_vm1, %v455_v8, -inf }
 0x2fe   :  { %466 = vmax.xlane.f32.xlu1 %v465_v9  ;;  %v659_v9 = vpack.c.bf16 %v570_v6, %v568_v7 }
 0x302   :  { %v456_v12 = vpop.f32.mrf.mxu1 }
 0x303   :  { %v457_v13 = vadd.f32 %v456_v12, %v3288_v11 }
 0x305   :  { %v468_v14 = vsel %vm188_vm1, %v457_v13, -inf }
 0x306   :  { %469 = vmax.xlane.f32.xlu2 %v468_v14 }
 0x30a   :  { %v649_v16 = vpop.f32.mrf.mxu1 }
 0x30b   :  { %v650_v27 = vadd.f32 %v2799_v20, %v649_v16 }
 0x312   :  { %v651_v17 = vpop.f32.mrf.mxu1 }
 0x313   :  { %v652_v25 = vadd.f32 %v2799_v20, %v651_v17  ;;  %v2742_v17 = vld [vmem:[%s3839_s12] sm:$0xff] }
 0x314   :  { %822 = vmatpush.bf16.msrb.mxu1 %v2742_v17 }
 0x315   :  { %v740_v28 = vpack.c.bf16 %v652_v25, %v650_v27 }
 0x31a   :  { %v654_v18 = vpop.f32.mrf.mxu1 }
 0x31b   :  { %v655_v22 = vadd.f32 %v2799_v20, %v654_v18 }
 0x322   :  { %v656_v21 = vpop.f32.mrf.mxu1 }
 0x323   :  { %v657_v24 = vadd.f32 %v2799_v20, %v656_v21 }
 0x325   :  { %v741_v26 = vpack.c.bf16 %v657_v24, %v655_v22 }
 0x327   :  { %754 = vmatpush.bf16.msra.mxu3 %v741_v26 }
 0x32b   :  { %755 = vmatpush.bf16.msra.mxu3 %v740_v28 }
 0x361   :  { %v461_v29 = vpop.xlane.xlu2 %460 }
 0x362   :  { %v471_v30 = vsub.f32 %v450_v62, %v461_v29 }
 0x364   :  { %v475_v32 = vmul.f32 1.442695, %v471_v30 }
 0x366   :  { %2831 = vpow2.f32 %v475_v32 }
 0x369   :  { %v464_v33 = vpop.xlane.xlu0 %463 }
 0x36a   :  { %v472_v35 = vsub.f32 %v452_v2, %v464_v33 }
 0x36c   :  { %v2832_v36 = vpop.eup %2831  ;;  %v477_v37 = vmul.f32 1.442695, %v472_v35 }
 0x36d   :  { %v483_v38 = vsel %vm188_vm1, %v2832_v36, 0.0 }
 0x36e   :  { %2833 = vpow2.f32 %v477_v37  ;;  %484 = vadd.xlane.f32.xlu0 %v483_v38 }
 0x371   :  { %v467_v40 = vpop.xlane.xlu1 %466 }
 0x372   :  { %v473_v41 = vsub.f32 %v455_v8, %v467_v40  ;;  %v572_v8 = vpop.f32.mrf.mxu3 }
 0x373   :  { %v573_v14 = vadd.f32 %v2798_v4, %v572_v8 }
 0x374   :  { %v2834_v34 = vpop.eup %2833  ;;  %v479_v42 = vmul.f32 1.442695, %v473_v41 }
 0x375   :  { %v486_v43 = vsel %vm188_vm1, %v2834_v34, 0.0 }
 0x376   :  { %2835 = vpow2.f32 %v479_v42  ;;  %487 = vadd.xlane.f32.xlu1 %v486_v43 }
 0x379   :  { %v470_v45 = vpop.xlane.xlu2 %469 }
 0x37a   :  { %v474_v46 = vsub.f32 %v457_v13, %v470_v45  ;;  %v574_v12 = vpop.f32.mrf.mxu3 }
 0x37b   :  { %v575_v13 = vadd.f32 %v2798_v4, %v574_v12 }
 0x37c   :  { %v2836_v48 = vpop.eup %2835  ;;  %v481_v39 = vmul.f32 1.442695, %v474_v46 }
 0x37d   :  { %v489_v50 = vsel %vm188_vm1, %v2836_v48, 0.0  ;;  %v660_v16 = vpack.c.bf16 %v575_v13, %v573_v14  ;;  %v2749_v14 = vld [vmem:[%s3839_s12 + $0x8] sm:$0xff] }
 0x37e   :  { %2837 = vpow2.f32 %v481_v39  ;;  %490 = vadd.xlane.f32.xlu2 %v489_v50  ;;  %791 = vmatpush.bf16.msrb.mxu0 %v2749_v14 }
 0x384   :  { %v2838_v51 = vpop.eup %2837 }
 0x385   :  { %v492_v52 = vsel %vm188_vm1, %v2838_v51, 0.0 }
 0x386   :  { %493 = vadd.xlane.f32.xlu0 %v492_v52 }
 0x3e1   :  { %v485_v53 = vpop.xlane.xlu0 %484 }
 0x3e2   :  { %2839 = vrcp.f32 %v485_v53 }
 0x3e8   :  { %v2840_v55 = vpop.eup %2839 }
 0x3e9   :  { %v488_v54 = vpop.xlane.xlu1 %487  ;;  %v499_v57 = vmul.f32 %v2840_v55, %v2832_v36 }
 0x3ea   :  { %2841 = vrcp.f32 %v488_v54 }
 0x3f0   :  { %v2842_v56 = vpop.eup %2841 }
 0x3f1   :  { %v500_v58 = vmul.f32 %v2842_v56, %v2834_v34  ;;  %v491_v49 = vpop.xlane.xlu2 %490 }
 0x3f2   :  { %2843 = vrcp.f32 %v491_v49 }
 0x3f3   :  { %v503_v59 = vpack.c.bf16 %v500_v58, %v499_v57 }
 0x3f5   :  { %2426 = vmatmul.msk.bf16.vlgmr.msrb.gmra.mxu2 %vm188_vm1, %v503_v59 }
 0x3f8   :  { %v2844_v62 = vpop.eup %2843 }
 0x3f9   :  { %v494_v61 = vpop.xlane.xlu0 %493  ;;  %v501_v0 = vmul.f32 %v2844_v62, %v2836_v48 }
 0x3fa   :  { %2845 = vrcp.f32 %v494_v61 }
 0x400   :  { %v2846_v47 = vpop.eup %2845 }
 0x401   :  { %v502_v1 = vmul.f32 %v2846_v47, %v2838_v51 }
 0x403   :  { %v504_v2 = vpack.c.bf16 %v502_v1, %v501_v0 }
 0x405   :  { %2427 = vmatmul.msk.bf16.gmra.mxu2 %vm188_vm1, %v504_v2 }
 0x415   :  { %2473 = vmatmul.msk.bf16.vlgmr.msra.gmra.mxu2 %vm427_vm15, %v659_v9 }
 0x425   :  { %2474 = vmatmul.msk.bf16.gmra.mxu2 %vm427_vm15, %v660_v16 }
 0x478   :  { %v522_v18 = vpop.f32.mrf.mxu2 }
 0x480   :  { %v524_v20 = vpop.f32.mrf.mxu2 }
 0x481   :  { %v532_v21 = vpack.c.bf16 %v524_v20, %v522_v18 }
 0x483   :  { %2489 = vmatmul.msk.bf16.vlgmr.msrb.gmra.mxu1 %vm427_vm15, %v532_v21 }
 0x488   :  { %v527_v22 = vpop.f32.mrf.mxu2 }
 0x490   :  { %v529_v24 = vpop.f32.mrf.mxu2 }
 0x491   :  { %v533_v25 = vpack.c.bf16 %v529_v24, %v527_v22 }
 0x493   :  { %2490 = vmatmul.msk.bf16.gmra.mxu1 %vm427_vm15, %v533_v25 }
 0x498   :  { %v684_v26 = vpop.f32.mrf.mxu2 }
 0x499   :  { %v685_v27 = vadd.f32 %v684_v26, %v3276_v44 }
 0x49b   :  { %v694_v28 = vsel %vm188_vm1, %v685_v27, -inf }
 0x49c   :  { %695 = vmax.xlane.f32.xlu1 %v694_v28 }
 0x4a0   :  { %v686_v29 = vpop.f32.mrf.mxu2 }
 0x4a1   :  { %v687_v30 = vadd.f32 %v686_v29, %v3280_v60 }
 0x4a3   :  { %v697_v32 = vsel %vm188_vm1, %v687_v30, -inf }
 0x4a4   :  { %698 = vmax.xlane.f32.xlu2 %v697_v32 }
 0x4a8   :  { %v689_v33 = vpop.f32.mrf.mxu2 }
 0x4a9   :  { %v690_v35 = vadd.f32 %v689_v33, %v3284_v5 }
 0x4ab   :  { %v700_v36 = vsel %vm188_vm1, %v690_v35, -inf }
 0x4ac   :  { %701 = vmax.xlane.f32.xlu0 %v700_v36 }
 0x4b0   :  { %v691_v37 = vpop.f32.mrf.mxu2 }
 0x4b1   :  { %v692_v38 = vadd.f32 %v691_v37, %v3288_v11 }
 0x4b3   :  { %v703_v40 = vsel %vm188_vm1, %v692_v38, -inf }
 0x4b4   :  { %704 = vmax.xlane.f32.xlu1 %v703_v40 }
 0x500   :  { %v824_v24 = vpop.f32.mrf.mxu1 }
 0x508   :  { %v826_v29 = vpop.f32.mrf.mxu1 }
 0x50f   :  { %v696_v41 = vpop.xlane.xlu1 %695 }
 0x510   :  { %v706_v34 = vsub.f32 %v685_v27, %v696_v41  ;;  %v2800_v27 = vld [vmem:[%s3840_s13] ss:$0 sm:$0xff] }
 0x512   :  { %v710_v42 = vmul.f32 1.442695, %v706_v34 }
 0x514   :  { %2847 = vpow2.f32 %v710_v42 }
 0x517   :  { %v699_v43 = vpop.xlane.xlu2 %698 }
 0x518   :  { %v707_v45 = vsub.f32 %v687_v30, %v699_v43 }
 0x51a   :  { %v2848_v46 = vpop.eup %2847  ;;  %v712_v48 = vmul.f32 1.442695, %v707_v45 }
 0x51b   :  { %v718_v39 = vsel %vm188_vm1, %v2848_v46, 0.0 }
 0x51c   :  { %2849 = vpow2.f32 %v712_v48  ;;  %719 = vadd.xlane.f32.xlu2 %v718_v39 }
 0x51f   :  { %v702_v50 = vpop.xlane.xlu0 %701 }
 0x520   :  { %v708_v51 = vsub.f32 %v690_v35, %v702_v50 }
 0x522   :  { %v2850_v52 = vpop.eup %2849  ;;  %v714_v53 = vmul.f32 1.442695, %v708_v51 }
 0x523   :  { %v721_v54 = vsel %vm188_vm1, %v2850_v52, 0.0 }
 0x524   :  { %2851 = vpow2.f32 %v714_v53  ;;  %722 = vadd.xlane.f32.xlu0 %v721_v54 }
 0x527   :  { %v705_v55 = vpop.xlane.xlu1 %704 }
 0x528   :  { %v709_v56 = vsub.f32 %v692_v38, %v705_v55  ;;  %v829_v38 = vpop.f32.mrf.mxu1 }
 0x52a   :  { %v2852_v57 = vpop.eup %2851  ;;  %v716_v58 = vmul.f32 1.442695, %v709_v56 }
 0x52b   :  { %v724_v59 = vsel %vm188_vm1, %v2852_v57, 0.0 }
 0x52c   :  { %2853 = vpow2.f32 %v716_v58  ;;  %725 = vadd.xlane.f32.xlu1 %v724_v59 }
 0x530   :  { %v831_v45 = vpop.f32.mrf.mxu1 }
 0x532   :  { %v2854_v49 = vpop.eup %2853 }
 0x533   :  { %v727_v61 = vsel %vm188_vm1, %v2854_v49, 0.0 }
 0x534   :  { %728 = vadd.xlane.f32.xlu2 %v727_v61 }
 0x58f   :  { %v720_v62 = vpop.xlane.xlu2 %719 }
 0x590   :  { %2855 = vrcp.f32 %v720_v62 }
 0x596   :  { %v2856_v47 = vpop.eup %2855 }
 0x597   :  { %v723_v63 = vpop.xlane.xlu0 %722  ;;  %v734_v1 = vmul.f32 %v2856_v47, %v2848_v46 }
 0x598   :  { %2857 = vrcp.f32 %v723_v63 }
 0x59e   :  { %v2858_v0 = vpop.eup %2857 }
 0x59f   :  { %v735_v2 = vmul.f32 %v2858_v0, %v2850_v52  ;;  %v726_v4 = vpop.xlane.xlu1 %725 }
 0x5a0   :  { %2859 = vrcp.f32 %v726_v4  ;;  %v2751_v4 = vld [vmem:[%s3843_s16 + $0x8] sm:$0xff] }
 0x5a1   :  { %v738_v3 = vpack.c.bf16 %v735_v2, %v734_v1  ;;  %984 = vmatpush.bf16.msrb.mxu2 %v2751_v4 }
 0x5a3   :  { %2475 = vmatmul.msk.bf16.vlgmr.msra.gmra.mxu3 %vm188_vm1, %v738_v3 }
 0x5a6   :  { %v2860_v7 = vpop.eup %2859 }
 0x5a7   :  { %v729_v6 = vpop.xlane.xlu2 %728  ;;  %v736_v9 = vmul.f32 %v2860_v7, %v2852_v57 }
 0x5a8   :  { %2861 = vrcp.f32 %v729_v6 }
 0x5ae   :  { %v2862_v8 = vpop.eup %2861 }
 0x5af   :  { %v737_v12 = vmul.f32 %v2862_v8, %v2854_v49 }
 0x5b1   :  { %v739_v13 = vpack.c.bf16 %v737_v12, %v736_v9  ;;  %v2750_v9 = vld [vmem:[%s3843_s16] sm:$0xff] }
 0x5b2   :  { %985 = vmatpush.bf16.msrb.mxu2 %v2750_v9 }
 0x5b3   :  { %2476 = vmatmul.msk.bf16.gmra.mxu3 %vm188_vm1, %v739_v13 }
 0x626   :  { %v757_v16 = vpop.f32.mrf.mxu3 }
 0x62e   :  { %v759_v17 = vpop.f32.mrf.mxu3 }
 0x62f   :  { %v767_v18 = vpack.c.bf16 %v759_v17, %v757_v16 }
 0x631   :  { %2483 = vmatmul.msk.bf16.vlgmr.msrb.gmra.mxu0 %vm427_vm15, %v767_v18 }
 0x636   :  { %v762_v20 = vpop.f32.mrf.mxu3 }
 0x63e   :  { %v764_v21 = vpop.f32.mrf.mxu3 }
 0x63f   :  { %v768_v22 = vpack.c.bf16 %v764_v21, %v762_v20 }
 0x641   :  { %2484 = vmatmul.msk.bf16.gmra.mxu0 %vm427_vm15, %v768_v22 }
 0x6ae   :  { %v793_v25 = vpop.f32.mrf.mxu0 }
 0x6af   :  { %v825_v26 = vadd.f32 %v824_v24, %v793_v25 }
 0x6b1   :  { %v834_v28 = vadd.f32 %v825_v26, %v3131_v10 }
 0x6b3   :  { %v3334_v30 = vadd.f32 %v2800_v27, %v834_v28 }
 0x6b5   :  { %v848_v32 = vsel %vm188_vm1, %v3334_v30, 0.0 }
 0x6b6   :  { %849 = vadd.xlane.f32.xlu0 %v848_v32  ;;  %v795_v33 = vpop.f32.mrf.mxu0 }
 0x6b7   :  { %v827_v35 = vadd.f32 %v826_v29, %v795_v33 }
 0x6b9   :  { %v835_v36 = vadd.f32 %v827_v35, %v3138_v15 }
 0x6bb   :  { %v3339_v37 = vadd.f32 %v2800_v27, %v835_v36 }
 0x6bd   :  { %v851_v40 = vsel %vm188_vm1, %v3339_v37, 0.0 }
 0x6be   :  { %852 = vadd.xlane.f32.xlu1 %v851_v40  ;;  %v798_v41 = vpop.f32.mrf.mxu0 }
 0x6bf   :  { %v830_v10 = vadd.f32 %v829_v38, %v798_v41  ;;  %v2801_v41 = vld [vmem:[%s3841_s14] ss:$0 sm:$0xff] }
 0x6c1   :  { %v836_v34 = vadd.f32 %v830_v10, %v3142_v19 }
 0x6c3   :  { %v3344_v42 = vadd.f32 %v2800_v27, %v836_v34 }
 0x6c5   :  { %v854_v43 = vsel %vm188_vm1, %v3344_v42, 0.0 }
 0x6c6   :  { %v800_v46 = vpop.f32.mrf.mxu0  ;;  %855 = vadd.xlane.f32.xlu2 %v854_v43 }
 0x6c7   :  { %v832_v15 = vadd.f32 %v831_v45, %v800_v46 }
 0x6c9   :  { %v837_v48 = vadd.f32 %v832_v15, %v3146_v23 }
 0x6cb   :  { %v3349_v39 = vadd.f32 %v2800_v27, %v837_v48  ;;  %v2802_v48 = vld [vmem:[%s3842_s15] ss:$0 sm:$0xff] }
 0x6cd   :  { %v857_v50 = vsel %vm188_vm1, %v3349_v39, 0.0 }
 0x6ce   :  { %858 = vadd.xlane.f32.xlu0 %v857_v50 }
 0x729   :  { %v850_v51 = vpop.xlane.xlu0 %849 }
 0x72a   :  { %v860_v19 = vmul.f32 %v850_v51, %v3150_v31 }
 0x72c   :  { %v864_v52 = vsub.f32 %v3334_v30, %v860_v19 }
 0x72e   :  { %v868_v53 = vmul.f32 %v864_v52, %v864_v52 }
 0x730   :  { %v872_v54 = vsel %vm188_vm1, %v868_v53, 0.0 }
 0x731   :  { %873 = vadd.xlane.f32.xlu1 %v872_v54  ;;  %v853_v55 = vpop.xlane.xlu1 %852 }
 0x732   :  { %v861_v56 = vmul.f32 %v853_v55, %v3150_v31 }
 0x734   :  { %v3358_v23 = vsub.f32 %v3339_v37, %v861_v56 }
 0x736   :  { %v869_v57 = vmul.f32 %v3358_v23, %v3358_v23 }
 0x738   :  { %v875_v58 = vsel %vm188_vm1, %v869_v57, 0.0 }
 0x739   :  { %876 = vadd.xlane.f32.xlu2 %v875_v58  ;;  %v856_v59 = vpop.xlane.xlu2 %855 }
 0x73a   :  { %v862_v49 = vmul.f32 %v856_v59, %v3150_v31 }
 0x73c   :  { %v3365_v61 = vsub.f32 %v3344_v42, %v862_v49 }
 0x73e   :  { %v870_v62 = vmul.f32 %v3365_v61, %v3365_v61 }
 0x740   :  { %v878_v63 = vsel %vm188_vm1, %v870_v62, 0.0 }
 0x741   :  { %v859_v47 = vpop.xlane.xlu0 %858  ;;  %879 = vadd.xlane.f32.xlu0 %v878_v63 }
 0x742   :  { %v863_v0 = vmul.f32 %v859_v47, %v3150_v31 }
 0x744   :  { %v3372_v1 = vsub.f32 %v3349_v39, %v863_v0 }
 0x746   :  { %v871_v2 = vmul.f32 %v3372_v1, %v3372_v1 }
 0x748   :  { %v881_v3 = vsel %vm188_vm1, %v871_v2, 0.0 }
 0x749   :  { %882 = vadd.xlane.f32.xlu1 %v881_v3 }
 0x7a4   :  { %v874_v6 = vpop.xlane.xlu1 %873 }
 0x7a5   :  { %v884_v7 = vmul.f32 %v874_v6, %v3150_v31 }
 0x7a7   :  { %v888_v8 = vadd.f32 1e-06, %v884_v7 }
 0x7a9   :  { %2863 = vrsqrt.f32 %v888_v8  ;;  %vm898_vm6 = vweird.f32 %v888_v8 }
 0x7ac   :  { %v877_v12 = vpop.xlane.xlu2 %876 }
 0x7ad   :  { %v885_v13 = vmul.f32 %v877_v12, %v3150_v31  ;;  %v2759_v12 = vld [vmem:[%s3845_s18 + $0x38] sm:$0xff] }
 0x7ae   :  { %1103 = vmatpush.bf16.msrb.mxu3 %v2759_v12  ;;  %v2804_v12 = vld [vmem:[%s3846_s19] ss:$0 sm:$0xff] }
 0x7af   :  { %v2864_v14 = vpop.eup %2863  ;;  %v889_v16 = vadd.f32 1e-06, %v885_v13  ;;  %v2756_v13 = vld [vmem:[%s3845_s18 + $0x20] sm:$0xff] }
 0x7b0   :  { %v893_v17 = vmul.f32 %v2864_v14, %v888_v8  ;;  %vm899_vm5 = vweird.f32 %v2864_v14 }
 0x7b1   :  { %2865 = vrsqrt.f32 %v889_v16  ;;  %vm900_vm7 = vmor %vm898_vm6, %vm899_vm5  ;;  %vm908_vm9 = vweird.f32 %v889_v16 }
 0x7b2   :  { %v894_v18 = vmul.f32 %v2864_v14, %v893_v17  ;;  %v2753_v17 = vld [vmem:[%s3845_s18 + $0x8] sm:$0xff] }
 0x7b4   :  { %v895_v20 = vmul.f32 0.5, %v894_v18  ;;  %v880_v21 = vpop.xlane.xlu0 %879  ;;  %v2803_v18 = vld [vmem:[%s3844_s17] ss:$0 sm:$0xff] }
 0x7b5   :  { %v886_v22 = vmul.f32 %v880_v21, %v3150_v31  ;;  %v2752_v21 = vld [vmem:[%s3845_s18] sm:$0xff] }
 0x7b6   :  { %v896_v24 = vsub.f32 1.5, %v895_v20 }
 0x7b7   :  { %v2866_v25 = vpop.eup %2865  ;;  %v890_v26 = vadd.f32 1e-06, %v886_v22 }
 0x7b8   :  { %v897_v27 = vmul.f32 %v2864_v14, %v896_v24  ;;  %v903_v28 = vmul.f32 %v2866_v25, %v889_v16  ;;  %vm909_vm8 = vweird.f32 %v2866_v25  ;;  %v2754_v16 = vld [vmem:[%s3845_s18 + $0x10] sm:$0xff] }
 0x7b9   :  { %2867 = vrsqrt.f32 %v890_v26  ;;  %vm910_vm10 = vmor %vm908_vm9, %vm909_vm8  ;;  %vm918_vm12 = vweird.f32 %v890_v26 }
 0x7ba   :  { %v904_v29 = vmul.f32 %v2866_v25, %v903_v28  ;;  %v901_v32 = vsel %vm900_vm7, %v2864_v14, %v897_v27  ;;  %v2755_v14 = vld [vmem:[%s3845_s18 + $0x18] sm:$0xff] }
 0x7bb   :  { %v932_v10 = vmul.f32 %v901_v32, %v864_v52 }
 0x7bc   :  { %v905_v33 = vmul.f32 0.5, %v904_v29  ;;  %v883_v35 = vpop.xlane.xlu1 %882 }
 0x7bd   :  { %v887_v36 = vmul.f32 %v883_v35, %v3150_v31  ;;  %v939_v50 = vmul.f32 %v2801_v41, %v932_v10 }
 0x7be   :  { %v906_v38 = vsub.f32 1.5, %v905_v33 }
 0x7bf   :  { %v2868_v40 = vpop.eup %2867  ;;  %v891_v34 = vadd.f32 1e-06, %v887_v36  ;;  %v946_v52 = vadd.f32 %v2802_v48, %v939_v50 }
 0x7c0   :  { %v907_v43 = vmul.f32 %v2866_v25, %v906_v38  ;;  %v913_v45 = vmul.f32 %v2868_v40, %v890_v26  ;;  %vm919_vm11 = vweird.f32 %v2868_v40 }
 0x7c1   :  { %2869 = vrsqrt.f32 %v891_v34  ;;  %vm920_vm13 = vmor %vm918_vm12, %vm919_vm11  ;;  %vm928_vm0 = vweird.f32 %v891_v34 }
 0x7c2   :  { %v911_v46 = vsel %vm910_vm10, %v2866_v25, %v907_v43  ;;  %v914_v15 = vmul.f32 %v2868_v40, %v913_v45 }
 0x7c3   :  { %v933_v51 = vmul.f32 %v911_v46, %v3358_v23 }
 0x7c4   :  { %v915_v19 = vmul.f32 0.5, %v914_v15 }
 0x7c5   :  { %v940_v53 = vmul.f32 %v2801_v41, %v933_v51 }
 0x7c6   :  { %v916_v54 = vsub.f32 1.5, %v915_v19 }
 0x7c7   :  { %v2870_v55 = vpop.eup %2869  ;;  %v947_v56 = vadd.f32 %v2802_v48, %v940_v53 }
 0x7c8   :  { %v917_v57 = vmul.f32 %v2868_v40, %v916_v54  ;;  %v923_v58 = vmul.f32 %v2870_v55, %v891_v34  ;;  %vm929_vm14 = vweird.f32 %v2870_v55 }
 0x7c9   :  { %v950_v59 = vpack.c.bf16 %v947_v56, %v946_v52  ;;  %vm930_vm2 = vmor %vm928_vm0, %vm929_vm14 }
 0x7ca   :  { %v924_v49 = vmul.f32 %v2870_v55, %v923_v58  ;;  %v921_v62 = vsel %vm920_vm13, %v2868_v40, %v917_v57 }
 0x7cb   :  { %2499 = vmatmul.msk.bf16.vlgmr.msrb.gmra.mxu2 %vm188_vm1, %v950_v59  ;;  %v934_v23 = vmul.f32 %v921_v62, %v3365_v61  ;;  %v2758_v61 = vld [vmem:[%s3845_s18 + $0x30] sm:$0xff] }
 0x7cc   :  { %v925_v63 = vmul.f32 0.5, %v924_v49  ;;  %1104 = vmatpush.bf16.msrb.mxu3 %v2758_v61 }
 0x7cd   :  { %v941_v4 = vmul.f32 %v2801_v41, %v934_v23 }
 0x7ce   :  { %v926_v47 = vsub.f32 1.5, %v925_v63 }
 0x7cf   :  { %v948_v7 = vadd.f32 %v2802_v48, %v941_v4 }
 0x7d0   :  { %v927_v0 = vmul.f32 %v2870_v55, %v926_v47 }
 0x7d2   :  { %v931_v2 = vsel %vm930_vm2, %v2870_v55, %v927_v0 }
 0x7d3   :  { %v935_v3 = vmul.f32 %v931_v2, %v3372_v1  ;;  %v2757_v1 = vld [vmem:[%s3845_s18 + $0x28] sm:$0xff] }
 0x7d4   :  { %1105 = vmatpush.bf16.msrb.mxu3 %v2757_v1 }
 0x7d5   :  { %v942_v6 = vmul.f32 %v2801_v41, %v935_v3 }
 0x7d7   :  { %v949_v8 = vadd.f32 %v2802_v48, %v942_v6 }
 0x7d8   :  { %1106 = vmatpush.bf16.msrb.mxu3 %v2756_v13 }
 0x7d9   :  { %v951_v9 = vpack.c.bf16 %v949_v8, %v948_v7 }
 0x7db   :  { %2500 = vmatmul.msk.bf16.gmra.mxu2 %vm188_vm1, %v951_v9 }
 0x7dc   :  { %1107 = vmatpush.bf16.msrb.mxu3 %v2755_v14 }
 0x7e0   :  { %1108 = vmatpush.bf16.msrb.mxu3 %v2754_v16 }
 0x7e4   :  { %1109 = vmatpush.bf16.msrb.mxu3 %v2753_v17 }
 0x7e8   :  { %1110 = vmatpush.bf16.msrb.mxu3 %v2752_v21 }
 0x84e   :  { %v987_v20 = vpop.f32.mrf.mxu2 }
 0x84f   :  { %v988_v22 = vadd.f32 %v2803_v18, %v987_v20 }
 0x851   :  { %v997_v24 = vmul.f32 %v988_v22, %v988_v22 }
 0x853   :  { %v1001_v25 = vmul.f32 %v997_v24, %v988_v22 }
 0x855   :  { %v1005_v26 = vmul.f32 0.044715, %v1001_v25 }
 0x856   :  { %v989_v27 = vpop.f32.mrf.mxu2 }
 0x857   :  { %v1009_v28 = vadd.f32 %v1005_v26, %v988_v22  ;;  %v990_v29 = vadd.f32 %v2803_v18, %v989_v27 }
 0x859   :  { %v1013_v32 = vmul.f32 0.7978846, %v1009_v28  ;;  %v998_v33 = vmul.f32 %v990_v29, %v990_v29 }
 0x85b   :  { %v1002_v35 = vmul.f32 %v998_v33, %v990_v29  ;;  %2871 = vtanh.f32 %v1013_v32 }
 0x85d   :  { %v1006_v36 = vmul.f32 0.044715, %v1002_v35 }
 0x85e   :  { %v992_v38 = vpop.f32.mrf.mxu2 }
 0x85f   :  { %v1010_v40 = vadd.f32 %v1006_v36, %v990_v29  ;;  %v993_v41 = vadd.f32 %v2803_v18, %v992_v38 }
 0x861   :  { %v1014_v10 = vmul.f32 0.7978846, %v1010_v40  ;;  %v999_v34 = vmul.f32 %v993_v41, %v993_v41  ;;  %v2872_v43 = vpop.eup %2871 }
 0x862   :  { %v1021_v15 = vadd.f32 1.0, %v2872_v43 }
 0x863   :  { %2873 = vtanh.f32 %v1014_v10  ;;  %v1003_v45 = vmul.f32 %v999_v34, %v993_v41 }
 0x864   :  { %v1025_v55 = vmul.f32 0.5, %v1021_v15 }
 0x865   :  { %v1007_v46 = vmul.f32 0.044715, %v1003_v45 }
 0x866   :  { %v994_v48 = vpop.f32.mrf.mxu2  ;;  %v1029_v59 = vmul.f32 %v1025_v55, %v988_v22 }
 0x867   :  { %v1011_v50 = vadd.f32 %v1007_v46, %v993_v41  ;;  %v995_v51 = vadd.f32 %v2803_v18, %v994_v48 }
 0x869   :  { %v2874_v19 = vpop.eup %2873  ;;  %v1000_v53 = vmul.f32 %v995_v51, %v995_v51  ;;  %v1015_v54 = vmul.f32 0.7978846, %v1011_v50 }
 0x86a   :  { %v1022_v52 = vadd.f32 1.0, %v2874_v19  ;;  %v2761_v19 = vld [vmem:[%s3881_s30 + $0x28] sm:$0xff] }
 0x86b   :  { %v1004_v56 = vmul.f32 %v1000_v53, %v995_v51  ;;  %2875 = vtanh.f32 %v1015_v54  ;;  %v2763_v53 = vld [vmem:[%s3882_s10 + $0x28] sm:$0xff]  ;;  %1268 = vmatpush.bf16.msra.mxu0 %v2761_v19 }
 0x86c   :  { %v1026_v57 = vmul.f32 0.5, %v1022_v52  ;;  %v2765_v54 = vld [vmem:[%s3883_s27 + $0x28] sm:$0xff]  ;;  %1309 = vmatpush.bf16.msra.mxu1 %v2763_v53 }
 0x86d   :  { %v1008_v58 = vmul.f32 0.044715, %v1004_v56  ;;  %1350 = vmatpush.bf16.msra.mxu2 %v2765_v54 }
 0x86e   :  { %v1030_v49 = vmul.f32 %v1026_v57, %v990_v29  ;;  %v2760_v57 = vld [vmem:[%s3881_s30 + $0x20] sm:$0xff] }
 0x86f   :  { %v1012_v62 = vadd.f32 %v1008_v58, %v995_v51  ;;  %v2762_v58 = vld [vmem:[%s3882_s10 + $0x20] sm:$0xff]  ;;  %1269 = vmatpush.bf16.msra.mxu0 %v2760_v57 }
 0x870   :  { %v1033_v63 = vpack.c.bf16 %v1030_v49, %v1029_v59  ;;  %v2764_v59 = vld [vmem:[%s3883_s27 + $0x20] sm:$0xff]  ;;  %1310 = vmatpush.bf16.msra.mxu1 %v2762_v58 }
 0x871   :  { %v1016_v47 = vmul.f32 0.7978846, %v1012_v62  ;;  %v2876_v23 = vpop.eup %2875  ;;  %1351 = vmatpush.bf16.msra.mxu2 %v2764_v59 }
 0x872   :  { %1111 = vmatmul.bf16.vlgmr.msrb.gmra.mxu3 %v1033_v63  ;;  %v1023_v0 = vadd.f32 1.0, %v2876_v23 }
 0x873   :  { %2877 = vtanh.f32 %v1016_v47 }
 0x874   :  { %v1027_v4 = vmul.f32 0.5, %v1023_v0 }
 0x876   :  { %v1031_v7 = vmul.f32 %v1027_v4, %v993_v41 }
 0x879   :  { %v2878_v2 = vpop.eup %2877 }
 0x87a   :  { %v1024_v3 = vadd.f32 1.0, %v2878_v2 }
 0x87c   :  { %v1028_v6 = vmul.f32 0.5, %v1024_v3 }
 0x87e   :  { %v1032_v8 = vmul.f32 %v1028_v6, %v995_v51 }
 0x880   :  { %v1034_v9 = vpack.c.bf16 %v1032_v8, %v1031_v7 }
 0x882   :  { %1116 = vmatmul.bf16.gmra.mxu3 %v1034_v9 }
 0x8f5   :  { %v1112_v61 = vpop.f32.mrf.mxu3 }
 0x8f6   :  { %v1113_v1 = vadd.f32 %v2804_v12, %v1112_v61 }
 0x8f8   :  { %v3429_v13 = vadd.f32 %v1113_v1, %v3334_v30 }
 0x8fa   :  { %v1130_v14 = vsel %vm188_vm1, %v3429_v13, 0.0 }
 0x8fb   :  { %1131 = vadd.xlane.f32.xlu2 %v1130_v14 }
 0x8fd   :  { %v1114_v16 = vpop.f32.mrf.mxu3 }
 0x8fe   :  { %v1115_v17 = vadd.f32 %v2804_v12, %v1114_v16 }
 0x900   :  { %v3434_v18 = vadd.f32 %v1115_v17, %v3339_v37  ;;  %v2768_v17 = vld [vmem:[%s3881_s30 + $0x38] sm:$0xff] }
 0x901   :  { %1560 = vmatpush.bf16.msrb.mxu1 %v2768_v17 }
 0x902   :  { %v1133_v20 = vsel %vm188_vm1, %v3434_v18, 0.0 }
 0x903   :  { %1134 = vadd.xlane.f32.xlu0 %v1133_v20  ;;  %v2770_v20 = vld [vmem:[%s3882_s10 + $0x38] sm:$0xff] }
 0x904   :  { %1601 = vmatpush.bf16.msrb.mxu2 %v2770_v20 }
 0x905   :  { %v1117_v21 = vpop.f32.mrf.mxu3 }
 0x906   :  { %v1118_v22 = vadd.f32 %v2804_v12, %v1117_v21 }
 0x908   :  { %v3439_v24 = vadd.f32 %v1118_v22, %v3344_v42 }
 0x90a   :  { %v1136_v30 = vsel %vm188_vm1, %v3439_v24, 0.0 }
 0x90b   :  { %1137 = vadd.xlane.f32.xlu1 %v1136_v30  ;;  %v2767_v30 = vld [vmem:[%s3881_s30 + $0x30] sm:$0xff] }
 0x90c   :  { %1561 = vmatpush.bf16.msrb.mxu1 %v2767_v30 }
 0x90d   :  { %v1119_v25 = vpop.f32.mrf.mxu3 }
 0x90e   :  { %v1120_v26 = vadd.f32 %v2804_v12, %v1119_v25  ;;  %v2769_v25 = vld [vmem:[%s3882_s10 + $0x30] sm:$0xff] }
 0x90f   :  { %1602 = vmatpush.bf16.msrb.mxu2 %v2769_v25 }
 0x910   :  { %v3444_v27 = vadd.f32 %v1120_v26, %v3349_v39 }
 0x912   :  { %v1139_v37 = vsel %vm188_vm1, %v3444_v27, 0.0 }
 0x913   :  { %1140 = vadd.xlane.f32.xlu2 %v1139_v37  ;;  %v2805_v37 = vld [vmem:[%s3884_s4 + $0x1] ss:$0 sm:$0xff] }
 0x96e   :  { %v1132_v28 = vpop.xlane.xlu2 %1131 }
 0x96f   :  { %v1142_v29 = vmul.f32 %v1132_v28, %v3150_v31 }
 0x971   :  { %v3450_v32 = vsub.f32 %v3429_v13, %v1142_v29 }
 0x973   :  { %v1150_v42 = vmul.f32 %v3450_v32, %v3450_v32 }
 0x975   :  { %v1154_v33 = vsel %vm188_vm1, %v1150_v42, 0.0 }
 0x976   :  { %v1135_v35 = vpop.xlane.xlu0 %1134  ;;  %1155 = vadd.xlane.f32.xlu0 %v1154_v33 }
 0x977   :  { %v1143_v39 = vmul.f32 %v1135_v35, %v3150_v31 }
 0x979   :  { %v3457_v36 = vsub.f32 %v3434_v18, %v1143_v39 }
 0x97b   :  { %v1151_v38 = vmul.f32 %v3457_v36, %v3457_v36 }
 0x97d   :  { %v1157_v40 = vsel %vm188_vm1, %v1151_v38, 0.0  ;;  %v2806_v38 = vld [vmem:[%s3885_s9 + $0x1] ss:$0 sm:$0xff] }
 0x97e   :  { %v1138_v41 = vpop.xlane.xlu1 %1137  ;;  %1158 = vadd.xlane.f32.xlu1 %v1157_v40 }
 0x97f   :  { %v1144_v10 = vmul.f32 %v1138_v41, %v3150_v31 }
 0x981   :  { %v3464_v34 = vsub.f32 %v3439_v24, %v1144_v10 }
 0x983   :  { %v1152_v43 = vmul.f32 %v3464_v34, %v3464_v34 }
 0x985   :  { %v1160_v45 = vsel %vm188_vm1, %v1152_v43, 0.0 }
 0x986   :  { %1161 = vadd.xlane.f32.xlu2 %v1160_v45  ;;  %v1141_v46 = vpop.xlane.xlu2 %1140 }
 0x987   :  { %v1145_v15 = vmul.f32 %v1141_v46, %v3150_v31 }
 0x989   :  { %v3471_v48 = vsub.f32 %v3444_v27, %v1145_v15 }
 0x98b   :  { %v1153_v50 = vmul.f32 %v3471_v48, %v3471_v48 }
 0x98d   :  { %v1163_v51 = vsel %vm188_vm1, %v1153_v50, 0.0 }
 0x98e   :  { %1164 = vadd.xlane.f32.xlu0 %v1163_v51 }
 0x9e9   :  { %v1156_v55 = vpop.xlane.xlu0 %1155 }
 0x9ea   :  { %v1166_v52 = vmul.f32 %v1156_v55, %v3150_v31 }
 0x9ec   :  { %v1170_v56 = vadd.f32 1e-06, %v1166_v52 }
 0x9ee   :  { %2879 = vrsqrt.f32 %v1170_v56  ;;  %vm1180_vm4 = vweird.f32 %v1170_v56 }
 0x9f1   :  { %v1159_v49 = vpop.xlane.xlu1 %1158 }
 0x9f2   :  { %v1167_v62 = vmul.f32 %v1159_v49, %v3150_v31 }
 0x9f4   :  { %v2880_v63 = vpop.eup %2879  ;;  %v1171_v47 = vadd.f32 1e-06, %v1167_v62 }
 0x9f5   :  { %v1175_v23 = vmul.f32 %v2880_v63, %v1170_v56  ;;  %vm1181_vm3 = vweird.f32 %v2880_v63 }
 0x9f6   :  { %2881 = vrsqrt.f32 %v1171_v47  ;;  %vm1182_vm5 = vmor %vm1180_vm4, %vm1181_vm3  ;;  %vm1190_vm7 = vweird.f32 %v1171_v47 }
 0x9f7   :  { %v1176_v0 = vmul.f32 %v2880_v63, %v1175_v23 }
 0x9f9   :  { %v1177_v2 = vmul.f32 0.5, %v1176_v0  ;;  %v1162_v3 = vpop.xlane.xlu2 %1161 }
 0x9fa   :  { %v1168_v4 = vmul.f32 %v1162_v3, %v3150_v31 }
 0x9fb   :  { %v1178_v6 = vsub.f32 1.5, %v1177_v2 }
 0x9fc   :  { %v2882_v7 = vpop.eup %2881  ;;  %v1172_v8 = vadd.f32 1e-06, %v1168_v4  ;;  %v2808_v4 = vld [vmem:[%s3886_s6 + $0x2] ss:$0 sm:$0xff] }
 0x9fd   :  { %v1179_v9 = vmul.f32 %v2880_v63, %v1178_v6  ;;  %v1185_v12 = vmul.f32 %v2882_v7, %v1171_v47  ;;  %vm1191_vm6 = vweird.f32 %v2882_v7 }
 0x9fe   :  { %2883 = vrsqrt.f32 %v1172_v8  ;;  %vm1192_vm8 = vmor %vm1190_vm7, %vm1191_vm6  ;;  %vm1200_vm10 = vweird.f32 %v1172_v8 }
 0x9ff   :  { %v1186_v61 = vmul.f32 %v2882_v7, %v1185_v12  ;;  %v1183_v1 = vsel %vm1182_vm5, %v2880_v63, %v1179_v9 }
 0xa00   :  { %v1214_v28 = vmul.f32 %v1183_v1, %v3450_v32 }
 0xa01   :  { %v1187_v14 = vmul.f32 0.5, %v1186_v61  ;;  %v1165_v16 = vpop.xlane.xlu0 %1164 }
 0xa02   :  { %v1169_v21 = vmul.f32 %v1165_v16, %v3150_v31  ;;  %v1221_v40 = vmul.f32 %v2805_v37, %v1214_v28  ;;  %v2807_v28 = vld [vmem:[%s3887_s5 + $0x2] ss:$0 sm:$0xff] }
 0xa03   :  { %v1188_v22 = vsub.f32 1.5, %v1187_v14  ;;  %v2809_v14 = vld [vmem:[%s3838_s11 + $0x2] ss:$0 sm:$0xff] }
 0xa04   :  { %v2884_v26 = vpop.eup %2883  ;;  %v1173_v29 = vadd.f32 1e-06, %v1169_v21  ;;  %v1228_v46 = vadd.f32 %v2806_v38, %v1221_v40 }
 0xa05   :  { %v1189_v42 = vmul.f32 %v2882_v7, %v1188_v22  ;;  %v1195_v33 = vmul.f32 %v2884_v26, %v1172_v8  ;;  %vm1201_vm9 = vweird.f32 %v2884_v26 }
 0xa06   :  { %2885 = vrsqrt.f32 %v1173_v29  ;;  %vm1202_vm11 = vmor %vm1200_vm10, %vm1201_vm9  ;;  %vm1210_vm13 = vweird.f32 %v1173_v29 }
 0xa07   :  { %v1193_v35 = vsel %vm1192_vm8, %v2882_v7, %v1189_v42  ;;  %v1196_v39 = vmul.f32 %v2884_v26, %v1195_v33  ;;  %v2772_v42 = vld [vmem:[%s3883_s27 + $0x38] sm:$0xff] }
 0xa08   :  { %v1215_v41 = vmul.f32 %v1193_v35, %v3457_v36 }
 0xa09   :  { %v1197_v10 = vmul.f32 0.5, %v1196_v39 }
 0xa0a   :  { %v1222_v43 = vmul.f32 %v2805_v37, %v1215_v41 }
 0xa0b   :  { %v1198_v32 = vsub.f32 1.5, %v1197_v10 }
 0xa0c   :  { %v2886_v45 = vpop.eup %2885  ;;  %v1229_v15 = vadd.f32 %v2806_v38, %v1222_v43 }
 0xa0d   :  { %v1199_v50 = vmul.f32 %v2884_v26, %v1198_v32  ;;  %v1205_v51 = vmul.f32 %v2886_v45, %v1173_v29  ;;  %vm1211_vm12 = vweird.f32 %v2886_v45 }
 0xa0e   :  { %v3518_v19 = vpack.c.bf16 %v1229_v15, %v1228_v46  ;;  %vm1212_vm14 = vmor %vm1210_vm13, %vm1211_vm12 }
 0xa0f   :  { %v1206_v53 = vmul.f32 %v2886_v45, %v1205_v51  ;;  %v1203_v36 = vsel %vm1202_vm11, %v2884_v26, %v1199_v50  ;;  %v2811_v51 = vld [vmem:[%s3886_s6 + $0x3] ss:$0 sm:$0xff] }
 0xa10   :  { %2548 = vmatmul.msk.bf16.vlgmr.msra.gmra.mxu0 %vm188_vm1, %v3518_v19  ;;  %2563 = vmatmul.msk.bf16.vlgmr.msra.gmra.mxu1 %vm188_vm1, %v3518_v19  ;;  %v1216_v52 = vmul.f32 %v1203_v36, %v3464_v34 }
 0xa11   :  { %v1207_v54 = vmul.f32 0.5, %v1206_v53  ;;  %2578 = vmatmul.msk.bf16.vlgmr.msra.gmra.mxu2 %vm188_vm1, %v3518_v19 }
 0xa12   :  { %v1223_v58 = vmul.f32 %v2805_v37, %v1216_v52 }
 0xa13   :  { %v1208_v55 = vsub.f32 1.5, %v1207_v54 }
 0xa14   :  { %v1230_v62 = vadd.f32 %v2806_v38, %v1223_v58 }
 0xa15   :  { %v1209_v56 = vmul.f32 %v2886_v45, %v1208_v55 }
 0xa17   :  { %v1213_v57 = vsel %vm1212_vm14, %v2886_v45, %v1209_v56 }
 0xa18   :  { %v1217_v59 = vmul.f32 %v1213_v57, %v3471_v48 }
 0xa1a   :  { %v1224_v49 = vmul.f32 %v2805_v37, %v1217_v59 }
 0xa1c   :  { %v1231_v63 = vadd.f32 %v2806_v38, %v1224_v49  ;;  %v2771_v38 = vld [vmem:[%s3883_s27 + $0x30] sm:$0xff]  ;;  %s2357_s27 = sshll.u32 %s3889_s29, 4  ;;  %s2358_s27 = int_to_ptr.hbm [resolvable:$true] %s2357_s27 }
 0xa1e   :  { %v3528_v47 = vpack.c.bf16 %v1231_v63, %v1230_v62 }
 0xa20   :  { %2549 = vmatmul.msk.bf16.gmra.mxu0 %vm188_vm1, %v3528_v47  ;;  %2564 = vmatmul.msk.bf16.gmra.mxu1 %vm188_vm1, %v3528_v47 }
 0xa21   :  { %2579 = vmatmul.msk.bf16.gmra.mxu2 %vm188_vm1, %v3528_v47 }
 0xa30   :  { %2599 = vmatmul.msk.bf16.vlgmr.msrb.gmra.mxu1 %vm188_vm1, %v3518_v19 }
 0xa31   :  { %2614 = vmatmul.msk.bf16.vlgmr.msrb.gmra.mxu2 %vm188_vm1, %v3518_v19 }
 0xa40   :  { %2600 = vmatmul.msk.bf16.gmra.mxu1 %vm188_vm1, %v3528_v47 }
 0xa41   :  { %2615 = vmatmul.msk.bf16.gmra.mxu2 %vm188_vm1, %v3528_v47 }
 0xa8d   :  { %v1312_v34 = vpop.f32.mrf.mxu1  ;;  %v1271_v3 = vpop.f32.mrf.mxu0 }
 0xa8e   :  { %v1313_v16 = vadd.f32 %v2808_v4, %v1312_v34  ;;  %v1272_v40 = vadd.f32 %v2807_v28, %v1271_v3 }
 0xa94   :  { %v1353_v48 = vpop.f32.mrf.mxu2 }
 0xa95   :  { %v1314_v23 = vpop.f32.mrf.mxu1  ;;  %v1273_v20 = vpop.f32.mrf.mxu0  ;;  %v1354_v37 = vadd.f32 %v2809_v14, %v1353_v48 }
 0xa96   :  { %v1315_v61 = vadd.f32 %v2808_v4, %v1314_v23  ;;  %v1274_v35 = vadd.f32 %v2807_v28, %v1273_v20 }
 0xa98   :  { %v1365_v30 = vpack.c.bf16 %v1315_v61, %v1313_v16  ;;  %v1363_v10 = vpack.c.bf16 %v1274_v35, %v1272_v40 }
 0xa9a   :  { %v1374_v29 = vsel %vm427_vm15, %v1365_v30, 0 }
 0xa9c   :  { %v1355_v0 = vpop.f32.mrf.mxu2 }
 0xa9d   :  { %v1317_v2 = vpop.f32.mrf.mxu1  ;;  %v1356_v25 = vadd.f32 %v2809_v14, %v1355_v0  ;;  %v1276_v41 = vpop.f32.mrf.mxu0 }
 0xa9e   :  { %v1318_v8 = vadd.f32 %v2808_v4, %v1317_v2  ;;  %v1277_v15 = vadd.f32 %v2807_v28, %v1276_v41 }
 0xa9f   :  { %v1500_v33 = vpack.c.bf16 %v1356_v25, %v1354_v37 }
 0xaa4   :  { %v1358_v6 = vpop.f32.mrf.mxu2 }
 0xaa5   :  { %v1319_v7 = vpop.f32.mrf.mxu1  ;;  %v1359_v21 = vadd.f32 %v2809_v14, %v1358_v6  ;;  %v1278_v32 = vpop.f32.mrf.mxu0 }
 0xaa6   :  { %v1320_v9 = vadd.f32 %v2808_v4, %v1319_v7  ;;  %v1279_v45 = vadd.f32 %v2807_v28, %v1278_v32 }
 0xaa8   :  { %v1366_v12 = vpack.c.bf16 %v1320_v9, %v1318_v8  ;;  %v1364_v50 = vpack.c.bf16 %v1279_v45, %v1277_v15  ;;  %v2812_v9 = vld [vmem:[%s3838_s11 + $0x3] ss:$0 sm:$0xff] }
 0xaaa   :  { %v1377_v1 = vsel %vm427_vm15, %v1366_v12, 0 }
 0xaab   :  { %1385 = vmatpush.bf16.xpose.msra.mxu3 %v1377_v1 }
 0xaac   :  { %v1360_v17 = vpop.f32.mrf.mxu2 }
 0xaad   :  { %v1361_v22 = vadd.f32 %v2809_v14, %v1360_v17 }
 0xaaf   :  { %v1501_v26 = vpack.c.bf16 %v1361_v22, %v1359_v21 }
 0xab1   :  { %1514 = vmatpush.bf16.msrb.mxu0 %v1501_v26 }
 0xab3   :  { %1386 = vmatpush.bf16.xpose.msra.mxu3 %v1374_v29 }
 0xab4   :  { %v1604_v39 = vpop.f32.mrf.mxu2 }
 0xab5   :  { %1515 = vmatpush.bf16.msrb.mxu0 %v1500_v33  ;;  %v1605_v57 = vadd.f32 %v2811_v51, %v1604_v39 }
 0xaba   :  { %2580 = vmatmul.msk.bf16.vlgmr.msra.gmra.mxu3 %vm427_vm15, %v1363_v10 }
 0xabb   :  { %1642 = vmatpush.bf16.msrb.mxu3 %v2772_v42 }
 0xabc   :  { %v1606_v43 = vpop.f32.mrf.mxu2 }
 0xabd   :  { %v1607_v52 = vadd.f32 %v2811_v51, %v1606_v43 }
 0xabf   :  { %1643 = vmatpush.bf16.msrb.mxu3 %v2771_v38  ;;  %v1657_v58 = vpack.c.bf16 %v1607_v52, %v1605_v57 }
 0xac1   :  { %v1666_v59 = vsel %vm427_vm15, %v1657_v58, 0 }
 0xac4   :  { %v1609_v46 = vpop.f32.mrf.mxu2 }
 0xac5   :  { %v1610_v36 = vadd.f32 %v2811_v51, %v1609_v46 }
 0xaca   :  { %2581 = vmatmul.msk.bf16.gmra.mxu3 %vm427_vm15, %v1364_v50 }
 0xacc   :  { %v1611_v53 = vpop.f32.mrf.mxu2 }
 0xacd   :  { %v1612_v54 = vadd.f32 %v2811_v51, %v1611_v53 }
 0xacf   :  { %v1658_v55 = vpack.c.bf16 %v1612_v54, %v1610_v36 }
 0xad1   :  { %v1669_v56 = vsel %vm427_vm15, %v1658_v55, 0 }
 0xad2   :  { %1677 = vmatpush.bf16.xpose.msra.mxu0 %v1669_v56 }
 0xada   :  { %1678 = vmatpush.bf16.xpose.msra.mxu0 %v1666_v59  ;;  %2629 = vmatmul.msk.bf16.vlgmr.msrb.gmra.mxu3 %vm188_vm1, %v3518_v19 }
 0xaea   :  { %2630 = vmatmul.msk.bf16.gmra.mxu3 %vm188_vm1, %v3528_v47 }
 0xb3d   :  { %v1388_v49 = vpop.f32.mrf.mxu3 }
 0xb3e   :  { %v1389_v62 = vadd.f32 %v1388_v49, %v3276_v44 }
 0xb40   :  { %v1398_v63 = vsel %vm188_vm1, %v1389_v62, -inf }
 0xb41   :  { %1399 = vmax.xlane.f32.xlu1 %v1398_v63 }
 0xb45   :  { %v1390_v34 = vpop.f32.mrf.mxu3 }
 0xb46   :  { %v1391_v48 = vadd.f32 %v1390_v34, %v3280_v60 }
 0xb48   :  { %v1401_v23 = vsel %vm188_vm1, %v1391_v48, -inf }
 0xb49   :  { %1402 = vmax.xlane.f32.xlu2 %v1401_v23 }
 0xb4d   :  { %v1393_v0 = vpop.f32.mrf.mxu3 }
 0xb4e   :  { %v1394_v2 = vadd.f32 %v1393_v0, %v3284_v5 }
 0xb50   :  { %v1404_v19 = vsel %vm188_vm1, %v1394_v2, -inf }
 0xb51   :  { %1405 = vmax.xlane.f32.xlu0 %v1404_v19 }
 0xb55   :  { %v1395_v3 = vpop.f32.mrf.mxu3 }
 0xb56   :  { %v1396_v47 = vadd.f32 %v1395_v3, %v3288_v11 }
 0xb58   :  { %v1407_v4 = vsel %vm188_vm1, %v1396_v47, -inf }
 0xb59   :  { %1408 = vmax.xlane.f32.xlu1 %v1407_v4 }
 0xb5d   :  { %v1645_v6 = vpop.f32.mrf.mxu3 }
 0xb5e   :  { %v1646_v17 = vadd.f32 %v2812_v9, %v1645_v6 }
 0xb65   :  { %v1647_v7 = vpop.f32.mrf.mxu3 }
 0xb66   :  { %v1648_v14 = vadd.f32 %v2812_v9, %v1647_v7 }
 0xb68   :  { %v1793_v20 = vpack.c.bf16 %v1648_v14, %v1646_v17 }
 0xb6d   :  { %v1650_v8 = vpop.f32.mrf.mxu3 }
 0xb6e   :  { %v1651_v61 = vadd.f32 %v2812_v9, %v1650_v8 }
 0xb75   :  { %v1652_v12 = vpop.f32.mrf.mxu3 }
 0xb76   :  { %v1653_v1 = vadd.f32 %v2812_v9, %v1652_v12 }
 0xb78   :  { %v1794_v16 = vpack.c.bf16 %v1653_v1, %v1651_v61 }
 0xb7a   :  { %1807 = vmatpush.bf16.msra.mxu1 %v1794_v16 }
 0xb7e   :  { %1808 = vmatpush.bf16.msra.mxu1 %v1793_v20 }
 0xbb4   :  { %v1400_v21 = vpop.xlane.xlu1 %1399 }
 0xbb5   :  { %v1410_v22 = vsub.f32 %v1389_v62, %v1400_v21 }
 0xbb7   :  { %v1414_v30 = vmul.f32 1.442695, %v1410_v22 }
 0xbb9   :  { %2887 = vpow2.f32 %v1414_v30 }
 0xbbc   :  { %v1403_v25 = vpop.xlane.xlu2 %1402 }
 0xbbd   :  { %v1411_v26 = vsub.f32 %v1391_v48, %v1403_v25 }
 0xbbf   :  { %v2888_v37 = vpop.eup %2887  ;;  %v1416_v28 = vmul.f32 1.442695, %v1411_v26 }
 0xbc0   :  { %v1422_v29 = vsel %vm188_vm1, %v2888_v37, 0.0 }
 0xbc1   :  { %2889 = vpow2.f32 %v1416_v28  ;;  %1423 = vadd.xlane.f32.xlu2 %v1422_v29 }
 0xbc4   :  { %v1406_v42 = vpop.xlane.xlu0 %1405 }
 0xbc5   :  { %v1412_v33 = vsub.f32 %v1394_v2, %v1406_v42 }
 0xbc7   :  { %v2890_v35 = vpop.eup %2889  ;;  %v1418_v39 = vmul.f32 1.442695, %v1412_v33 }
 0xbc8   :  { %v1425_v38 = vsel %vm188_vm1, %v2890_v35, 0.0 }
 0xbc9   :  { %2891 = vpow2.f32 %v1418_v39  ;;  %1426 = vadd.xlane.f32.xlu0 %v1425_v38 }
 0xbcc   :  { %v1409_v40 = vpop.xlane.xlu1 %1408 }
 0xbcd   :  { %v1413_v41 = vsub.f32 %v1396_v47, %v1409_v40 }
 0xbcf   :  { %v3585_v10 = vpop.eup %2891  ;;  %v1420_v43 = vmul.f32 1.442695, %v1413_v41 }
 0xbd0   :  { %v1428_v32 = vsel %vm188_vm1, %v3585_v10, 0.0 }
 0xbd1   :  { %2893 = vpow2.f32 %v1420_v43  ;;  %1429 = vadd.xlane.f32.xlu1 %v1428_v32  ;;  %v2810_v32 = vld [vmem:[%s3887_s5 + $0x3] ss:$0 sm:$0xff]  ;;  %s2355_s5 = sshll.u32 %s2971_s24, 4  ;;  %s2356_s5 = int_to_ptr.vmem [resolvable:$true] %s2355_s5 }
 0xbd7   :  { %v3589_v45 = vpop.eup %2893 }
 0xbd8   :  { %v1431_v46 = vsel %vm188_vm1, %v3589_v45, 0.0 }
 0xbd9   :  { %1432 = vadd.xlane.f32.xlu2 %v1431_v46 }
 0xc34   :  { %v1424_v15 = vpop.xlane.xlu2 %1423 }
 0xc35   :  { %2895 = vrcp.f32 %v1424_v15  ;;  %v1445_v54 = vand.u32 2147483648, %v1424_v15  ;;  %v1443_v52 = vand.u32 2147483647, %v1424_v15  ;;  %vm1439_vm2 = vweird.f32 %v1424_v15 }
 0xc37   :  { %v1446_v58 = vor.u32 1.1754944e-38, %v1445_v54  ;;  %vm1444_vm4 = vcmp.eq.f32.partialorder %v1443_v52, 8.507059e+37 }
 0xc3b   :  { %v2896_v50 = vpop.eup %2895 }
 0xc3c   :  { %v1435_v51 = vmul.f32 %v2896_v50, %v1424_v15  ;;  %v1427_v53 = vpop.xlane.xlu0 %1426  ;;  %vm1440_vm0 = vweird.f32 %v2896_v50 }
 0xc3d   :  { %2897 = vrcp.f32 %v1427_v53  ;;  %vm1441_vm3 = vmor %vm1439_vm2, %vm1440_vm0  ;;  %v1460_v23 = vand.u32 2147483648, %v1427_v53  ;;  %v1458_v2 = vand.u32 2147483647, %v1427_v53  ;;  %vm1454_vm6 = vweird.f32 %v1427_v53 }
 0xc3e   :  { %v1436_v36 = vsub.f32 1.0, %v1435_v51 }
 0xc3f   :  { %v1461_v47 = vor.u32 1.1754944e-38, %v1460_v23  ;;  %vm1459_vm8 = vcmp.eq.f32.partialorder %v1458_v2, 8.507059e+37 }
 0xc40   :  { %v1437_v55 = vmul.f32 %v2896_v50, %v1436_v36 }
 0xc42   :  { %v1438_v56 = vadd.f32 %v2896_v50, %v1437_v55  ;;  %v2766_v55 = vld [vmem:[%s3839_s12 + $0x10] sm:$0xff] }
 0xc43   :  { %v2898_v57 = vpop.eup %2897  ;;  %1875 = vmatpush.bf16.msra.mxu3 %v2766_v55 }
 0xc44   :  { %v1442_v59 = vsel %vm1441_vm3, %v2896_v50, %v1438_v56  ;;  %v1450_v49 = vmul.f32 %v2898_v57, %v1427_v53  ;;  %v1430_v62 = vpop.xlane.xlu1 %1429  ;;  %vm1455_vm5 = vweird.f32 %v2898_v57 }
 0xc45   :  { %v1447_v63 = vsel %vm1444_vm4, %v1446_v58, %v1442_v59  ;;  %2899 = vrcp.f32 %v1430_v62  ;;  %vm1456_vm7 = vmor %vm1454_vm6, %vm1455_vm5  ;;  %v1475_v61 = vand.u32 2147483648, %v1430_v62  ;;  %v1473_v14 = vand.u32 2147483647, %v1430_v62 }
 0xc46   :  { %v1448_v34 = vmul.f32 %v2888_v37, %v1447_v63  ;;  %v1451_v48 = vsub.f32 1.0, %v1450_v49  ;;  %vm1469_vm10 = vweird.f32 %v1430_v62 }
 0xc47   :  { %v1476_v21 = vor.u32 1.1754944e-38, %v1475_v61  ;;  %vm1474_vm12 = vcmp.eq.f32.partialorder %v1473_v14, 8.507059e+37 }
 0xc48   :  { %1494 = vst.msk [vmem:[%s3852_s25] sm:$0xff] %vm188_vm1, %v1448_v34  ;;  %v1452_v0 = vmul.f32 %v2898_v57, %v1451_v48 }
 0xc4a   :  { %v1453_v19 = vadd.f32 %v2898_v57, %v1452_v0 }
 0xc4b   :  { %v2900_v3 = vpop.eup %2899 }
 0xc4c   :  { %v1457_v4 = vsel %vm1456_vm7, %v2898_v57, %v1453_v19  ;;  %v1465_v6 = vmul.f32 %v2900_v3, %v1430_v62  ;;  %v1433_v7 = vpop.xlane.xlu2 %1432  ;;  %vm1470_vm9 = vweird.f32 %v2900_v3 }
 0xc4d   :  { %v1462_v8 = vsel %vm1459_vm8, %v1461_v47, %v1457_v4  ;;  %2901 = vrcp.f32 %v1433_v7  ;;  %vm1471_vm11 = vmor %vm1469_vm10, %vm1470_vm9  ;;  %v1490_v28 = vand.u32 2147483648, %v1433_v7  ;;  %v1488_v42 = vand.u32 2147483647, %v1433_v7 }
 0xc4e   :  { %v1463_v9 = vmul.f32 %v2890_v35, %v1462_v8  ;;  %v1466_v12 = vsub.f32 1.0, %v1465_v6  ;;  %vm1484_vm14 = vweird.f32 %v1433_v7  ;;  %v1563_v35 = vpop.f32.mrf.mxu1 }
 0xc4f   :  { %v1491_v39 = vor.u32 1.1754944e-38, %v1490_v28  ;;  %vm1489_vm2 = vcmp.eq.f32.partialorder %v1488_v42, 8.507059e+37  ;;  %v1564_v15 = vadd.f32 %v2810_v32, %v1563_v35 }
 0xc50   :  { %1495 = vst.msk [vmem:[%s3852_s25 + $0x8] sm:$0xff] %vm188_vm1, %v1463_v9  ;;  %v1467_v1 = vmul.f32 %v2900_v3, %v1466_v12  ;;  %v1498_v16 = vpack.c.bf16 %v1463_v9, %v1448_v34 }
 0xc52   :  { %v1468_v17 = vadd.f32 %v2900_v3, %v1467_v1  ;;  %2582 = vmatmul.msk.bf16.vlgmr.msrb.gmra.mxu0 %vm188_vm1, %v1498_v16 }
 0xc53   :  { %v2902_v20 = vpop.eup %2901 }
 0xc54   :  { %v1480_v22 = vmul.f32 %v2902_v20, %v1433_v7  ;;  %v1472_v30 = vsel %vm1471_vm11, %v2900_v3, %v1468_v17  ;;  %vm1485_vm13 = vweird.f32 %v2902_v20 }
 0xc55   :  { %v1477_v25 = vsel %vm1474_vm12, %v1476_v21, %v1472_v30  ;;  %vm1486_vm0 = vmor %vm1484_vm14, %vm1485_vm13 }
 0xc56   :  { %v1481_v26 = vsub.f32 1.0, %v1480_v22  ;;  %v1478_v37 = vmul.f32 %v3585_v10, %v1477_v25  ;;  %v1565_v43 = vpop.f32.mrf.mxu1 }
 0xc57   :  { %v1566_v46 = vadd.f32 %v2810_v32, %v1565_v43 }
 0xc58   :  { %v1482_v29 = vmul.f32 %v2902_v20, %v1481_v26  ;;  %1496 = vst.msk [vmem:[%s3852_s25 + $0x10] sm:$0xff] %vm188_vm1, %v1478_v37 }
 0xc59   :  { %v1655_v51 = vpack.c.bf16 %v1566_v46, %v1564_v15 }
 0xc5a   :  { %v1483_v33 = vadd.f32 %v2902_v20, %v1482_v29 }
 0xc5c   :  { %v1487_v38 = vsel %vm1486_vm0, %v2902_v20, %v1483_v33 }
 0xc5d   :  { %v1492_v40 = vsel %vm1489_vm2, %v1491_v39, %v1487_v38 }
 0xc5e   :  { %v1493_v41 = vmul.f32 %v3589_v45, %v1492_v40  ;;  %v1568_v50 = vpop.f32.mrf.mxu1 }
 0xc5f   :  { %v1569_v36 = vadd.f32 %v2810_v32, %v1568_v50 }
 0xc60   :  { %1497 = vst.msk [vmem:[%s3852_s25 + $0x18] sm:$0xff] %vm188_vm1, %v1493_v41  ;;  %v1499_v10 = vpack.c.bf16 %v1493_v41, %v1478_v37 }
 0xc62   :  { %2583 = vmatmul.msk.bf16.gmra.mxu0 %vm188_vm1, %v1499_v10 }
 0xc66   :  { %v1570_v45 = vpop.f32.mrf.mxu1 }
 0xc67   :  { %v1571_v53 = vadd.f32 %v2810_v32, %v1570_v45 }
 0xc69   :  { %v1656_v54 = vpack.c.bf16 %v1571_v53, %v1569_v36 }
 0xc72   :  { %2631 = vmatmul.msk.bf16.vlgmr.msra.gmra.mxu0 %vm427_vm15, %v1655_v51 }
 0xc82   :  { %2632 = vmatmul.msk.bf16.gmra.mxu0 %vm427_vm15, %v1656_v54 }
 0xccf   :  { %v1517_v52 = vpop.f32.mrf.mxu0 }
 0xcd7   :  { %v1519_v56 = vpop.f32.mrf.mxu0 }
 0xcd8   :  { %v1527_v57 = vpack.c.bf16 %v1519_v56, %v1517_v52 }
 0xcda   :  { %2651 = vmatmul.msk.bf16.vlgmr.msra.gmra.mxu3 %vm427_vm15, %v1527_v57 }
 0xcdf   :  { %v1522_v58 = vpop.f32.mrf.mxu0 }
 0xce7   :  { %v1524_v59 = vpop.f32.mrf.mxu0 }
 0xce8   :  { %v1528_v49 = vpack.c.bf16 %v1524_v59, %v1522_v58 }
 0xcea   :  { %2652 = vmatmul.msk.bf16.gmra.mxu3 %vm427_vm15, %v1528_v49 }
 0xcef   :  { %v1680_v62 = vpop.f32.mrf.mxu0 }
 0xcf0   :  { %v1681_v63 = vadd.f32 %v1680_v62, %v3276_v44 }
 0xcf2   :  { %v1690_v34 = vsel %vm188_vm1, %v1681_v63, -inf }
 0xcf3   :  { %1691 = vmax.xlane.f32.xlu0 %v1690_v34 }
 0xcf7   :  { %v1682_v48 = vpop.f32.mrf.mxu0 }
 0xcf8   :  { %v1683_v23 = vadd.f32 %v1682_v48, %v3280_v60 }
 0xcfa   :  { %v1693_v0 = vsel %vm188_vm1, %v1683_v23, -inf }
 0xcfb   :  { %1694 = vmax.xlane.f32.xlu1 %v1693_v0 }
 0xcff   :  { %v1685_v2 = vpop.f32.mrf.mxu0 }
 0xd00   :  { %v1686_v19 = vadd.f32 %v1685_v2, %v3284_v5 }
 0xd02   :  { %v1696_v3 = vsel %vm188_vm1, %v1686_v19, -inf }
 0xd03   :  { %1697 = vmax.xlane.f32.xlu2 %v1696_v3 }
 0xd07   :  { %v1687_v47 = vpop.f32.mrf.mxu0 }
 0xd08   :  { %v1688_v4 = vadd.f32 %v1687_v47, %v3288_v11 }
 0xd0a   :  { %v1699_v44 = vsel %vm188_vm1, %v1688_v4, -inf }
 0xd0b   :  { %1700 = vmax.xlane.f32.xlu0 %v1699_v44 }
 0xd66   :  { %v1692_v6 = vpop.xlane.xlu0 %1691 }
 0xd67   :  { %v1702_v7 = vsub.f32 %v1681_v63, %v1692_v6 }
 0xd69   :  { %v1706_v8 = vmul.f32 1.442695, %v1702_v7 }
 0xd6b   :  { %2903 = vpow2.f32 %v1706_v8 }
 0xd6e   :  { %v1695_v60 = vpop.xlane.xlu1 %1694 }
 0xd6f   :  { %v1703_v9 = vsub.f32 %v1683_v23, %v1695_v60 }
 0xd71   :  { %v2904_v12 = vpop.eup %2903  ;;  %v1708_v61 = vmul.f32 1.442695, %v1703_v9 }
 0xd72   :  { %v1714_v1 = vsel %vm188_vm1, %v2904_v12, 0.0 }
 0xd73   :  { %2905 = vpow2.f32 %v1708_v61  ;;  %1715 = vadd.xlane.f32.xlu1 %v1714_v1 }
 0xd76   :  { %v1698_v5 = vpop.xlane.xlu2 %1697 }
 0xd77   :  { %v1704_v14 = vsub.f32 %v1686_v19, %v1698_v5 }
 0xd79   :  { %v2906_v16 = vpop.eup %2905  ;;  %v1710_v17 = vmul.f32 1.442695, %v1704_v14 }
 0xd7a   :  { %v1717_v11 = vsel %vm188_vm1, %v2906_v16, 0.0 }
 0xd7b   :  { %2907 = vpow2.f32 %v1710_v17  ;;  %1718 = vadd.xlane.f32.xlu2 %v1717_v11  ;;  %v2773_v17 = vld [vmem:[%s3839_s12 + $0x18] sm:$0xff] }
 0xd7c   :  { %1844 = vmatpush.bf16.msra.mxu2 %v2773_v17 }
 0xd7e   :  { %v1701_v20 = vpop.xlane.xlu0 %1700 }
 0xd7f   :  { %v1705_v21 = vsub.f32 %v1688_v4, %v1701_v20 }
 0xd81   :  { %v3633_v22 = vpop.eup %2907  ;;  %v1712_v30 = vmul.f32 1.442695, %v1705_v21 }
 0xd82   :  { %v1720_v25 = vsel %vm188_vm1, %v3633_v22, 0.0 }
 0xd83   :  { %2909 = vpow2.f32 %v1712_v30  ;;  %1721 = vadd.xlane.f32.xlu0 %v1720_v25 }
 0xd89   :  { %v3637_v26 = vpop.eup %2909 }
 0xd8a   :  { %v1723_v37 = vsel %vm188_vm1, %v3637_v26, 0.0 }
 0xd8b   :  { %1724 = vadd.xlane.f32.xlu1 %v1723_v37 }
 0xde6   :  { %v1716_v28 = vpop.xlane.xlu1 %1715 }
 0xde7   :  { %2911 = vrcp.f32 %v1716_v28  ;;  %v1737_v39 = vand.u32 2147483648, %v1716_v28  ;;  %v1735_v40 = vand.u32 2147483647, %v1716_v28  ;;  %vm1731_vm4 = vweird.f32 %v1716_v28 }
 0xde9   :  { %v1738_v43 = vor.u32 1.1754944e-38, %v1737_v39  ;;  %vm1736_vm6 = vcmp.eq.f32.partialorder %v1735_v40, 8.507059e+37 }
 0xded   :  { %v2912_v29 = vpop.eup %2911 }
 0xdee   :  { %v1727_v42 = vmul.f32 %v2912_v29, %v1716_v28  ;;  %v1719_v33 = vpop.xlane.xlu2 %1718  ;;  %vm1732_vm3 = vweird.f32 %v2912_v29 }
 0xdef   :  { %2913 = vrcp.f32 %v1719_v33  ;;  %vm1733_vm5 = vmor %vm1731_vm4, %vm1732_vm3  ;;  %v1752_v53 = vand.u32 2147483648, %v1719_v33  ;;  %v1750_v54 = vand.u32 2147483647, %v1719_v33  ;;  %vm1746_vm8 = vweird.f32 %v1719_v33 }
 0xdf0   :  { %v1728_v35 = vsub.f32 1.0, %v1727_v42 }
 0xdf1   :  { %v1753_v56 = vor.u32 1.1754944e-38, %v1752_v53  ;;  %vm1751_vm10 = vcmp.eq.f32.partialorder %v1750_v54, 8.507059e+37 }
 0xdf2   :  { %v1729_v38 = vmul.f32 %v2912_v29, %v1728_v35 }
 0xdf4   :  { %v1730_v41 = vadd.f32 %v2912_v29, %v1729_v38 }
 0xdf5   :  { %v2914_v10 = vpop.eup %2913 }
 0xdf6   :  { %v1734_v32 = vsel %vm1733_vm5, %v2912_v29, %v1730_v41  ;;  %v1742_v46 = vmul.f32 %v2914_v10, %v1719_v33  ;;  %v1722_v15 = vpop.xlane.xlu0 %1721  ;;  %vm1747_vm7 = vweird.f32 %v2914_v10  ;;  %v2813_v29 = vld [vmem:[%s3840_s13 + $0x1] ss:$0 sm:$0xff] }
 0xdf7   :  { %v1739_v50 = vsel %vm1736_vm6, %v1738_v43, %v1734_v32  ;;  %2915 = vrcp.f32 %v1722_v15  ;;  %vm1748_vm9 = vmor %vm1746_vm8, %vm1747_vm7  ;;  %v1767_v34 = vand.u32 2147483648, %v1722_v15  ;;  %v1765_v23 = vand.u32 2147483647, %v1722_v15 }
 0xdf8   :  { %v1740_v51 = vmul.f32 %v2904_v12, %v1739_v50  ;;  %v1743_v45 = vsub.f32 1.0, %v1742_v46  ;;  %vm1761_vm12 = vweird.f32 %v1722_v15 }
 0xdf9   :  { %v1768_v3 = vor.u32 1.1754944e-38, %v1767_v34  ;;  %vm1766_vm14 = vcmp.eq.f32.partialorder %v1765_v23, 8.507059e+37 }
 0xdfa   :  { %2633 = vst.msk [vmem:[%s3852_s25 + $0x20] sm:$0xff] %vm188_vm1, %v1740_v51  ;;  %v1744_v36 = vmul.f32 %v2914_v10, %v1743_v45 }
 0xdfc   :  { %v1745_v55 = vadd.f32 %v2914_v10, %v1744_v36 }
 0xdfd   :  { %v2916_v52 = vpop.eup %2915 }
 0xdfe   :  { %v1749_v57 = vsel %vm1748_vm9, %v2914_v10, %v1745_v55  ;;  %v1757_v58 = vmul.f32 %v2916_v52, %v1722_v15  ;;  %v1725_v59 = vpop.xlane.xlu1 %1724  ;;  %vm1762_vm11 = vweird.f32 %v2916_v52 }
 0xdff   :  { %v1754_v49 = vsel %vm1751_vm10, %v1753_v56, %v1749_v57  ;;  %2917 = vrcp.f32 %v1725_v59  ;;  %vm1763_vm13 = vmor %vm1761_vm12, %vm1762_vm11  ;;  %v1782_v8 = vand.u32 2147483648, %v1725_v59  ;;  %v1780_v9 = vand.u32 2147483647, %v1725_v59 }
 0xe00   :  { %v1755_v62 = vmul.f32 %v2906_v16, %v1754_v49  ;;  %v1758_v63 = vsub.f32 1.0, %v1757_v58  ;;  %vm1776_vm2 = vweird.f32 %v1725_v59 }
 0xe01   :  { %v1783_v61 = vor.u32 1.1754944e-38, %v1782_v8  ;;  %vm1781_vm4 = vcmp.eq.f32.partialorder %v1780_v9, 8.507059e+37  ;;  %v2774_v9 = vld [vmem:[%s3843_s16 + $0x10] sm:$0xff] }
 0xe02   :  { %2634 = vst.msk [vmem:[%s3852_s25 + $0x28] sm:$0xff] %vm188_vm1, %v1755_v62  ;;  %v1759_v48 = vmul.f32 %v2916_v52, %v1758_v63  ;;  %v1791_v0 = vpack.c.bf16 %v1755_v62, %v1740_v51 }
 0xe04   :  { %v1760_v2 = vadd.f32 %v2916_v52, %v1759_v48  ;;  %2637 = vmatmul.msk.bf16.vlgmr.msra.gmra.mxu1 %vm188_vm1, %v1791_v0 }
 0xe05   :  { %v2918_v19 = vpop.eup %2917 }
 0xe06   :  { %v1764_v47 = vsel %vm1763_vm13, %v2916_v52, %v1760_v2  ;;  %v1772_v4 = vmul.f32 %v2918_v19, %v1725_v59  ;;  %vm1777_vm0 = vweird.f32 %v2918_v19 }
 0xe07   :  { %v1769_v44 = vsel %vm1766_vm14, %v1768_v3, %v1764_v47  ;;  %vm1778_vm3 = vmor %vm1776_vm2, %vm1777_vm0 }
 0xe08   :  { %v1773_v6 = vsub.f32 1.0, %v1772_v4  ;;  %v1770_v7 = vmul.f32 %v3633_v22, %v1769_v44 }
 0xe0a   :  { %v1774_v60 = vmul.f32 %v2918_v19, %v1773_v6  ;;  %2635 = vst.msk [vmem:[%s3852_s25 + $0x30] sm:$0xff] %vm188_vm1, %v1770_v7  ;;  %v2775_v6 = vld [vmem:[%s3843_s16 + $0x18] sm:$0xff] }
 0xe0b   :  { %2042 = vmatpush.bf16.msrb.mxu0 %v2775_v6 }
 0xe0c   :  { %v1775_v12 = vadd.f32 %v2918_v19, %v1774_v60 }
 0xe0e   :  { %v1779_v1 = vsel %vm1778_vm3, %v2918_v19, %v1775_v12 }
 0xe0f   :  { %v1784_v5 = vsel %vm1781_vm4, %v1783_v61, %v1779_v1  ;;  %2043 = vmatpush.bf16.msrb.mxu0 %v2774_v9  ;;  %v2778_v9 = vld [vmem:[%s3845_s18 + $0x50] sm:$0xff] }
 0xe10   :  { %v1785_v14 = vmul.f32 %v3637_v26, %v1784_v5  ;;  %v1877_v26 = vpop.f32.mrf.mxu3 }
 0xe12   :  { %2636 = vst.msk [vmem:[%s3852_s25 + $0x38] sm:$0xff] %vm188_vm1, %v1785_v14  ;;  %v1792_v16 = vpack.c.bf16 %v1785_v14, %v1770_v7 }
 0xe14   :  { %2638 = vmatmul.msk.bf16.gmra.mxu1 %vm188_vm1, %v1792_v16 }
 0xe18   :  { %v1879_v33 = vpop.f32.mrf.mxu3 }
 0xe20   :  { %v1882_v43 = vpop.f32.mrf.mxu3 }
 0xe28   :  { %v1884_v45 = vpop.f32.mrf.mxu3 }
 0xe81   :  { %v1810_v11 = vpop.f32.mrf.mxu1 }
 0xe89   :  { %v1812_v20 = vpop.f32.mrf.mxu1 }
 0xe8a   :  { %v1820_v21 = vpack.c.bf16 %v1812_v20, %v1810_v11 }
 0xe8c   :  { %2645 = vmatmul.msk.bf16.vlgmr.msra.gmra.mxu2 %vm427_vm15, %v1820_v21 }
 0xe91   :  { %v1815_v22 = vpop.f32.mrf.mxu1 }
 0xe99   :  { %v1817_v30 = vpop.f32.mrf.mxu1 }
 0xe9a   :  { %v1821_v25 = vpack.c.bf16 %v1817_v30, %v1815_v22 }
 0xe9c   :  { %2646 = vmatmul.msk.bf16.gmra.mxu2 %vm427_vm15, %v1821_v25 }
 0xf0f   :  { %v1846_v37 = vpop.f32.mrf.mxu2 }
 0xf10   :  { %v1878_v28 = vadd.f32 %v1877_v26, %v1846_v37 }
 0xf12   :  { %v1887_v42 = vadd.f32 %v1878_v28, %v3429_v13 }
 0xf14   :  { %v3670_v35 = vadd.f32 %v2813_v29, %v1887_v42 }
 0xf16   :  { %v1904_v39 = vsel %vm188_vm1, %v3670_v35, 0.0 }
 0xf17   :  { %1905 = vadd.xlane.f32.xlu2 %v1904_v39  ;;  %v1848_v38 = vpop.f32.mrf.mxu2 }
 0xf18   :  { %v1880_v40 = vadd.f32 %v1879_v33, %v1848_v38 }
 0xf1a   :  { %v1888_v41 = vadd.f32 %v1880_v40, %v3434_v18  ;;  %v2814_v40 = vld [vmem:[%s3841_s14 + $0x1] ss:$0 sm:$0xff] }
 0xf1c   :  { %v3675_v10 = vadd.f32 %v2813_v29, %v1888_v41 }
 0xf1e   :  { %v1907_v32 = vsel %vm188_vm1, %v3675_v10, 0.0 }
 0xf1f   :  { %1908 = vadd.xlane.f32.xlu0 %v1907_v32  ;;  %v1851_v46 = vpop.f32.mrf.mxu2 }
 0xf20   :  { %v1883_v13 = vadd.f32 %v1882_v43, %v1851_v46 }
 0xf22   :  { %v1889_v15 = vadd.f32 %v1883_v13, %v3439_v24 }
 0xf24   :  { %v3680_v50 = vadd.f32 %v2813_v29, %v1889_v15 }
 0xf26   :  { %v1910_v51 = vsel %vm188_vm1, %v3680_v50, 0.0 }
 0xf27   :  { %v1853_v53 = vpop.f32.mrf.mxu2  ;;  %1911 = vadd.xlane.f32.xlu1 %v1910_v51  ;;  %v2815_v51 = vld [vmem:[%s3842_s15 + $0x1] ss:$0 sm:$0xff] }
 0xf28   :  { %v1885_v18 = vadd.f32 %v1884_v45, %v1853_v53 }
 0xf2a   :  { %v1890_v36 = vadd.f32 %v1885_v18, %v3444_v27 }
 0xf2c   :  { %v3685_v54 = vadd.f32 %v2813_v29, %v1890_v36 }
 0xf2e   :  { %v1913_v55 = vsel %vm188_vm1, %v3685_v54, 0.0 }
 0xf2f   :  { %1914 = vadd.xlane.f32.xlu2 %v1913_v55 }
 0xf8a   :  { %v1906_v52 = vpop.xlane.xlu2 %1905 }
 0xf8b   :  { %v1916_v24 = vmul.f32 %v1906_v52, %v3150_v31 }
 0xf8d   :  { %v1920_v56 = vsub.f32 %v3670_v35, %v1916_v24 }
 0xf8f   :  { %v1924_v57 = vmul.f32 %v1920_v56, %v1920_v56 }
 0xf91   :  { %v1928_v58 = vsel %vm188_vm1, %v1924_v57, 0.0 }
 0xf92   :  { %1929 = vadd.xlane.f32.xlu0 %v1928_v58  ;;  %v1909_v59 = vpop.xlane.xlu0 %1908 }
 0xf93   :  { %v1917_v49 = vmul.f32 %v1909_v59, %v3150_v31 }
 0xf95   :  { %v3694_v27 = vsub.f32 %v3675_v10, %v1917_v49 }
 0xf97   :  { %v1925_v62 = vmul.f32 %v3694_v27, %v3694_v27 }
 0xf99   :  { %v1931_v63 = vsel %vm188_vm1, %v1925_v62, 0.0 }
 0xf9a   :  { %1932 = vadd.xlane.f32.xlu1 %v1931_v63  ;;  %v1912_v34 = vpop.xlane.xlu1 %1911 }
 0xf9b   :  { %v1918_v48 = vmul.f32 %v1912_v34, %v3150_v31 }
 0xf9d   :  { %v3701_v23 = vsub.f32 %v3680_v50, %v1918_v48 }
 0xf9f   :  { %v1926_v0 = vmul.f32 %v3701_v23, %v3701_v23 }
 0xfa1   :  { %v1934_v2 = vsel %vm188_vm1, %v1926_v0, 0.0 }
 0xfa2   :  { %v1915_v19 = vpop.xlane.xlu2 %1914  ;;  %1935 = vadd.xlane.f32.xlu2 %v1934_v2 }
 0xfa3   :  { %v1919_v3 = vmul.f32 %v1915_v19, %v3150_v31 }
 0xfa5   :  { %v3708_v47 = vsub.f32 %v3685_v54, %v1919_v3 }
 0xfa7   :  { %v1927_v4 = vmul.f32 %v3708_v47, %v3708_v47 }
 0xfa9   :  { %v1937_v44 = vsel %vm188_vm1, %v1927_v4, 0.0 }
 0xfaa   :  { %1938 = vadd.xlane.f32.xlu0 %v1937_v44 }
0x1005   :  { %v1930_v7 = vpop.xlane.xlu0 %1929 }
0x1006   :  { %v1940_v8 = vmul.f32 %v1930_v7, %v3150_v31  ;;  %v2783_v7 = vld [vmem:[%s3845_s18 + $0x78] sm:$0xff] }
0x1007   :  { %2163 = vmatpush.bf16.msrb.mxu1 %v2783_v7 }
0x1008   :  { %v1944_v60 = vadd.f32 1e-06, %v1940_v8  ;;  %v2780_v8 = vld [vmem:[%s3845_s18 + $0x60] sm:$0xff] }
0x100a   :  { %2919 = vrsqrt.f32 %v1944_v60  ;;  %vm1954_vm5 = vweird.f32 %v1944_v60 }
0x100d   :  { %v1933_v12 = vpop.xlane.xlu1 %1932 }
0x100e   :  { %v1941_v61 = vmul.f32 %v1933_v12, %v3150_v31  ;;  %v2777_v12 = vld [vmem:[%s3845_s18 + $0x48] sm:$0xff] }
0x1010   :  { %v2920_v1 = vpop.eup %2919  ;;  %v1945_v5 = vadd.f32 1e-06, %v1941_v61  ;;  %v2816_v61 = vld [vmem:[%s3844_s17 + $0x1] ss:$0 sm:$0xff] }
0x1011   :  { %v1949_v14 = vmul.f32 %v2920_v1, %v1944_v60  ;;  %vm1955_vm15 = vweird.f32 %v2920_v1  ;;  %v2779_v60 = vld [vmem:[%s3845_s18 + $0x58] sm:$0xff] }
0x1012   :  { %2921 = vrsqrt.f32 %v1945_v5  ;;  %vm1956_vm6 = vmor %vm1954_vm5, %vm1955_vm15  ;;  %vm1964_vm8 = vweird.f32 %v1945_v5 }
0x1013   :  { %v1950_v16 = vmul.f32 %v2920_v1, %v1949_v14 }
0x1015   :  { %v1951_v17 = vmul.f32 0.5, %v1950_v16  ;;  %v1936_v11 = vpop.xlane.xlu2 %1935 }
0x1016   :  { %v1942_v20 = vmul.f32 %v1936_v11, %v3150_v31 }
0x1017   :  { %v1952_v21 = vsub.f32 1.5, %v1951_v17 }
0x1018   :  { %v2922_v22 = vpop.eup %2921  ;;  %v1946_v30 = vadd.f32 1e-06, %v1942_v20 }
0x1019   :  { %v1953_v25 = vmul.f32 %v2920_v1, %v1952_v21  ;;  %v1959_v26 = vmul.f32 %v2922_v22, %v1945_v5  ;;  %vm1965_vm7 = vweird.f32 %v2922_v22  ;;  %v2776_v5 = vld [vmem:[%s3845_s18 + $0x40] sm:$0xff] }
0x101a   :  { %2923 = vrsqrt.f32 %v1946_v30  ;;  %vm1966_vm9 = vmor %vm1964_vm8, %vm1965_vm7  ;;  %vm1974_vm11 = vweird.f32 %v1946_v30 }
0x101b   :  { %v1960_v37 = vmul.f32 %v2922_v22, %v1959_v26  ;;  %v1957_v28 = vsel %vm1956_vm6, %v2920_v1, %v1953_v25 }
0x101c   :  { %v1988_v41 = vmul.f32 %v1957_v28, %v1920_v56 }
0x101d   :  { %v1961_v29 = vmul.f32 0.5, %v1960_v37  ;;  %v1939_v42 = vpop.xlane.xlu0 %1938 }
0x101e   :  { %v1943_v33 = vmul.f32 %v1939_v42, %v3150_v31  ;;  %v1995_v45 = vmul.f32 %v2814_v40, %v1988_v41 }
0x101f   :  { %v1962_v39 = vsub.f32 1.5, %v1961_v29 }
0x1020   :  { %v2924_v38 = vpop.eup %2923  ;;  %v1947_v43 = vadd.f32 1e-06, %v1943_v33  ;;  %v2002_v24 = vadd.f32 %v2815_v51, %v1995_v45 }
0x1021   :  { %v1963_v32 = vmul.f32 %v2922_v22, %v1962_v39  ;;  %v1969_v46 = vmul.f32 %v2924_v38, %v1946_v30  ;;  %vm1975_vm10 = vweird.f32 %v2924_v38 }
0x1022   :  { %2925 = vrsqrt.f32 %v1947_v43  ;;  %vm1976_vm12 = vmor %vm1974_vm11, %vm1975_vm10  ;;  %vm1984_vm14 = vweird.f32 %v1947_v43 }
0x1023   :  { %v1967_v13 = vsel %vm1966_vm9, %v2922_v22, %v1963_v32  ;;  %v1970_v15 = vmul.f32 %v2924_v38, %v1969_v46 }
0x1024   :  { %v1989_v53 = vmul.f32 %v1967_v13, %v3694_v27 }
0x1025   :  { %v1971_v18 = vmul.f32 0.5, %v1970_v15 }
0x1026   :  { %v1996_v36 = vmul.f32 %v2814_v40, %v1989_v53 }
0x1027   :  { %v1972_v55 = vsub.f32 1.5, %v1971_v18 }
0x1028   :  { %v2926_v52 = vpop.eup %2925  ;;  %v2003_v56 = vadd.f32 %v2815_v51, %v1996_v36 }
0x1029   :  { %v1973_v57 = vmul.f32 %v2924_v38, %v1972_v55  ;;  %v1979_v58 = vmul.f32 %v2926_v52, %v1947_v43  ;;  %vm1985_vm13 = vweird.f32 %v2926_v52 }
0x102a   :  { %v2006_v59 = vpack.c.bf16 %v2003_v56, %v2002_v24  ;;  %vm1986_vm0 = vmor %vm1984_vm14, %vm1985_vm13  ;;  %vm2346_vm13 = vcmask 58368  }
0x102b   :  { %v1980_v49 = vmul.f32 %v2926_v52, %v1979_v58  ;;  %v1977_v62 = vsel %vm1976_vm12, %v2924_v38, %v1973_v57 }
0x102c   :  { %2669 = vmatmul.msk.bf16.vlgmr.msrb.gmra.mxu0 %vm188_vm1, %v2006_v59  ;;  %v1990_v27 = vmul.f32 %v1977_v62, %v3701_v23  ;;  %v2782_v23 = vld [vmem:[%s3845_s18 + $0x70] sm:$0xff] }
0x102d   :  { %v1981_v63 = vmul.f32 0.5, %v1980_v49  ;;  %2164 = vmatpush.bf16.msrb.mxu1 %v2782_v23 }
0x102e   :  { %v1997_v19 = vmul.f32 %v2814_v40, %v1990_v27 }
0x102f   :  { %v1982_v34 = vsub.f32 1.5, %v1981_v63 }
0x1030   :  { %v2004_v4 = vadd.f32 %v2815_v51, %v1997_v19 }
0x1031   :  { %v1983_v48 = vmul.f32 %v2926_v52, %v1982_v34 }
0x1033   :  { %v1987_v0 = vsel %vm1986_vm0, %v2926_v52, %v1983_v48 }
0x1034   :  { %v1991_v2 = vmul.f32 %v1987_v0, %v3708_v47  ;;  %v2781_v47 = vld [vmem:[%s3845_s18 + $0x68] sm:$0xff] }
0x1035   :  { %2165 = vmatpush.bf16.msrb.mxu1 %v2781_v47 }
0x1036   :  { %v1998_v3 = vmul.f32 %v2814_v40, %v1991_v2 }
0x1038   :  { %v2005_v44 = vadd.f32 %v2815_v51, %v1998_v3  ;;  %v2817_v3 = vld [vmem:[%s3846_s19 + $0x1] ss:$0 sm:$0xff] }
0x1039   :  { %2166 = vmatpush.bf16.msrb.mxu1 %v2780_v8 }
0x103a   :  { %v2007_v6 = vpack.c.bf16 %v2005_v44, %v2004_v4 }
0x103c   :  { %2670 = vmatmul.msk.bf16.gmra.mxu0 %vm188_vm1, %v2007_v6 }
0x103d   :  { %2167 = vmatpush.bf16.msrb.mxu1 %v2779_v60 }
0x1041   :  { %2168 = vmatpush.bf16.msrb.mxu1 %v2778_v9 }
0x1045   :  { %2169 = vmatpush.bf16.msrb.mxu1 %v2777_v12 }
0x1049   :  { %2170 = vmatpush.bf16.msrb.mxu1 %v2776_v5 }
0x10a9   :  { %v2045_v1 = vpop.f32.mrf.mxu0 }
0x10aa   :  { %v2046_v14 = vadd.f32 %v2816_v61, %v2045_v1 }
0x10ac   :  { %v2055_v16 = vmul.f32 %v2046_v14, %v2046_v14 }
0x10ae   :  { %v2059_v17 = vmul.f32 %v2055_v16, %v2046_v14 }
0x10b0   :  { %v2063_v11 = vmul.f32 0.044715, %v2059_v17 }
0x10b1   :  { %v2047_v20 = vpop.f32.mrf.mxu0 }
0x10b2   :  { %v2067_v21 = vadd.f32 %v2063_v11, %v2046_v14  ;;  %v2048_v22 = vadd.f32 %v2816_v61, %v2047_v20 }
0x10b4   :  { %v2071_v30 = vmul.f32 0.7978846, %v2067_v21  ;;  %v2056_v25 = vmul.f32 %v2048_v22, %v2048_v22 }
0x10b6   :  { %v2060_v26 = vmul.f32 %v2056_v25, %v2048_v22  ;;  %2927 = vtanh.f32 %v2071_v30 }
0x10b8   :  { %v2064_v37 = vmul.f32 0.044715, %v2060_v26 }
0x10b9   :  { %v2050_v28 = vpop.f32.mrf.mxu0 }
0x10ba   :  { %v2068_v29 = vadd.f32 %v2064_v37, %v2048_v22  ;;  %v2051_v42 = vadd.f32 %v2816_v61, %v2050_v28 }
0x10bc   :  { %v2072_v33 = vmul.f32 0.7978846, %v2068_v29  ;;  %v2057_v39 = vmul.f32 %v2051_v42, %v2051_v42  ;;  %v2928_v38 = vpop.eup %2927 }
0x10bd   :  { %v2079_v43 = vadd.f32 1.0, %v2928_v38 }
0x10be   :  { %2929 = vtanh.f32 %v2072_v33  ;;  %v2061_v40 = vmul.f32 %v2057_v39, %v2051_v42 }
0x10bf   :  { %v2083_v53 = vmul.f32 0.5, %v2079_v43 }
0x10c0   :  { %v2065_v41 = vmul.f32 0.044715, %v2061_v40 }
0x10c1   :  { %v2052_v32 = vpop.f32.mrf.mxu0  ;;  %v2087_v24 = vmul.f32 %v2083_v53, %v2046_v14 }
0x10c2   :  { %v2069_v46 = vadd.f32 %v2065_v41, %v2051_v42  ;;  %v2053_v13 = vadd.f32 %v2816_v61, %v2052_v32 }
0x10c4   :  { %v2930_v15 = vpop.eup %2929  ;;  %v2073_v51 = vmul.f32 0.7978846, %v2069_v46  ;;  %v2058_v45 = vmul.f32 %v2053_v13, %v2053_v13 }
0x10c5   :  { %v2080_v18 = vadd.f32 1.0, %v2930_v15 }
0x10c6   :  { %v2062_v36 = vmul.f32 %v2058_v45, %v2053_v13  ;;  %2931 = vtanh.f32 %v2073_v51 }
0x10c7   :  { %v2084_v55 = vmul.f32 0.5, %v2080_v18 }
0x10c8   :  { %v2066_v52 = vmul.f32 0.044715, %v2062_v36 }
0x10c9   :  { %v2088_v56 = vmul.f32 %v2084_v55, %v2048_v22 }
0x10ca   :  { %v2070_v57 = vadd.f32 %v2066_v52, %v2053_v13 }
0x10cb   :  { %v2091_v58 = vpack.c.bf16 %v2088_v56, %v2087_v24 }
0x10cc   :  { %v2074_v59 = vmul.f32 0.7978846, %v2070_v57  ;;  %v2932_v49 = vpop.eup %2931 }
0x10cd   :  { %2171 = vmatmul.bf16.vlgmr.msrb.gmra.mxu1 %v2091_v58  ;;  %v2081_v62 = vadd.f32 1.0, %v2932_v49 }
0x10ce   :  { %2933 = vtanh.f32 %v2074_v59 }
0x10cf   :  { %v2085_v27 = vmul.f32 0.5, %v2081_v62  ;;  %v2785_v62 = vld [vmem:[%s3850_s23 + $0x8] sm:$0xff] }
0x10d0   :  { %2339 = vmatpush.bf16.msrb.mxu3 %v2785_v62 }
0x10d1   :  { %v2089_v0 = vmul.f32 %v2085_v27, %v2051_v42  ;;  %v2784_v27 = vld [vmem:[%s3850_s23] sm:$0xff] }
0x10d4   :  { %v2934_v63 = vpop.eup %2933  ;;  %2340 = vmatpush.bf16.msrb.mxu3 %v2784_v27 }
0x10d5   :  { %v2082_v34 = vadd.f32 1.0, %v2934_v63 }
0x10d7   :  { %v2086_v48 = vmul.f32 0.5, %v2082_v34 }
0x10d9   :  { %v2090_v2 = vmul.f32 %v2086_v48, %v2053_v13 }
0x10db   :  { %v2092_v19 = vpack.c.bf16 %v2090_v2, %v2089_v0 }
0x10dd   :  { %2176 = vmatmul.bf16.gmra.mxu1 %v2092_v19 }
0x114a   :  { %v2172_v4 = vpop.f32.mrf.mxu1 }
0x114b   :  { %v2173_v44 = vadd.f32 %v2817_v3, %v2172_v4 }
0x114d   :  { %v2182_v6 = vadd.f32 %v2173_v44, %v3670_v35 }
0x114f   :  { %v2188_v7 = vsel %vm188_vm1, %v2182_v6, 0.0 }
0x1150   :  { %2189 = vadd.xlane.f32.xlu0 %v2188_v7 }
0x1152   :  { %v2174_v23 = vpop.f32.mrf.mxu1 }
0x1153   :  { %v2175_v9 = vadd.f32 %v2817_v3, %v2174_v23 }
0x1155   :  { %v2183_v5 = vadd.f32 %v2175_v9, %v3675_v10 }
0x1157   :  { %v2191_v16 = vsel %vm188_vm1, %v2183_v5, 0.0 }
0x115a   :  { %v2177_v47 = vpop.f32.mrf.mxu1 }
0x115b   :  { %v2178_v8 = vadd.f32 %v2817_v3, %v2177_v47 }
0x115d   :  { %v2184_v60 = vadd.f32 %v2178_v8, %v3680_v50 }
0x115f   :  { %v2194_v12 = vsel %vm188_vm1, %v2184_v60, 0.0 }
0x1160   :  { %2195 = vadd.xlane.f32.xlu1 %v2194_v12 }
0x1162   :  { %v2179_v61 = vpop.f32.mrf.mxu1 }
0x1163   :  { %v2180_v1 = vadd.f32 %v2817_v3, %v2179_v61 }
0x1165   :  { %v2185_v14 = vadd.f32 %v2180_v1, %v3685_v54 }
0x1167   :  { %v2197_v35 = vsel %vm188_vm1, %v2185_v14, 0.0 }
0x1168   :  { %2198 = vadd.xlane.f32.xlu2 %v2197_v35  ;;  %2192 = vadd.xlane.f32.xlu1 %v2191_v16  ;;  %v2818_v35 = vld [vmem:[%s3847_s20] ss:$0 sm:$0xff] }
0x11c3   :  { %v2190_v17 = vpop.xlane.xlu0 %2189 }
0x11c4   :  { %v2200_v11 = vmul.f32 %v2190_v17, %v3150_v31 }
0x11c6   :  { %v3773_v50 = vsub.f32 %v2182_v6, %v2200_v11 }
0x11c8   :  { %v2208_v20 = vmul.f32 %v3773_v50, %v3773_v50 }
0x11ca   :  { %v2212_v21 = vsel %vm188_vm1, %v2208_v20, 0.0 }
0x11cb   :  { %2213 = vadd.xlane.f32.xlu1 %v2212_v21 }
0x11d3   :  { %v2196_v10 = vpop.xlane.xlu1 %2195 }
0x11d4   :  { %v2202_v54 = vmul.f32 %v2196_v10, %v3150_v31 }
0x11d6   :  { %v3779_v22 = vsub.f32 %v2184_v60, %v2202_v54  ;;  %v2819_v54 = vld [vmem:[%s3848_s21] ss:$0 sm:$0xff] }
0x11d8   :  { %v2210_v30 = vmul.f32 %v3779_v22, %v3779_v22 }
0x11da   :  { %v2218_v25 = vsel %vm188_vm1, %v2210_v30, 0.0 }
0x11db   :  { %v2199_v26 = vpop.xlane.xlu2 %2198  ;;  %2219 = vadd.xlane.f32.xlu2 %v2218_v25  ;;  %v2193_v37 = vpop.xlane.xlu1 %2192 }
0x11dc   :  { %v2203_v28 = vmul.f32 %v2199_v26, %v3150_v31  ;;  %v2201_v29 = vmul.f32 %v2193_v37, %v3150_v31 }
0x11de   :  { %v3786_v42 = vsub.f32 %v2185_v14, %v2203_v28  ;;  %v3788_v33 = vsub.f32 %v2183_v5, %v2201_v29 }
0x11e0   :  { %v2209_v39 = vmul.f32 %v3788_v33, %v3788_v33  ;;  %v2211_v38 = vmul.f32 %v3786_v42, %v3786_v42 }
0x11e2   :  { %v2215_v40 = vsel %vm188_vm1, %v2209_v39, 0.0  ;;  %v2221_v41 = vsel %vm188_vm1, %v2211_v38, 0.0 }
0x11e3   :  { %2216 = vadd.xlane.f32.xlu2 %v2215_v40  ;;  %2222 = vadd.xlane.f32.xlu0 %v2221_v41  ;;  %v2820_v40 = vld [vmem:[%s3888_s28] ss:$0 sm:$0xff] }
0x123e   :  { %v2214_v43 = vpop.xlane.xlu1 %2213 }
0x123f   :  { %v2224_v32 = vmul.f32 %v2214_v43, %v3150_v31 }
0x1241   :  { %v2228_v46 = vadd.f32 1e-06, %v2224_v32 }
0x1243   :  { %2935 = vrsqrt.f32 %v2228_v46  ;;  %vm2238_vm6 = vweird.f32 %v2228_v46 }
0x1249   :  { %v2936_v45 = vpop.eup %2935 }
0x124a   :  { %v2233_v36 = vmul.f32 %v2936_v45, %v2228_v46  ;;  %vm2239_vm15 = vweird.f32 %v2936_v45 }
0x124b   :  { %vm2240_vm8 = vmor %vm2238_vm6, %vm2239_vm15 }
0x124c   :  { %v2234_v59 = vmul.f32 %v2936_v45, %v2233_v36 }
0x124e   :  { %v2220_v13 = vpop.xlane.xlu2 %2219  ;;  %v2235_v34 = vmul.f32 0.5, %v2234_v59 }
0x124f   :  { %v2226_v15 = vmul.f32 %v2220_v13, %v3150_v31 }
0x1250   :  { %v2236_v19 = vsub.f32 1.5, %v2235_v34 }
0x1251   :  { %v2230_v51 = vadd.f32 1e-06, %v2226_v15 }
0x1252   :  { %v2237_v23 = vmul.f32 %v2936_v45, %v2236_v19 }
0x1253   :  { %2937 = vrsqrt.f32 %v2230_v51  ;;  %vm2258_vm3 = vweird.f32 %v2230_v51 }
0x1254   :  { %v2241_v1 = vsel %vm2240_vm8, %v2936_v45, %v2237_v23 }
0x1255   :  { %v2272_v11 = vmul.f32 %v2241_v1, %v3773_v50  ;;  %v2290_v50 = vld [vmem:[%s3849_s22] sm:$0x1] }
0x1256   :  { %v2217_v53 = vpop.xlane.xlu2 %2216  ;;  %v2223_v18 = vpop.xlane.xlu0 %2222 }
0x1257   :  { %v2225_v55 = vmul.f32 %v2217_v53, %v3150_v31  ;;  %v2227_v52 = vmul.f32 %v2223_v18, %v3150_v31  ;;  %v2279_v26 = vmul.f32 %v2818_v35, %v2272_v11 }
0x1259   :  { %v2938_v24 = vpop.eup %2937  ;;  %v2229_v56 = vadd.f32 1e-06, %v2225_v55  ;;  %v2231_v57 = vadd.f32 1e-06, %v2227_v52  ;;  %v2286_v29 = vadd.f32 %v2819_v54, %v2279_v26 }
0x125a   :  { %v2253_v58 = vmul.f32 %v2938_v24, %v2230_v51  ;;  %vm2259_vm2 = vweird.f32 %v2938_v24 }
0x125b   :  { %2939 = vrsqrt.f32 %v2229_v56  ;;  %vm2260_vm4 = vmor %vm2258_vm3, %vm2259_vm2  ;;  %vm2248_vm9 = vweird.f32 %v2229_v56  ;;  %vm2268_vm11 = vweird.f32 %v2231_v57 }
0x125c   :  { %v2254_v49 = vmul.f32 %v2938_v24, %v2253_v58  ;;  %2941 = vrsqrt.f32 %v2231_v57 }
0x125e   :  { %v2255_v63 = vmul.f32 0.5, %v2254_v49 }
0x1260   :  { %v2256_v31 = vsub.f32 1.5, %v2255_v63 }
0x1261   :  { %v2940_v48 = vpop.eup %2939 }
0x1262   :  { %v2942_v0 = vpop.eup %2941  ;;  %v2243_v2 = vmul.f32 %v2940_v48, %v2229_v56  ;;  %v2257_v3 = vmul.f32 %v2938_v24, %v2256_v31  ;;  %vm2249_vm5 = vweird.f32 %v2940_v48 }
0x1263   :  { %v2263_v4 = vmul.f32 %v2942_v0, %v2231_v57  ;;  %vm2269_vm7 = vweird.f32 %v2942_v0  ;;  %vm2250_vm10 = vmor %vm2248_vm9, %vm2249_vm5 }
0x1264   :  { %v2244_v44 = vmul.f32 %v2940_v48, %v2243_v2  ;;  %v2261_v47 = vsel %vm2260_vm4, %v2938_v24, %v2257_v3  ;;  %vm2270_vm12 = vmor %vm2268_vm11, %vm2269_vm7 }
0x1265   :  { %v2264_v6 = vmul.f32 %v2942_v0, %v2263_v4  ;;  %v2274_v12 = vmul.f32 %v2261_v47, %v3779_v22 }
0x1266   :  { %v2245_v7 = vmul.f32 0.5, %v2244_v44 }
0x1267   :  { %v2265_v8 = vmul.f32 0.5, %v2264_v6  ;;  %v2281_v21 = vmul.f32 %v2818_v35, %v2274_v12 }
0x1268   :  { %v2246_v60 = vsub.f32 1.5, %v2245_v7 }
0x1269   :  { %v2266_v9 = vsub.f32 1.5, %v2265_v8  ;;  %v2288_v30 = vadd.f32 %v2819_v54, %v2281_v21 }
0x126a   :  { %v2247_v61 = vmul.f32 %v2940_v48, %v2246_v60 }
0x126b   :  { %v2267_v5 = vmul.f32 %v2942_v0, %v2266_v9 }
0x126c   :  { %v2251_v14 = vsel %vm2250_vm10, %v2940_v48, %v2247_v61 }
0x126d   :  { %v2273_v16 = vmul.f32 %v2251_v14, %v3788_v33  ;;  %v2271_v17 = vsel %vm2270_vm12, %v2942_v0, %v2267_v5 }
0x126e   :  { %v2275_v20 = vmul.f32 %v2271_v17, %v3786_v42 }
0x126f   :  { %v2280_v22 = vmul.f32 %v2818_v35, %v2273_v16 }
0x1270   :  { %v2282_v10 = vmul.f32 %v2818_v35, %v2275_v20 }
0x1271   :  { %v2287_v28 = vadd.f32 %v2819_v54, %v2280_v22 }
0x1272   :  { %v2289_v25 = vadd.f32 %v2819_v54, %v2282_v10 }
0x1273   :  { %v2291_v33 = vpack.c.bf16 %v2287_v28, %v2286_v29 }
0x1274   :  { %v2292_v37 = vpack.c.bf16 %v2289_v25, %v2288_v30 }
0x1276   :  { %2302 = vmatpush.bf16.msrb.mxu2 %v2292_v37 }
0x127a   :  { %2303 = vmatpush.bf16.msrb.mxu2 %v2291_v33 }
0x127d   :  { %2720 = vmatmul.msk.bf16.vlgmr.msrb.gmra.mxu2 %vm188_vm1, %v2290_v50 }
0x1300   :  { %v2305_v42 = vpop.f32.mrf.mxu2 }
0x1301   :  { %v2309_v39 = vpack.c.bf16 %v2305_v42, %v2305_v42 }
0x1303   :  { %2729 = vmatmul.msk.bf16.vlgmr.msrb.gmra.mxu3 %vm188_vm1, %v2309_v39 }
0x1308   :  { %v2307_v38 = vpop.f32.mrf.mxu2 }
0x1386   :  { %v2342_v41 = vpop.f32.mrf.mxu3 }
0x1387   :  { %v2343_v43 = vadd.f32 %v2820_v40, %v2342_v41 }
0x1389   :  { %2347 = vst.msk [vmem:[#allocation2] sm:$0x3] %vm2346_vm13, %v2343_v43 }
0x138a   :  { %2360 = dma.vmem_to_hbm [thread:$0]  %s2356_s5, 32, %s2358_s27, [#allocation3]  }
0x138e   :  { %v2344_v32 = vpop.f32.mrf.mxu3 }
0x138f   :  { %2967 = dma.done.wait [#allocation3], 32  }
0x1390   :  { %2968 = vsyncadd [#allocation3], 4294967264 }
0x1391   :  { %2367 = vsyncpa [#allocation3], 1 }

</bundles_post_ra>
